<compile_context>
chip_gen: v7x
topology: tpu7x:2x2x1
jax: 0.10.0
libtpu: 0.0.40
codegen_flags: <defaults>
</compile_context>

<pallas_src>
import functools

import jax
import jax.numpy as jnp
import numpy as np
from jax import lax
from jax.experimental import pallas as pl
from jax.experimental.pallas import tpu as pltpu

_LANE = 128


def _round_up(x, m):
    return (x + m - 1) // m * m


# ----------------------------------------------------------------------------
# Pallas kernel: conv + folded BatchNorm + (optional residual) + activation
# ----------------------------------------------------------------------------
def _conv_bn_act_kernel(x_ref, w_ref, shift_ref, *rest,
                        K, stride, Ho, Wo, cin, act, fuse_residual,
                        fold_taps, row_chunk):
    """One (batch-element, Cout-block) grid step.

    x_ref:     (s*s, Hs, Ws, Cin)  phase-split, spatially padded input (bf16)
    w_ref:     (K*K*Cin, TCo)      flattened conv weights * BN scale (bf16)
    shift_ref: (1, TCo)            folded BN bias  beta - mean * scale (f32)
    res_ref:   (Ho, Wo, TCo)       optional residual (f32), added before act
    o_ref:     (Ho, Wo, TCo)       output
    """
    if fuse_residual:
        res_ref, o_ref = rest
    else:
        (o_ref,) = rest

    s = stride
    tco = o_ref.shape[-1]

    # Hoisted once per grid step (not per row-chunk): (1, TCo) broadcast.
    shift = shift_ref[...]

    def tap(kh, kw, r0, th):
        # Phase-split input => contiguous (non-strided) slice even for s > 1.
        ph = (kh % s) * s + (kw % s)
        return x_ref[ph,
                     r0 + kh // s: r0 + kh // s + th,
                     kw // s: kw // s + Wo, :]

    # Static row-chunk loop keeps the im2col patch / f32 accumulator bounded.
    for r0 in range(0, Ho, row_chunk):
        th = min(row_chunk, Ho - r0)
        m = th * Wo

        taps = [tap(kh, kw, r0, th).reshape(m, cin)
                for kh in range(K) for kw in range(K)]

        if fold_taps:
            # Fold K*K*Cin into the MXU contraction: one lane-dense matmul.
            patch = jnp.concatenate(taps, axis=-1)          # (m, K*K*Cin)
            acc = jnp.dot(patch, w_ref[...],
                          preferred_element_type=jnp.float32)
        else:
            # Cin already fills the MXU contraction lanes: per-tap matmuls.
            acc = jnp.zeros((m, tco), jnp.float32)
            for t, p in enumerate(taps):
                acc = acc + jnp.dot(p, w_ref[t * cin:(t + 1) * cin, :],
                                    preferred_element_type=jnp.float32)

        # BN scale already folded into the weights: epilogue is one add.
        y = acc + shift
        if fuse_residual:
            y = y + res_ref[r0:r0 + th].reshape(m, tco).astype(jnp.float32)

        if act == "relu":
            y = jnp.maximum(y, 0.0)
        elif act == "leaky_relu":
            y = jnp.where(y >= 0.0, y, 0.01 * y)
        elif act == "silu":
            # exp and approx-reciprocal both go to the EUP slot.
            y = y * pl.reciprocal(1.0 + jnp.exp(-y), approx=True)
        # act is None -> identity

        o_ref[r0:r0 + th] = y.reshape(th, Wo, tco).astype(o_ref.dtype)


# ----------------------------------------------------------------------------
# Wrapper: one ConvNormLayer (+ optional fused residual / activation)
# ----------------------------------------------------------------------------
def conv_bn_act(x_nhwc, w_oihw, gamma, beta, mean, var, *,
                stride=1, act=None, residual=None, padding=None,
                eps=1e-5, compute_dtype=jnp.bfloat16, out_dtype=jnp.float32,
                cout_block=256):
    """ConvNormLayer.forward (eval-mode BN) in NHWC, output NHWC."""
    act = act.lower() if isinstance(act, str) else None
    if act not in (None, "relu", "leaky_relu", "silu"):
        # TODO(synk): gelu / glu epilogues are not implemented in the kernel.
        raise NotImplementedError(f"activation '{act}'")

    N, H, W, Cin = x_nhwc.shape
    Cout, Cin_w, K, K2 = w_oihw.shape
    assert Cin_w == Cin and K == K2
    s = int(stride)
    pad = (K - 1) // 2 if padding is None else int(padding)
    Ho = (H + 2 * pad - K) // s + 1
    Wo = (W + 2 * pad - K) // s + 1

    # ---- layout glue (plain JAX; XLA fuses pad + phase split + cast) ----
    # Pad spatially, then split into s*s stride-phases so the kernel only ever
    # takes contiguous slices (no sublane-strided access for stride=2).
    Hp = _round_up(H + 2 * pad, s)
    Wp = _round_up(W + 2 * pad, s)
    x_pad = jnp.pad(x_nhwc,
                    ((0, 0), (pad, Hp - H - pad), (pad, Wp - W - pad), (0, 0)))
    if s == 1:
        x_ph = x_pad[:, None]                                  # (N,1,Hp,Wp,C)
    else:
        x_ph = jnp.stack([x_pad[:, i::s, j::s, :]
                          for i in range(s) for j in range(s)], axis=1)
    x_ph = x_ph.astype(compute_dtype)
    PH, Hs, Ws = x_ph.shape[1], x_ph.shape[2], x_ph.shape[3]

    # Fold BatchNorm (eval) fully into the conv: scale -> weights, shift -> bias.
    scale = (gamma / jnp.sqrt(var + eps)).astype(jnp.float32)        # (Cout,)
    shift = (beta - mean * scale).astype(jnp.float32)                # (Cout,)

    # Weights OIHW -> HWIO -> (K*K*Cin, Cout) * scale; pad Cout to a lane
    # multiple so the kernel's output block is lane-dense.
    KKC = K * K * Cin
    Cp = _round_up(Cout, _LANE)
    w2d = jnp.transpose(w_oihw, (2, 3, 1, 0)).reshape(KKC, Cout) * scale[None, :]
    w2d = jnp.pad(w2d, ((0, 0), (0, Cp - Cout))).astype(compute_dtype)
    shift = jnp.pad(shift, (0, Cp - Cout)).reshape(1, Cp)

    fuse_residual = residual is not None
    operands = [x_ph, w2d, shift]
    if fuse_residual:
        assert residual.shape == (N, Ho, Wo, Cout)
        res = jnp.pad(residual.astype(jnp.float32),
                      ((0, 0), (0, 0), (0, 0), (0, Cp - Cout)))
        operands.append(res)

    TCo = cout_block if Cp % cout_block == 0 else _LANE
    n_co = Cp // TCo
    grid = (N, n_co)

    # Fold taps into the contraction when Cin alone underfills the MXU lanes.
    fold_taps = (K > 1) and (Cin < 128)
    # Bound the rows processed per chunk so the im2col patch (bf16) and the
    # f32 accumulator stay comfortably inside vreg/VMEM budgets.
    if fold_taps:
        max_m = max(Wo, (256 * 1024) // (KKC * 2))
    else:
        max_m = 2048
    row_chunk = max(1, min(Ho, max_m // max(Wo, 1)))

    kernel = functools.partial(
        _conv_bn_act_kernel, K=K, stride=s, Ho=Ho, Wo=Wo, cin=Cin, act=act,
        fuse_residual=fuse_residual, fold_taps=fold_taps, row_chunk=row_chunk)

    in_specs = [
        # Input: per-batch-element block, constant across the Cout axis so it
        # stays resident while Cout blocks iterate.
        pl.BlockSpec((None, PH, Hs, Ws, Cin), lambda n, c: (n, 0, 0, 0, 0)),
        # Weights / BN bias: constant across the batch axis.
        pl.BlockSpec((KKC, TCo), lambda n, c: (0, c)),
        pl.BlockSpec((1, TCo), lambda n, c: (0, c)),
    ]
    if fuse_residual:
        in_specs.append(
            pl.BlockSpec((None, Ho, Wo, TCo), lambda n, c: (n, 0, 0, c)))
    out_specs = pl.BlockSpec((None, Ho, Wo, TCo), lambda n, c: (n, 0, 0, c))

    ebytes = jnp.dtype(compute_dtype).itemsize
    obytes = jnp.dtype(out_dtype).itemsize
    cost = pl.CostEstimate(
        flops=2 * N * Ho * Wo * KKC * Cp,
        transcendentals=(N * Ho * Wo * Cp) if act == "silu" else 0,
        bytes_accessed=(x_ph.size * ebytes + w2d.size * ebytes
                        + shift.size * 4
                        + (res.size * 4 if fuse_residual else 0)
                        + N * Ho * Wo * Cp * obytes),
    )

    out = pl.pallas_call(
        kernel,
        out_shape=jax.ShapeDtypeStruct((N, Ho, Wo, Cp), out_dtype),
        grid=grid,
        in_specs=in_specs,
        out_specs=out_specs,
        compiler_params=pltpu.CompilerParams(
            dimension_semantics=("parallel", "parallel"),
            vmem_limit_bytes=48 * 1024 * 1024),
        cost_estimate=cost,
    )(*operands)

    return out[..., :Cout]


# ----------------------------------------------------------------------------
# BasicBlock forward (Pallas) and pure-JAX reference
# ----------------------------------------------------------------------------
def _avg_pool_2x2(x_nhwc):
    # AvgPool2d(2, 2, 0, ceil_mode=True) used by the 'd' variant shortcut.
    N, H, W, C = x_nhwc.shape
    if H % 2 or W % 2:
        # TODO(synk): ceil_mode edge windows for odd spatial dims.
        raise NotImplementedError("odd spatial dims for variant 'd' avg-pool")
    return x_nhwc.reshape(N, H // 2, 2, W // 2, 2, C).mean(axis=(2, 4))


def basic_block(x_nchw, params, *, stride, shortcut, act="relu",
                variant="b", compute_dtype=jnp.bfloat16):
    """Pallas forward of PResNet BasicBlock (eval-mode BatchNorm)."""
    x = jnp.transpose(x_nchw, (0, 2, 3, 1)).astype(jnp.float32)   # NCHW->NHWC

    # branch2a output feeds the next MXU matmul as bf16 anyway: store bf16.
    out = conv_bn_act(x, *params["branch2a"], stride=stride, act=act,
                      compute_dtype=compute_dtype, out_dtype=compute_dtype)
    if shortcut:
        short = x
    elif variant == "d" and stride == 2:
        short = conv_bn_act(_avg_pool_2x2(x), *params["short"], stride=1,
                            act=None, compute_dtype=compute_dtype)
    else:
        short = conv_bn_act(x, *params["short"], stride=stride, act=None,
                            compute_dtype=compute_dtype)
    # branch2b conv + BN, the residual add and the block activation are all
    # fused into a single Pallas kernel.
    y = conv_bn_act(out, *params["branch2b"], stride=1, act=act,
                    residual=short, compute_dtype=compute_dtype)
    return jnp.transpose(y, (0, 3, 1, 2))                          # NHWC->NCHW


def _conv_norm_ref(x_nhwc, p, *, stride, act, padding=None, eps=1e-5,
                   compute_dtype=jnp.bfloat16):
    w, gamma, beta, mean, var = p
    K = w.shape[-1]
    pad = (K - 1) // 2 if padding is None else padding
    w_hwio = jnp.transpose(w, (2, 3, 1, 0))
    y = lax.conv_general_dilated(
        x_nhwc.astype(compute_dtype), w_hwio.astype(compute_dtype),
        window_strides=(stride, stride), padding=[(pad, pad), (pad, pad)],
        dimension_numbers=("NHWC", "HWIO", "NHWC"),
        preferred_element_type=jnp.float32)
    scale = gamma / jnp.sqrt(var + eps)
    shift = beta - mean * scale
    y = y * scale + shift
    if act == "relu":
        y = jnp.maximum(y, 0.0)
    elif act == "leaky_relu":
        y = jnp.where(y >= 0.0, y, 0.01 * y)
    elif act == "silu":
        y = y * jax.nn.sigmoid(y)
    return y


def _basic_block_ref(x_nchw, params, *, stride, shortcut, act="relu",
                     variant="b", compute_dtype=jnp.bfloat16):
    x = jnp.transpose(x_nchw, (0, 2, 3, 1)).astype(jnp.float32)
    out = _conv_norm_ref(x, params["branch2a"], stride=stride, act=act,
                         compute_dtype=compute_dtype)
    out = _conv_norm_ref(out, params["branch2b"], stride=1, act=None,
                         compute_dtype=compute_dtype)
    if shortcut:
        short = x
    elif variant == "d" and stride == 2:
        short = _conv_norm_ref(_avg_pool_2x2(x), params["short"], stride=1,
                               act=None, compute_dtype=compute_dtype)
    else:
        short = _conv_norm_ref(x, params["short"], stride=stride, act=None,
                               compute_dtype=compute_dtype)
    y = out + short
    if act == "relu":
        y = jnp.maximum(y, 0.0)
    elif act == "silu":
        y = y * jax.nn.sigmoid(y)
    return jnp.transpose(y, (0, 3, 1, 2))


# ----------------------------------------------------------------------------
# Demo / self-test
# ----------------------------------------------------------------------------
def _init_conv_norm(key, ch_in, ch_out, k):
    kw, kg, kb, km, kv = jax.random.split(key, 5)
    w = jax.random.normal(kw, (ch_out, ch_in, k, k), jnp.float32)
    w = w * (1.0 / np.sqrt(ch_in * k * k))
    gamma = 1.0 + 0.1 * jax.random.normal(kg, (ch_out,), jnp.float32)
    beta = 0.1 * jax.random.normal(kb, (ch_out,), jnp.float32)
    mean = 0.1 * jax.random.normal(km, (ch_out,), jnp.float32)
    var = jnp.abs(jax.random.normal(kv, (ch_out,), jnp.float32)) + 0.5
    return (w, gamma, beta, mean, var)


if __name__ == "__main__":
    key = jax.random.PRNGKey(0)
    kx1, kx2, ka1, kb1, ka2, kb2, ks2 = jax.random.split(key, 7)

    # Tolerances reflect bfloat16 MXU operands (f32 accumulate) on both the
    # Pallas path and the reference path.
    RTOL = ATOL = 1e-2

    # --- Config 1: identity shortcut (stride=1, ch_in == ch_out) ------------
    N, C, H, W = 2, 8, 16, 16
    x1 = jax.random.normal(kx1, (N, C, H, W), jnp.float32)
    p1 = {"branch2a": _init_conv_norm(ka1, C, C, 3),
          "branch2b": _init_conv_norm(kb1, C, C, 3)}
    f1 = jax.jit(functools.partial(basic_block, stride=1, shortcut=True,
                                   act="relu"))
    out1 = jax.block_until_ready(f1(x1, p1))
    ref1 = jax.block_until_ready(
        _basic_block_ref(x1, p1, stride=1, shortcut=True, act="relu"))
    np.testing.assert_allclose(np.asarray(out1), np.asarray(ref1),
                               rtol=RTOL, atol=ATOL)

    # --- Config 2: projection shortcut + stride-2 downsample (variant 'b') --
    Cin, Cout = 4, 8
    x2 = jax.random.normal(kx2, (N, Cin, H, W), jnp.float32)
    p2 = {"branch2a": _init_conv_norm(ka2, Cin, Cout, 3),
          "branch2b": _init_conv_norm(kb2, Cout, Cout, 3),
          "short": _init_conv_norm(ks2, Cin, Cout, 1)}
    f2 = jax.jit(functools.partial(basic_block, stride=2, shortcut=False,
                                   act="relu", variant="b"))
    out2 = jax.block_until_ready(f2(x2, p2))
    ref2 = jax.block_until_ready(
        _basic_block_ref(x2, p2, stride=2, shortcut=False, act="relu",
                         variant="b"))
    np.testing.assert_allclose(np.asarray(out2), np.asarray(ref2),
                               rtol=RTOL, atol=ATOL)

    print("KERNEL_OK")
</pallas_src>

<mosaic_0001>
module attributes {stable_mosaic.version = 11 : i64} {
  func.func @_conv_bn_act_kernel(%arg0: i32, %arg1: i32, %arg2: memref<1x1x18x18x8xbf16, #tpu.memory_space<vmem>>, %arg3: memref<72x128xbf16, #tpu.memory_space<vmem>>, %arg4: memref<1x128xf32, #tpu.memory_space<vmem>>, %arg5: memref<1x16x16x128xbf16, #tpu.memory_space<vmem>>) attributes {dimension_semantics = [#tpu.dimension_semantics<parallel>, #tpu.dimension_semantics<parallel>], iteration_bounds = array<i64: 2, 1>, scalar_prefetch = 0 : i64, scratch_operands = 0 : i64, tpu.core_type = #tpu.core_type<tc>, window_params = [{transform_indices = @transform_0, window_bounds = array<i64: 1, 1, 18, 18, 8>}, {transform_indices = @transform_1, window_bounds = array<i64: 72, 128>}, {transform_indices = @transform_2, window_bounds = array<i64: 1, 128>}, {transform_indices = @transform_3, window_bounds = array<i64: 1, 16, 16, 128>}]} {
    %c0 = arith.constant 0 : index
    %c0_0 = arith.constant 0 : index
    %0 = vector.load %arg4[%c0, %c0_0] : memref<1x128xf32, #tpu.memory_space<vmem>>, vector<1x128xf32>
    %c0_1 = arith.constant 0 : index
    %c0_2 = arith.constant 0 : index
    %c0_3 = arith.constant 0 : index
    %c0_4 = arith.constant 0 : index
    %c0_5 = arith.constant 0 : index
    %1 = vector.load %arg2[%c0_1, %c0_2, %c0_3, %c0_4, %c0_5] : memref<1x1x18x18x8xbf16, #tpu.memory_space<vmem>>, vector<1x1x16x16x8xbf16>
    %2 = vector.shape_cast %1 : vector<1x1x16x16x8xbf16> to vector<16x16x8xbf16>
    %3 = vector.shape_cast %2 : vector<16x16x8xbf16> to vector<256x8xbf16>
    %c0_6 = arith.constant 0 : index
    %c0_7 = arith.constant 0 : index
    %c0_8 = arith.constant 0 : index
    %c1 = arith.constant 1 : index
    %c0_9 = arith.constant 0 : index
    %4 = vector.load %arg2[%c0_6, %c0_7, %c0_8, %c1, %c0_9] : memref<1x1x18x18x8xbf16, #tpu.memory_space<vmem>>, vector<1x1x16x16x8xbf16>
    %5 = vector.shape_cast %4 : vector<1x1x16x16x8xbf16> to vector<16x16x8xbf16>
    %6 = vector.shape_cast %5 : vector<16x16x8xbf16> to vector<256x8xbf16>
    %c0_10 = arith.constant 0 : index
    %c0_11 = arith.constant 0 : index
    %c0_12 = arith.constant 0 : index
    %c2 = arith.constant 2 : index
    %c0_13 = arith.constant 0 : index
    %7 = vector.load %arg2[%c0_10, %c0_11, %c0_12, %c2, %c0_13] : memref<1x1x18x18x8xbf16, #tpu.memory_space<vmem>>, vector<1x1x16x16x8xbf16>
    %8 = vector.shape_cast %7 : vector<1x1x16x16x8xbf16> to vector<16x16x8xbf16>
    %9 = vector.shape_cast %8 : vector<16x16x8xbf16> to vector<256x8xbf16>
    %c0_14 = arith.constant 0 : index
    %c0_15 = arith.constant 0 : index
    %c1_16 = arith.constant 1 : index
    %c0_17 = arith.constant 0 : index
    %c0_18 = arith.constant 0 : index
    %10 = vector.load %arg2[%c0_14, %c0_15, %c1_16, %c0_17, %c0_18] : memref<1x1x18x18x8xbf16, #tpu.memory_space<vmem>>, vector<1x1x16x16x8xbf16>
    %11 = vector.shape_cast %10 : vector<1x1x16x16x8xbf16> to vector<16x16x8xbf16>
    %12 = vector.shape_cast %11 : vector<16x16x8xbf16> to vector<256x8xbf16>
    %c0_19 = arith.constant 0 : index
    %c0_20 = arith.constant 0 : index
    %c1_21 = arith.constant 1 : index
    %c1_22 = arith.constant 1 : index
    %c0_23 = arith.constant 0 : index
    %13 = vector.load %arg2[%c0_19, %c0_20, %c1_21, %c1_22, %c0_23] : memref<1x1x18x18x8xbf16, #tpu.memory_space<vmem>>, vector<1x1x16x16x8xbf16>
    %14 = vector.shape_cast %13 : vector<1x1x16x16x8xbf16> to vector<16x16x8xbf16>
    %15 = vector.shape_cast %14 : vector<16x16x8xbf16> to vector<256x8xbf16>
    %c0_24 = arith.constant 0 : index
    %c0_25 = arith.constant 0 : index
    %c1_26 = arith.constant 1 : index
    %c2_27 = arith.constant 2 : index
    %c0_28 = arith.constant 0 : index
    %16 = vector.load %arg2[%c0_24, %c0_25, %c1_26, %c2_27, %c0_28] : memref<1x1x18x18x8xbf16, #tpu.memory_space<vmem>>, vector<1x1x16x16x8xbf16>
    %17 = vector.shape_cast %16 : vector<1x1x16x16x8xbf16> to vector<16x16x8xbf16>
    %18 = vector.shape_cast %17 : vector<16x16x8xbf16> to vector<256x8xbf16>
    %c0_29 = arith.constant 0 : index
    %c0_30 = arith.constant 0 : index
    %c2_31 = arith.constant 2 : index
    %c0_32 = arith.constant 0 : index
    %c0_33 = arith.constant 0 : index
    %19 = vector.load %arg2[%c0_29, %c0_30, %c2_31, %c0_32, %c0_33] : memref<1x1x18x18x8xbf16, #tpu.memory_space<vmem>>, vector<1x1x16x16x8xbf16>
    %20 = vector.shape_cast %19 : vector<1x1x16x16x8xbf16> to vector<16x16x8xbf16>
    %21 = vector.shape_cast %20 : vector<16x16x8xbf16> to vector<256x8xbf16>
    %c0_34 = arith.constant 0 : index
    %c0_35 = arith.constant 0 : index
    %c2_36 = arith.constant 2 : index
    %c1_37 = arith.constant 1 : index
    %c0_38 = arith.constant 0 : index
    %22 = vector.load %arg2[%c0_34, %c0_35, %c2_36, %c1_37, %c0_38] : memref<1x1x18x18x8xbf16, #tpu.memory_space<vmem>>, vector<1x1x16x16x8xbf16>
    %23 = vector.shape_cast %22 : vector<1x1x16x16x8xbf16> to vector<16x16x8xbf16>
    %24 = vector.shape_cast %23 : vector<16x16x8xbf16> to vector<256x8xbf16>
    %c0_39 = arith.constant 0 : index
    %c0_40 = arith.constant 0 : index
    %c2_41 = arith.constant 2 : index
    %c2_42 = arith.constant 2 : index
    %c0_43 = arith.constant 0 : index
    %25 = vector.load %arg2[%c0_39, %c0_40, %c2_41, %c2_42, %c0_43] : memref<1x1x18x18x8xbf16, #tpu.memory_space<vmem>>, vector<1x1x16x16x8xbf16>
    %26 = vector.shape_cast %25 : vector<1x1x16x16x8xbf16> to vector<16x16x8xbf16>
    %27 = vector.shape_cast %26 : vector<16x16x8xbf16> to vector<256x8xbf16>
    %28 = tpu.concatenate %3, %6, %9, %12, %15, %18, %21, %24, %27 in 1 : vector<256x8xbf16>, vector<256x8xbf16>, vector<256x8xbf16>, vector<256x8xbf16>, vector<256x8xbf16>, vector<256x8xbf16>, vector<256x8xbf16>, vector<256x8xbf16>, vector<256x8xbf16> -> vector<256x72xbf16>
    %c0_44 = arith.constant 0 : index
    %c0_45 = arith.constant 0 : index
    %29 = vector.load %arg3[%c0_44, %c0_45] : memref<72x128xbf16, #tpu.memory_space<vmem>>, vector<72x128xbf16>
    %cst = arith.constant dense<0.000000e+00> : vector<256x128xf32>
    %30 = tpu.matmul %28, %29, %cst {dimension_numbers = #tpu.dot_dimension_numbers<[1], [0], [0], [1], [0, 0, 1, 1], [], []>} : vector<256x72xbf16>, vector<72x128xbf16>, vector<256x128xf32> -> vector<256x128xf32>
    %31 = vector.broadcast %0 : vector<1x128xf32> to vector<256x128xf32>
    %32 = arith.addf %30, %31 : vector<256x128xf32>
    %cst_46 = arith.constant 0.000000e+00 : f32
    %33 = vector.broadcast %cst_46 : f32 to vector<256x128xf32>
    %34 = arith.maximumf %32, %33 : vector<256x128xf32>
    %35 = vector.shape_cast %34 : vector<256x128xf32> to vector<16x16x128xf32>
    %36 = arith.truncf %35 : vector<16x16x128xf32> to vector<16x16x128xbf16>
    %c0_47 = arith.constant 0 : index
    %c0_48 = arith.constant 0 : index
    %c0_49 = arith.constant 0 : index
    %c0_50 = arith.constant 0 : index
    %37 = vector.load %arg5[%c0_47, %c0_48, %c0_49, %c0_50] : memref<1x16x16x128xbf16, #tpu.memory_space<vmem>>, vector<1x16x16x128xbf16>
    %38 = vector.shape_cast %37 : vector<1x16x16x128xbf16> to vector<16x16x128xbf16>
    %39 = vector.shape_cast %36 : vector<16x16x128xbf16> to vector<1x16x16x128xbf16>
    tpu.vector_store %arg5[%c0_47, %c0_48, %c0_49, %c0_50], %39 {strides = array<i32>} : memref<1x16x16x128xbf16, #tpu.memory_space<vmem>>, vector<1x16x16x128xbf16>,
    return
  }
  func.func @transform_0(%arg0: i32, %arg1: i32) -> (i32, i32, i32, i32, i32) {
    %c0_i32 = arith.constant 0 : i32
    %c0_i32_0 = arith.constant 0 : i32
    %c0_i32_1 = arith.constant 0 : i32
    %c0_i32_2 = arith.constant 0 : i32
    %c0_i32_3 = arith.constant 0 : i32
    return %arg0, %c0_i32, %c0_i32_0, %c0_i32_1, %c0_i32_2 : i32, i32, i32, i32, i32
  }
  func.func @transform_1(%arg0: i32, %arg1: i32) -> (i32, i32) {
    %c0_i32 = arith.constant 0 : i32
    %c0_i32_0 = arith.constant 0 : i32
    return %c0_i32, %arg1 : i32, i32
  }
  func.func @transform_2(%arg0: i32, %arg1: i32) -> (i32, i32) {
    %c0_i32 = arith.constant 0 : i32
    %c0_i32_0 = arith.constant 0 : i32
    return %c0_i32, %arg1 : i32, i32
  }
  func.func @transform_3(%arg0: i32, %arg1: i32) -> (i32, i32, i32, i32) {
    %c0_i32 = arith.constant 0 : i32
    %c0_i32_0 = arith.constant 0 : i32
    %c0_i32_1 = arith.constant 0 : i32
    return %arg0, %c0_i32, %c0_i32_0, %arg1 : i32, i32, i32, i32
  }
}

module attributes {stable_mosaic.version = 11 : i64} {
  func.func @_conv_bn_act_kernel(%arg0: i32, %arg1: i32, %arg2: memref<1x1x18x18x8xbf16, #tpu.memory_space<vmem>>, %arg3: memref<72x128xbf16, #tpu.memory_space<vmem>>, %arg4: memref<1x128xf32, #tpu.memory_space<vmem>>, %arg5: memref<1x16x16x128xf32, #tpu.memory_space<vmem>>, %arg6: memref<1x16x16x128xf32, #tpu.memory_space<vmem>>) attributes {dimension_semantics = [#tpu.dimension_semantics<parallel>, #tpu.dimension_semantics<parallel>], iteration_bounds = array<i64: 2, 1>, scalar_prefetch = 0 : i64, scratch_operands = 0 : i64, tpu.core_type = #tpu.core_type<tc>, window_params = [{transform_indices = @transform_0, window_bounds = array<i64: 1, 1, 18, 18, 8>}, {transform_indices = @transform_1, window_bounds = array<i64: 72, 128>}, {transform_indices = @transform_2, window_bounds = array<i64: 1, 128>}, {transform_indices = @transform_3, window_bounds = array<i64: 1, 16, 16, 128>}, {transform_indices = @transform_4, window_bounds = array<i64: 1, 16, 16, 128>}]} {
    %c0 = arith.constant 0 : index
    %c0_0 = arith.constant 0 : index
    %0 = vector.load %arg4[%c0, %c0_0] : memref<1x128xf32, #tpu.memory_space<vmem>>, vector<1x128xf32>
    %c0_1 = arith.constant 0 : index
    %c0_2 = arith.constant 0 : index
    %c0_3 = arith.constant 0 : index
    %c0_4 = arith.constant 0 : index
    %c0_5 = arith.constant 0 : index
    %1 = vector.load %arg2[%c0_1, %c0_2, %c0_3, %c0_4, %c0_5] : memref<1x1x18x18x8xbf16, #tpu.memory_space<vmem>>, vector<1x1x16x16x8xbf16>
    %2 = vector.shape_cast %1 : vector<1x1x16x16x8xbf16> to vector<16x16x8xbf16>
    %3 = vector.shape_cast %2 : vector<16x16x8xbf16> to vector<256x8xbf16>
    %c0_6 = arith.constant 0 : index
    %c0_7 = arith.constant 0 : index
    %c0_8 = arith.constant 0 : index
    %c1 = arith.constant 1 : index
    %c0_9 = arith.constant 0 : index
    %4 = vector.load %arg2[%c0_6, %c0_7, %c0_8, %c1, %c0_9] : memref<1x1x18x18x8xbf16, #tpu.memory_space<vmem>>, vector<1x1x16x16x8xbf16>
    %5 = vector.shape_cast %4 : vector<1x1x16x16x8xbf16> to vector<16x16x8xbf16>
    %6 = vector.shape_cast %5 : vector<16x16x8xbf16> to vector<256x8xbf16>
    %c0_10 = arith.constant 0 : index
    %c0_11 = arith.constant 0 : index
    %c0_12 = arith.constant 0 : index
    %c2 = arith.constant 2 : index
    %c0_13 = arith.constant 0 : index
    %7 = vector.load %arg2[%c0_10, %c0_11, %c0_12, %c2, %c0_13] : memref<1x1x18x18x8xbf16, #tpu.memory_space<vmem>>, vector<1x1x16x16x8xbf16>
    %8 = vector.shape_cast %7 : vector<1x1x16x16x8xbf16> to vector<16x16x8xbf16>
    %9 = vector.shape_cast %8 : vector<16x16x8xbf16> to vector<256x8xbf16>
    %c0_14 = arith.constant 0 : index
    %c0_15 = arith.constant 0 : index
    %c1_16 = arith.constant 1 : index
    %c0_17 = arith.constant 0 : index
    %c0_18 = arith.constant 0 : index
    %10 = vector.load %arg2[%c0_14, %c0_15, %c1_16, %c0_17, %c0_18] : memref<1x1x18x18x8xbf16, #tpu.memory_space<vmem>>, vector<1x1x16x16x8xbf16>
    %11 = vector.shape_cast %10 : vector<1x1x16x16x8xbf16> to vector<16x16x8xbf16>
    %12 = vector.shape_cast %11 : vector<16x16x8xbf16> to vector<256x8xbf16>
    %c0_19 = arith.constant 0 : index
    %c0_20 = arith.constant 0 : index
    %c1_21 = arith.constant 1 : index
    %c1_22 = arith.constant 1 : index
    %c0_23 = arith.constant 0 : index
    %13 = vector.load %arg2[%c0_19, %c0_20, %c1_21, %c1_22, %c0_23] : memref<1x1x18x18x8xbf16, #tpu.memory_space<vmem>>, vector<1x1x16x16x8xbf16>
    %14 = vector.shape_cast %13 : vector<1x1x16x16x8xbf16> to vector<16x16x8xbf16>
    %15 = vector.shape_cast %14 : vector<16x16x8xbf16> to vector<256x8xbf16>
    %c0_24 = arith.constant 0 : index
    %c0_25 = arith.constant 0 : index
    %c1_26 = arith.constant 1 : index
    %c2_27 = arith.constant 2 : index
    %c0_28 = arith.constant 0 : index
    %16 = vector.load %arg2[%c0_24, %c0_25, %c1_26, %c2_27, %c0_28] : memref<1x1x18x18x8xbf16, #tpu.memory_space<vmem>>, vector<1x1x16x16x8xbf16>
    %17 = vector.shape_cast %16 : vector<1x1x16x16x8xbf16> to vector<16x16x8xbf16>
    %18 = vector.shape_cast %17 : vector<16x16x8xbf16> to vector<256x8xbf16>
    %c0_29 = arith.constant 0 : index
    %c0_30 = arith.constant 0 : index
    %c2_31 = arith.constant 2 : index
    %c0_32 = arith.constant 0 : index
    %c0_33 = arith.constant 0 : index
    %19 = vector.load %arg2[%c0_29, %c0_30, %c2_31, %c0_32, %c0_33] : memref<1x1x18x18x8xbf16, #tpu.memory_space<vmem>>, vector<1x1x16x16x8xbf16>
    %20 = vector.shape_cast %19 : vector<1x1x16x16x8xbf16> to vector<16x16x8xbf16>
    %21 = vector.shape_cast %20 : vector<16x16x8xbf16> to vector<256x8xbf16>
    %c0_34 = arith.constant 0 : index
    %c0_35 = arith.constant 0 : index
    %c2_36 = arith.constant 2 : index
    %c1_37 = arith.constant 1 : index
    %c0_38 = arith.constant 0 : index
    %22 = vector.load %arg2[%c0_34, %c0_35, %c2_36, %c1_37, %c0_38] : memref<1x1x18x18x8xbf16, #tpu.memory_space<vmem>>, vector<1x1x16x16x8xbf16>
    %23 = vector.shape_cast %22 : vector<1x1x16x16x8xbf16> to vector<16x16x8xbf16>
    %24 = vector.shape_cast %23 : vector<16x16x8xbf16> to vector<256x8xbf16>
    %c0_39 = arith.constant 0 : index
    %c0_40 = arith.constant 0 : index
    %c2_41 = arith.constant 2 : index
    %c2_42 = arith.constant 2 : index
    %c0_43 = arith.constant 0 : index
    %25 = vector.load %arg2[%c0_39, %c0_40, %c2_41, %c2_42, %c0_43] : memref<1x1x18x18x8xbf16, #tpu.memory_space<vmem>>, vector<1x1x16x16x8xbf16>
    %26 = vector.shape_cast %25 : vector<1x1x16x16x8xbf16> to vector<16x16x8xbf16>
    %27 = vector.shape_cast %26 : vector<16x16x8xbf16> to vector<256x8xbf16>
    %28 = tpu.concatenate %3, %6, %9, %12, %15, %18, %21, %24, %27 in 1 : vector<256x8xbf16>, vector<256x8xbf16>, vector<256x8xbf16>, vector<256x8xbf16>, vector<256x8xbf16>, vector<256x8xbf16>, vector<256x8xbf16>, vector<256x8xbf16>, vector<256x8xbf16> -> vector<256x72xbf16>
    %c0_44 = arith.constant 0 : index
    %c0_45 = arith.constant 0 : index
    %29 = vector.load %arg3[%c0_44, %c0_45] : memref<72x128xbf16, #tpu.memory_space<vmem>>, vector<72x128xbf16>
    %cst = arith.constant dense<0.000000e+00> : vector<256x128xf32>
    %30 = tpu.matmul %28, %29, %cst {dimension_numbers = #tpu.dot_dimension_numbers<[1], [0], [0], [1], [0, 0, 1, 1], [], []>} : vector<256x72xbf16>, vector<72x128xbf16>, vector<256x128xf32> -> vector<256x128xf32>
    %31 = vector.broadcast %0 : vector<1x128xf32> to vector<256x128xf32>
    %32 = arith.addf %30, %31 : vector<256x128xf32>
    %c0_46 = arith.constant 0 : index
    %c0_47 = arith.constant 0 : index
    %c0_48 = arith.constant 0 : index
    %c0_49 = arith.constant 0 : index
    %33 = vector.load %arg5[%c0_46, %c0_47, %c0_48, %c0_49] : memref<1x16x16x128xf32, #tpu.memory_space<vmem>>, vector<1x16x16x128xf32>
    %34 = vector.shape_cast %33 : vector<1x16x16x128xf32> to vector<16x16x128xf32>
    %35 = vector.shape_cast %34 : vector<16x16x128xf32> to vector<256x128xf32>
    %36 = arith.addf %32, %35 : vector<256x128xf32>
    %cst_50 = arith.constant 0.000000e+00 : f32
    %37 = vector.broadcast %cst_50 : f32 to vector<256x128xf32>
    %38 = arith.maximumf %36, %37 : vector<256x128xf32>
    %39 = vector.shape_cast %38 : vector<256x128xf32> to vector<16x16x128xf32>
    %c0_51 = arith.constant 0 : index
    %c0_52 = arith.constant 0 : index
    %c0_53 = arith.constant 0 : index
    %c0_54 = arith.constant 0 : index
    %40 = vector.load %arg6[%c0_51, %c0_52, %c0_53, %c0_54] : memref<1x16x16x128xf32, #tpu.memory_space<vmem>>, vector<1x16x16x128xf32>
    %41 = vector.shape_cast %40 : vector<1x16x16x128xf32> to vector<16x16x128xf32>
    %42 = vector.shape_cast %39 : vector<16x16x128xf32> to vector<1x16x16x128xf32>
    tpu.vector_store %arg6[%c0_51, %c0_52, %c0_53, %c0_54], %42 {strides = array<i32>} : memref<1x16x16x128xf32, #tpu.memory_space<vmem>>, vector<1x16x16x128xf32>,
    return
  }
  func.func @transform_0(%arg0: i32, %arg1: i32) -> (i32, i32, i32, i32, i32) {
    %c0_i32 = arith.constant 0 : i32
    %c0_i32_0 = arith.constant 0 : i32
    %c0_i32_1 = arith.constant 0 : i32
    %c0_i32_2 = arith.constant 0 : i32
    %c0_i32_3 = arith.constant 0 : i32
    return %arg0, %c0_i32, %c0_i32_0, %c0_i32_1, %c0_i32_2 : i32, i32, i32, i32, i32
  }
  func.func @transform_1(%arg0: i32, %arg1: i32) -> (i32, i32) {
    %c0_i32 = arith.constant 0 : i32
    %c0_i32_0 = arith.constant 0 : i32
    return %c0_i32, %arg1 : i32, i32
  }
  func.func @transform_2(%arg0: i32, %arg1: i32) -> (i32, i32) {
    %c0_i32 = arith.constant 0 : i32
    %c0_i32_0 = arith.constant 0 : i32
    return %c0_i32, %arg1 : i32, i32
  }
  func.func @transform_3(%arg0: i32, %arg1: i32) -> (i32, i32, i32, i32) {
    %c0_i32 = arith.constant 0 : i32
    %c0_i32_0 = arith.constant 0 : i32
    %c0_i32_1 = arith.constant 0 : i32
    return %arg0, %c0_i32, %c0_i32_0, %arg1 : i32, i32, i32, i32
  }
  func.func @transform_4(%arg0: i32, %arg1: i32) -> (i32, i32, i32, i32) {
    %c0_i32 = arith.constant 0 : i32
    %c0_i32_0 = arith.constant 0 : i32
    %c0_i32_1 = arith.constant 0 : i32
    return %arg0, %c0_i32, %c0_i32_0, %arg1 : i32, i32, i32, i32
  }
}

</mosaic_0001>

<bundles_post_ra>
// kernel: basic_block.2
= control target key start
LH: loop header
LB: loop body
LE: loop exit
PB: predicated region body
PF: predicated region fallthrough
CT: control target
= control target key end

     0   :  { %s4364_s12 = smov 0   ;;  %s4366_s13 = smov 0   ;;  %s6267_s0 = inlined_call_operand.vmem [shape: bf16[2,1,18,18,8], index: 0, kind: input, shape index: {}]   ;;  %s6268_s1 = inlined_call_operand.vmem [shape: bf16[72,128], index: 1, kind: input, shape index: {}]   ;;  %s6269_s2 = inlined_call_operand.vmem [shape: f32[1,128], index: 2, kind: input, shape index: {}]   ;;  %s6270_s3 = inlined_call_operand.vmem [shape: bf16[2,16,16,128], index: 3, kind: output, shape index: {}]  }
   0x1   :  { %s4368_s14 = smov 0  }
   0x2 LB: > { %s25_s15 = sadd.s32 1, %s4330_s13  ;;  %p3615_p0 = scmp.ge.s32.totalorder %s4334_s14, 1  ;;  %s4334_s14 = sphi %s4368_s14, %s13_s14   ;;  %s4330_s13 = sphi %s4366_s13, %s6276_s13   ;;  %s4326_s12 = sphi %s4364_s12, %s6275_s12  }
   0x3   : > { %p27_p1 = scmp.ge.s32.totalorder %s25_s15, 2  ;;  %p168_p2 = scmp.lt.s32.totalorder %s4334_s14, 3 }
   0x5   : > { %s6278_s15 = smov (%p27_p1, %s25_s15), 0  ;;  %p169_p3 = pnand %p3615_p0, %p168_p2 }
   0x6   : > { %p202_p4 = scmp.lt.s32.totalorder (!%p169_p3), %s4326_s12, 1  ;;  %vm723_vm0 = vcmask (!%p169_p3), 1042432   ;;  %vm724_vm1 = vcmask (!%p169_p3), 1046532   ;;  %s4336_s20 = smov (!%p169_p3), 24   ;;  %vm272_vm3 = vsmask.f32 (!%p169_p3), 3328 }
   0x7   : > { %172 = sbr.rel (%p169_p3) target bundleno = 679 (0x2a7), region = 32  ;;  %vm4419_vm2 = vmor (!%p169_p3), %vm723_vm0, %vm724_vm1  ;;  %vm273_vm4 = vsmask.f32 (!%p169_p3), 7440  ;;  %s4337_s21 = smov (!%p169_p3), 16   ;;  %vm2792_vm6 = vcmask (!%p169_p3), 64512   ;;  %vm2841_vm7 = vcmask (!%p169_p3), 130048  }
   0x8   : > { %vm4477_vm5 = vmor (!%p169_p3), %vm272_vm3, %vm273_vm4  ;;  %s4338_s22 = smov (!%p169_p3), 8   ;;  %s4339_s23 = smov (!%p169_p3), 32   ;;  %vm2874_vm8 = vcmask (!%p169_p3), 195584   ;;  %vm2907_vm9 = vcmask (!%p169_p3), 261120   ;;  %vm2940_vm10 = vcmask (!%p169_p3), 326656   ;;  %vm2973_vm11 = vcmask (!%p169_p3), 392192  }
   0x9   : > { %s4340_s24 = smov (!%p169_p3), 40   ;;  %s4341_s25 = smov (!%p169_p3), 48   ;;  %vm3006_vm12 = vcmask (!%p169_p3), 457728   ;;  %vm3039_vm13 = vcmask (!%p169_p3), 523264   ;;  %vm3114_vm14 = vcmask (!%p169_p3), 588800   ;;  %vm3147_vm15 = vcmask (!%p169_p3), 1043456  }
   0xa   : > { %s4342_s26 = smov (!%p169_p3), 56   ;;  %s4343_s27 = smov (!%p169_p3), 64  }
   0xe   : > { %s6280_s12 = smov (!%p202_p4, %s4326_s12), 1 }
   0xf   : > { %s4198_s16 = smul.u32 216, %s6280_s12  ;;  %s3995_s17 = sshll.u32 %s6280_s12, 7 }
  0x11   : > { %s4388_s19 = scalar_lea.vmem %s6267_s0, %s4198_s16 }
  0x12   : > { %v3651_v0 = vld [vmem:[%s4388_s19 + $0x6c] sm:$0xf]  ;;  %v4392_v1 = vld [vmem:[%s4388_s19 + $0x70] sm:$0xf]  ;;  %v4405_v12 = vld [vmem:[%s4388_s19 + $0x64] sm:$0xf] }
  0x13   : > { %v3635_v2 = vld [vmem:[%s4388_s19 + $0xc] sm:$0xf]  ;;  %v1089_v3 = vshll.u32 %v4392_v1, 16  ;;  %v1093_v4 = vshrl.u32 %v4392_v1, 16  ;;  %v3851_v5 = vcombine.low %v3651_v0, %v4392_v1  ;;  %v1080_v6 = vshrl.u32 %v3651_v0, 16 }
  0x14   : > { %v4399_v7 = vld [vmem:[%s4388_s19 + $0x10] sm:$0xf]  ;;  %v1083_v8 = vshll.u32 %v3651_v0, 16  ;;  %v888_v15 = vshrl.u32 %v3635_v2, 16  ;;  %v891_v16 = vshll.u32 %v3635_v2, 16  ;;  %v784_v22 = vrot.slane %v4405_v12, 5 }
  0x15   : > { %v897_v9 = vshll.u32 %v4399_v7, 16  ;;  %v901_v10 = vshrl.u32 %v4399_v7, 16  ;;  %v3843_v11 = vcombine.low %v3635_v2, %v4399_v7  ;;  %v4407_v13 = vrot.slane %v1093_v4, 4  ;;  %2360 = vrot.lane.b32.xlu1 %v3851_v5, %s4336_s20  ;;  %v4411_v17 = vld [vmem:[%s4388_s19 + $0x68] sm:$0x1] }
  0x16   : > { %v1082_v14 = vrot.slane %v1080_v6, 4  ;;  %v1085_v18 = vrot.slane %v1083_v8, 5  ;;  %v667_v20 = vld [vmem:[%s4388_s19 + $0x60] sm:$0xe]  ;;  %v787_v23 = vrot.slane %v4411_v17, 5  ;;  %v890_v24 = vrot.slane %v888_v15, 4 }
  0x17   : > { %v4413_v19 = vrot.slane %v901_v10, 4  ;;  %2344 = vrot.lane.b32.xlu0 %v3843_v11, %s4336_s20  ;;  %v893_v25 = vrot.slane %v891_v16, 5  ;;  %v3627_v26 = vrot.slane %v667_v20, 9  ;;  %v4426_v27 = vld [vmem:[%s4388_s19 + $0x4] sm:$0xf]  ;;  %v477_v28 = vshll.u32 %v4405_v12, 16 }
  0x18   : > { %v1086_v29 = vor.u32 %v1085_v18, %v1082_v14  ;;  %v786_v30 = vrot.slane %v784_v22, 4  ;;  %v4430_v31 = vld [vmem:[%s4388_s19 + $0x8] sm:$0x1]  ;;  %v659_v32 = vld [vmem:[%s4388_s19] sm:$0xe]  ;;  %v728_v33 = vrot.slane %v4426_v27, 5 }
  0x19   : > { %v894_v34 = vor.u32 %v893_v25, %v890_v24  ;;  %v785_v35 = vsel %vm4419_vm2, %v3627_v26, %v784_v22  ;;  %v3619_v36 = vrot.slane %v659_v32, 9  ;;  %v731_v37 = vrot.slane %v4430_v31, 5  ;;  %v4438_v38 = vld [vmem:[%s4388_s19 + $0x70] sm:$0xf]  ;;  %v4441_v39 = vld [vmem:[%s4388_s19 + $0x74] sm:$0x1] }
  0x1a   : > { %v4443_v40 = vrot.slane %v1086_v29, 4  ;;  %v788_v41 = vsel %vm4419_vm2, %v786_v30, %v787_v23  ;;  %v730_v42 = vrot.slane %v728_v33, 4  ;;  %v668_v43 = vld [vmem:[%s4388_s19 + $0x6c] sm:$0xe]  ;;  %v791_v44 = vrot.slane %v4438_v38, 5 }
  0x1b   : > { %v4449_v45 = vrot.slane %v894_v34, 4  ;;  %v3835_v46 = vcombine.low %v785_v35, %v788_v41  ;;  %v729_v47 = vsel %vm4419_vm2, %v3619_v36, %v728_v33  ;;  %v3628_v48 = vrot.slane %v668_v43, 9  ;;  %v227_v49 = vld [vmem:[%s4388_s19 + $0x10] sm:$0xf]  ;;  %v257_v50 = vld [vmem:[%s4388_s19 + $0x14] sm:$0x1] }
  0x1c   : > { %v732_v51 = vsel %vm4419_vm2, %v730_v42, %v731_v37  ;;  %v793_v52 = vrot.slane %v791_v44, 4  ;;  %v794_v53 = vrot.slane %v4441_v39, 5  ;;  %v660_v54 = vld [vmem:[%s4388_s19 + $0xc] sm:$0xe]  ;;  %v735_v55 = vrot.slane %v227_v49, 5 }
  0x1d   : > { %2264 = vrot.lane.b32.xlu1 %v3835_v46, %s4337_s21  ;;  %v3827_v56 = vcombine.low %v729_v47, %v732_v51  ;;  %v792_v57 = vsel %vm4419_vm2, %v3628_v48, %v791_v44  ;;  %v3620_v58 = vrot.slane %v660_v54, 9  ;;  %v738_v59 = vrot.slane %v257_v50, 5  ;;  %v226_v60 = vld [vmem:[%s4388_s19 + $0xc] sm:$0xf]  ;;  %v224_v2 = vld [vmem:[%s4388_s19] sm:$0xf] }
  0x1e   : > { %v795_v61 = vsel %vm4419_vm2, %v793_v52, %v794_v53  ;;  %v737_v62 = vrot.slane %v735_v55, 4  ;;  %v300_v63 = vshrl.u32 %v226_v60, 16  ;;  %v303_v0 = vshll.u32 %v226_v60, 16  ;;  %v242_v23 = vld [vmem:[%s4388_s19 + $0x6c] sm:$0xf] }
  0x1f   : > { %2248 = vrot.lane.b32.xlu0 %v3827_v56, %s4337_s21  ;;  %v3836_v4 = vcombine.low %v792_v57, %v795_v61  ;;  %v736_v5 = vsel %vm4419_vm2, %v3620_v58, %v735_v55  ;;  %v309_v6 = vshll.u32 %v227_v49, 16  ;;  %v313_v8 = vshrl.u32 %v227_v49, 16  ;;  %v240_v52 = vld [vmem:[%s4388_s19 + $0x60] sm:$0xf] }
  0x20   : > { %v739_v10 = vsel %vm4419_vm2, %v737_v62, %v738_v59  ;;  %v302_v11 = vrot.slane %v300_v63, 4  ;;  %v305_v14 = vrot.slane %v303_v0, 5  ;;  %v319_v15 = vshll.u32 %v257_v50, 16 }
  0x21   : > { %2266 = vrot.lane.b32.xlu1 %v3836_v4, %s4337_s21  ;;  %v3828_v16 = vcombine.low %v736_v5, %v739_v10  ;;  %v311_v18 = vrot.slane %v309_v6, 5  ;;  %v315_v20 = vrot.slane %v313_v8, 4  ;;  %v276_v22 = vshrl.u32 %v224_v2, 16  ;;  %v3653_v4 = vld [vmem:[%s4388_s19 + $0x78] sm:$0xf] }
  0x22   : > { %v306_v24 = vor.u32 %v305_v14, %v302_v11  ;;  %v321_v25 = vrot.slane %v319_v15, 5  ;;  %v279_v26 = vshll.u32 %v224_v2, 16  ;;  %v285_v29 = vshll.u32 %v4426_v27, 16  ;;  %v4500_v10 = vld [vmem:[%s4388_s19 + $0x7c] sm:$0xf] }
  0x23   : > { %2250 = vrot.lane.b32.xlu0 %v3828_v16, %s4337_s21  ;;  %v316_v32 = vor.u32 %v315_v20, %v311_v18  ;;  %v278_v33 = vrot.slane %v276_v22, 4  ;;  %v289_v34 = vshrl.u32 %v4426_v27, 16  ;;  %v295_v35 = vshll.u32 %v4430_v31, 16 }
  0x24   : > { %v307_v36 = vrot.slane %v306_v24, 4  ;;  %v281_v37 = vrot.slane %v279_v26, 5  ;;  %v287_v41 = vrot.slane %v285_v29, 5  ;;  %v492_v42 = vshrl.u32 %v242_v23, 16 }
  0x25   : > { %v317_v43 = vrot.slane %v316_v32, 4  ;;  %v291_v44 = vrot.slane %v289_v34, 4  ;;  %v297_v46 = vrot.slane %v295_v35, 5  ;;  %v495_v47 = vshll.u32 %v242_v23, 16  ;;  %v4507_v23 = vld [vmem:[%s4388_s19 + $0x18] sm:$0xf] }
  0x26   : > { %v312_v48 = vsel %vm4477_vm5, %v307_v36, %v311_v18  ;;  %v282_v49 = vor.u32 %v281_v37, %v278_v33  ;;  %v494_v50 = vrot.slane %v492_v42, 4  ;;  %v501_v51 = vshll.u32 %v4438_v38, 16  ;;  %v4518_v35 = vld [vmem:[%s4388_s19 + $0x74] sm:$0x1] }
  0x27   : > { %v322_v27 = vsel %vm4477_vm5, %v317_v43, %v321_v25  ;;  %v292_v31 = vor.u32 %v291_v44, %v287_v41  ;;  %v497_v53 = vrot.slane %v495_v47, 5  ;;  %v505_v54 = vshrl.u32 %v4438_v38, 16 }
  0x28   : > { %v3812_v55 = vcombine.low %v312_v48, %v322_v27  ;;  %v283_v56 = vrot.slane %v282_v49, 4  ;;  %v503_v57 = vrot.slane %v501_v51, 5  ;;  %v511_v58 = vshll.u32 %v4441_v39, 16  ;;  %v4528_v48 = vld [vmem:[%s4388_s19 + $0x14] sm:$0x1] }
  0x29   : > { %v293_v59 = vrot.slane %v292_v31, 4  ;;  %v498_v60 = vor.u32 %v497_v53, %v494_v50  ;;  %v507_v61 = vrot.slane %v505_v54, 4  ;;  %v468_v62 = vshrl.u32 %v240_v52, 16 }
  0x2a   : > { %2170 = vrot.lane.b32.xlu1 %v3812_v55, %s4338_s22  ;;  %v288_v63 = vsel %vm4477_vm5, %v283_v56, %v287_v41  ;;  %v513_v0 = vrot.slane %v511_v58, 5  ;;  %v471_v2 = vshll.u32 %v240_v52, 16  ;;  %v479_v38 = vrot.slane %v477_v28, 5 }
  0x2b   : > { %v298_v39 = vsel %vm4477_vm5, %v293_v59, %v297_v46  ;;  %v499_v5 = vrot.slane %v498_v60, 4  ;;  %v508_v6 = vor.u32 %v507_v61, %v503_v57  ;;  %v470_v8 = vrot.slane %v468_v62, 4 }
  0x2c   : > { %v3811_v11 = vcombine.low %v288_v63, %v298_v39  ;;  %v473_v14 = vrot.slane %v471_v2, 5  ;;  %v481_v15 = vshrl.u32 %v4405_v12, 16  ;;  %v487_v16 = vshll.u32 %v4411_v17, 16  ;;  %v4512_v12 = vld [vmem:[%s4388_s19 + $0x1c] sm:$0xf] }
  0x2d   : > { %v504_v28 = vsel %vm4477_vm5, %v499_v5, %v503_v57  ;;  %v509_v18 = vrot.slane %v508_v6, 4  ;;  %v1104_v20 = vshrl.u32 %v3653_v4, 16  ;;  %v1107_v22 = vshll.u32 %v3653_v4, 16  ;;  %v4544_v57 = vld [vmem:[%s4388_s19 + $0x80] sm:$0x1] }
  0x2e   : > { %2168 = vrot.lane.b32.xlu0 %v3811_v11, %s4338_s22  ;;  %v474_v24 = vor.u32 %v473_v14, %v470_v8  ;;  %v483_v25 = vrot.slane %v481_v15, 4  ;;  %v489_v26 = vrot.slane %v487_v16, 5  ;;  %v1117_v29 = vshrl.u32 %v4500_v10, 16  ;;  %v3691_v8 = vld [vmem:[%s4388_s19 + $0x6c] sm:$0xe] }
  0x2f   : > { %v514_v17 = vsel %vm4477_vm5, %v509_v18, %v513_v0  ;;  %v1106_v32 = vrot.slane %v1104_v20, 4  ;;  %v1109_v33 = vrot.slane %v1107_v22, 5  ;;  %v3852_v34 = vcombine.low %v3653_v4, %v4500_v10  ;;  %v4553_v0 = vld [vmem:[%s4388_s19 + $0x20] sm:$0x1] }
  0x30   : > { %v3820_v36 = vcombine.low %v504_v28, %v514_v17  ;;  %v475_v37 = vrot.slane %v474_v24, 4  ;;  %v484_v41 = vor.u32 %v483_v25, %v479_v38  ;;  %v912_v42 = vshrl.u32 %v4507_v23, 16  ;;  %v3683_v28 = vld [vmem:[%s4388_s19 + $0xc] sm:$0xe]  ;;  %v3692_v17 = vld [vmem:[%s4388_s19 + $0x78] sm:$0xe] }
  0x31   : > { %v915_v43 = vshll.u32 %v4507_v23, 16  ;;  %v925_v44 = vshrl.u32 %v4512_v12, 16  ;;  %v3844_v46 = vcombine.low %v4507_v23, %v4512_v12  ;;  %v1091_v47 = vrot.slane %v1089_v3, 5 }
  0x32   : > { %2186 = vrot.lane.b32.xlu1 %v3820_v36, %s4338_s22  ;;  %v480_v49 = vsel %vm4477_vm5, %v475_v37, %v479_v38  ;;  %v485_v50 = vrot.slane %v484_v41, 4  ;;  %v914_v51 = vrot.slane %v912_v42, 4  ;;  %v1099_v52 = vshll.u32 %v4518_v35, 16 }
  0x33   : > { %v917_v27 = vrot.slane %v915_v43, 5  ;;  %v1092_v31 = vsel %vm4477_vm5, %v4443_v40, %v1091_v47  ;;  %v1096_v53 = vor.u32 %v4407_v13, %v1091_v47  ;;  %v899_v3 = vrot.slane %v897_v9, 5  ;;  %v3684_v47 = vld [vmem:[%s4388_s19 + $0x18] sm:$0xe] }
  0x34   : > { %v490_v54 = vsel %vm4477_vm5, %v485_v50, %v489_v26  ;;  %v1101_v55 = vrot.slane %v1099_v52, 5  ;;  %v907_v56 = vshll.u32 %v4528_v48, 16  ;;  %v1110_v58 = vor.u32 %v1109_v33, %v1106_v32 }
  0x35   : > { %v3819_v59 = vcombine.low %v480_v49, %v490_v54  ;;  %v1097_v60 = vrot.slane %v1096_v53, 4  ;;  %v900_v40 = vsel %vm4477_vm5, %v4449_v45, %v899_v3  ;;  %v904_v13 = vor.u32 %v4413_v19, %v899_v3  ;;  %v4595_v53 = vld [vmem:[%s4388_s19 + $0x7c] sm:$0xf] }
  0x36   : > { %2362 = vrot.lane.b32.xlu1 %v3852_v34, %s4336_s20  ;;  %v909_v9 = vrot.slane %v907_v56, 5  ;;  %v1111_v61 = vrot.slane %v1110_v58, 4  ;;  %v1113_v62 = vshll.u32 %v4500_v10, 16  ;;  %v1119_v63 = vrot.slane %v1117_v29, 4  ;;  %v4602_v58 = vld [vmem:[%s4388_s19 + $0x18] sm:$0xf] }
  0x37   : > { %2184 = vrot.lane.b32.xlu0 %v3819_v59, %s4338_s22  ;;  %v1102_v2 = vsel %vm4477_vm5, %v1097_v60, %v1101_v55  ;;  %v905_v38 = vrot.slane %v904_v13, 4  ;;  %v1123_v45 = vshll.u32 %v4544_v57, 16  ;;  %v918_v19 = vor.u32 %v917_v27, %v914_v51  ;;  %v4588_v51 = vld [vmem:[%s4388_s19 + $0x78] sm:$0xf] }
  0x38   : > { %v3867_v4 = vcombine.low %v1092_v31, %v1102_v2  ;;  %v1115_v39 = vrot.slane %v1113_v62, 5  ;;  %v921_v5 = vshll.u32 %v4512_v12, 16  ;;  %v927_v6 = vrot.slane %v925_v44, 4 }
  0x39   : > { %v910_v11 = vsel %vm4477_vm5, %v905_v38, %v909_v9  ;;  %v1125_v14 = vrot.slane %v1123_v45, 5  ;;  %v919_v15 = vrot.slane %v918_v19, 4  ;;  %v931_v16 = vshll.u32 %v4553_v0, 16  ;;  %v4608_v9 = vld [vmem:[%s4388_s19 + $0x1c] sm:$0xf] }
  0x3a   : > { %2440 = vrot.lane.b32.xlu1 %v3867_v4, %s4339_s23  ;;  %v3859_v18 = vcombine.low %v900_v40, %v910_v11  ;;  %v1116_v20 = vsel %vm4477_vm5, %v1111_v61, %v1115_v39  ;;  %v1120_v22 = vor.u32 %v1119_v63, %v1115_v39  ;;  %v923_v23 = vrot.slane %v921_v5, 5  ;;  %v4623_v19 = vld [vmem:[%s4388_s19 + $0x88] sm:$0xf] }
  0x3b   : > { %2346 = vrot.lane.b32.xlu0 %v3844_v46, %s4336_s20  ;;  %v933_v24 = vrot.slane %v931_v16, 5  ;;  %v3707_v25 = vrot.slane %v3691_v8, 9  ;;  %v1393_v26 = vrot.slane %v4392_v1, 5  ;;  %v1396_v29 = vrot.slane %v4518_v35, 5  ;;  %v4630_v8 = vld [vmem:[%s4388_s19 + $0x24] sm:$0xf] }
  0x3c   : > { %v1121_v32 = vrot.slane %v1120_v22, 4  ;;  %v924_v33 = vsel %vm4477_vm5, %v919_v15, %v923_v23  ;;  %v928_v34 = vor.u32 %v927_v6, %v923_v23  ;;  %v3699_v36 = vrot.slane %v3683_v28, 9  ;;  %v4639_v28 = vld [vmem:[%s4388_s19 + $0x28] sm:$0xf] }
  0x3d   : > { %v1394_v37 = vsel %vm4419_vm2, %v3707_v25, %v1393_v26  ;;  %v1395_v41 = vrot.slane %v1393_v26, 4  ;;  %v1337_v42 = vrot.slane %v4399_v7, 5  ;;  %v1340_v43 = vrot.slane %v4528_v48, 5 }
  0x3e   : > { %v1126_v1 = vsel %vm4477_vm5, %v1121_v32, %v1125_v14  ;;  %v929_v35 = vrot.slane %v928_v34, 4  ;;  %v3708_v44 = vrot.slane %v3692_v17, 9  ;;  %v1400_v46 = vrot.slane %v4500_v10, 5 }
  0x3f   : > { %2424 = vrot.lane.b32.xlu0 %v3859_v18, %s4339_s23  ;;  %v3868_v49 = vcombine.low %v1116_v20, %v1126_v1  ;;  %v1397_v50 = vsel %vm4419_vm2, %v1395_v41, %v1396_v29  ;;  %v1338_v7 = vsel %vm4419_vm2, %v3699_v36, %v1337_v42  ;;  %v1339_v48 = vrot.slane %v1337_v42, 4 }
  0x40   : > { %v934_v52 = vsel %vm4477_vm5, %v929_v35, %v933_v24  ;;  %v3883_v27 = vcombine.low %v1394_v37, %v1397_v50  ;;  %v1401_v10 = vsel %vm4419_vm2, %v3708_v44, %v1400_v46  ;;  %v1402_v31 = vrot.slane %v1400_v46, 4  ;;  %v4644_v24 = vld [vmem:[%s4388_s19 + $0x80] sm:$0x1] }
  0x41   : > { %2442 = vrot.lane.b32.xlu1 %v3868_v49, %s4339_s23  ;;  %v3860_v3 = vcombine.low %v924_v33, %v934_v52  ;;  %v1341_v54 = vsel %vm4419_vm2, %v1339_v48, %v1340_v43  ;;  %v1403_v55 = vrot.slane %v4544_v57, 5  ;;  %v3700_v56 = vrot.slane %v3684_v47, 9  ;;  %v4655_v37 = vld [vmem:[%s4388_s19 + $0x20] sm:$0x1] }
  0x42   : > { %v3875_v59 = vcombine.low %v1338_v7, %v1341_v54  ;;  %v1344_v60 = vrot.slane %v4512_v12, 5  ;;  %v1347_v40 = vrot.slane %v4553_v0, 5  ;;  %v1689_v13 = vshrl.u32 %v4588_v51, 16  ;;  %v4618_v12 = vld [vmem:[%s4388_s19 + $0x84] sm:$0xf] }
  0x43   : > { %2426 = vrot.lane.b32.xlu0 %v3860_v3, %s4339_s23  ;;  %v1404_v61 = vsel %vm4419_vm2, %v1402_v31, %v1403_v55  ;;  %v1692_v57 = vshll.u32 %v4588_v51, 16  ;;  %v1702_v62 = vshrl.u32 %v4595_v53, 16  ;;  %v3899_v63 = vcombine.low %v4588_v51, %v4595_v53 }
  0x44   : > { %v3884_v0 = vcombine.low %v1401_v10, %v1404_v61  ;;  %v1345_v2 = vsel %vm4419_vm2, %v3700_v56, %v1344_v60  ;;  %v1346_v38 = vrot.slane %v1344_v60, 4  ;;  %v1691_v45 = vrot.slane %v1689_v13, 4 }
  0x45   : > { %2520 = vrot.lane.b32.xlu1 %v3883_v27, %s4340_s24  ;;  %v1694_v4 = vrot.slane %v1692_v57, 5  ;;  %v1497_v39 = vshrl.u32 %v4602_v58, 16  ;;  %v1500_v5 = vshll.u32 %v4602_v58, 16  ;;  %v1510_v6 = vshrl.u32 %v4608_v9, 16  ;;  %v4664_v27 = vld [vmem:[%s4388_s19 + $0x8c] sm:$0x1] }
  0x46   : > { %v1348_v11 = vsel %vm4419_vm2, %v1346_v38, %v1347_v40  ;;  %v3891_v14 = vcombine.low %v4602_v58, %v4608_v9  ;;  %v1713_v15 = vshrl.u32 %v4618_v12, 16  ;;  %v1716_v16 = vshll.u32 %v4618_v12, 16  ;;  %v4674_v57 = vld [vmem:[%s4388_s19 + $0x2c] sm:$0x1] }
  0x47   : > { %2504 = vrot.lane.b32.xlu0 %v3875_v59, %s4340_s24  ;;  %v3876_v18 = vcombine.low %v1345_v2, %v1348_v11  ;;  %v1499_v20 = vrot.slane %v1497_v39, 4  ;;  %v1502_v22 = vrot.slane %v1500_v5, 5  ;;  %v1726_v23 = vshrl.u32 %v4623_v19, 16 }
  0x48   : > { %v1715_v25 = vrot.slane %v1713_v15, 4  ;;  %v1718_v26 = vrot.slane %v1716_v16, 5  ;;  %v3900_v29 = vcombine.low %v4618_v12, %v4623_v19  ;;  %v1521_v17 = vshrl.u32 %v4630_v8, 16  ;;  %v3763_v16 = vld [vmem:[%s4388_s19 + $0x18] sm:$0xe] }
  0x49   : > { %2522 = vrot.lane.b32.xlu1 %v3884_v0, %s4340_s24  ;;  %v1524_v32 = vshll.u32 %v4630_v8, 16  ;;  %v1534_v33 = vshrl.u32 %v4639_v28, 16  ;;  %v3892_v34 = vcombine.low %v4630_v8, %v4639_v28  ;;  %v1695_v36 = vor.u32 %v1694_v4, %v1691_v45  ;;  %v3771_v45 = vld [vmem:[%s4388_s19 + $0x78] sm:$0xe] }
  0x4a   : > { %v1523_v41 = vrot.slane %v1521_v17, 4  ;;  %v1698_v42 = vshll.u32 %v4595_v53, 16  ;;  %v1704_v43 = vrot.slane %v1702_v62, 4  ;;  %v1708_v1 = vshll.u32 %v4644_v24, 16 }
  0x4b   : > { %2506 = vrot.lane.b32.xlu0 %v3876_v18, %s4340_s24  ;;  %v1526_v35 = vrot.slane %v1524_v32, 5  ;;  %v1696_v44 = vrot.slane %v1695_v36, 4  ;;  %v1503_v46 = vor.u32 %v1502_v22, %v1499_v20  ;;  %v1506_v47 = vshll.u32 %v4608_v9, 16 }
  0x4c   : > { %v1700_v49 = vrot.slane %v1698_v42, 5  ;;  %v1710_v50 = vrot.slane %v1708_v1, 5  ;;  %v1512_v7 = vrot.slane %v1510_v6, 4  ;;  %v1516_v48 = vshll.u32 %v4655_v37, 16  ;;  %v4698_v42 = vld [vmem:[%s4388_s19 + $0x7c] sm:$0xf] }
  0x4d   : > { %2616 = vrot.lane.b32.xlu1 %v3899_v63, %s4341_s25  ;;  %v1504_v51 = vrot.slane %v1503_v46, 4  ;;  %v1508_v52 = vrot.slane %v1506_v47, 5  ;;  %v1719_v10 = vor.u32 %v1718_v26, %v1715_v25  ;;  %v1722_v31 = vshll.u32 %v4623_v19, 16  ;;  %v244_v25 = vld [vmem:[%s4388_s19 + $0x78] sm:$0xf] }
  0x4e   : > { %v1701_v3 = vsel %vm4477_vm5, %v1696_v44, %v1700_v49  ;;  %v1705_v54 = vor.u32 %v1704_v43, %v1700_v49  ;;  %v1518_v55 = vrot.slane %v1516_v48, 5  ;;  %v1728_v56 = vrot.slane %v1726_v23, 4  ;;  %v4709_v46 = vld [vmem:[%s4388_s19 + $0x80] sm:$0x1]  ;;  %v228_v49 = vld [vmem:[%s4388_s19 + $0x18] sm:$0xf] }
  0x4f   : > { %2600 = vrot.lane.b32.xlu0 %v3891_v14, %s4341_s25  ;;  %v1509_v58 = vsel %vm4477_vm5, %v1504_v51, %v1508_v52  ;;  %v1513_v59 = vor.u32 %v1512_v7, %v1508_v52  ;;  %v1720_v60 = vrot.slane %v1719_v10, 4  ;;  %v1724_v40 = vrot.slane %v1722_v31, 5  ;;  %v4717_v51 = vld [vmem:[%s4388_s19 + $0x1c] sm:$0xf] }
  0x50   : > { %v1706_v13 = vrot.slane %v1705_v54, 4  ;;  %v1732_v61 = vshll.u32 %v4664_v27, 16  ;;  %v1527_v62 = vor.u32 %v1526_v35, %v1523_v41  ;;  %v1530_v63 = vshll.u32 %v4639_v28, 16  ;;  %v4723_v54 = vld [vmem:[%s4388_s19 + $0x20] sm:$0x1] }
  0x51   : > { %2618 = vrot.lane.b32.xlu1 %v3900_v29, %s4341_s25  ;;  %v1514_v12 = vrot.slane %v1513_v59, 4  ;;  %v1725_v0 = vsel %vm4477_vm5, %v1720_v60, %v1724_v40  ;;  %v1729_v2 = vor.u32 %v1728_v56, %v1724_v40  ;;  %v1536_v38 = vrot.slane %v1534_v33, 4 }
  0x52   : > { %v1711_v4 = vsel %vm4477_vm5, %v1706_v13, %v1710_v50  ;;  %v1734_v39 = vrot.slane %v1732_v61, 5  ;;  %v1528_v5 = vrot.slane %v1527_v62, 4  ;;  %v1532_v6 = vrot.slane %v1530_v63, 5  ;;  %v3772_v62 = vld [vmem:[%s4388_s19 + $0x84] sm:$0xe] }
  0x53   : > { %2602 = vrot.lane.b32.xlu0 %v3892_v34, %s4341_s25  ;;  %v3915_v8 = vcombine.low %v1701_v3, %v1711_v4  ;;  %v1519_v11 = vsel %vm4477_vm5, %v1514_v12, %v1518_v55  ;;  %v1730_v14 = vrot.slane %v1729_v2, 4  ;;  %v1540_v15 = vshll.u32 %v4674_v57, 16 }
  0x54   : > { %v3907_v18 = vcombine.low %v1509_v58, %v1519_v11  ;;  %v1533_v20 = vsel %vm4477_vm5, %v1528_v5, %v1532_v6  ;;  %v1537_v22 = vor.u32 %v1536_v38, %v1532_v6  ;;  %v3787_v23 = vrot.slane %v3771_v45, 9  ;;  %v3764_v5 = vld [vmem:[%s4388_s19 + $0x24] sm:$0xe] }
  0x55   : > { %2696 = vrot.lane.b32.xlu1 %v3915_v8, %s4342_s26  ;;  %v1735_v26 = vsel %vm4477_vm5, %v1730_v14, %v1734_v39  ;;  %v1542_v29 = vrot.slane %v1540_v15, 5  ;;  %v2002_v17 = vrot.slane %v4595_v53, 5  ;;  %v2005_v32 = vrot.slane %v4644_v24, 5  ;;  %v4255_v6 = vld [vmem:[%s6268_s1] sm:$0xff]  }
  0x56   : > { %v3916_v33 = vcombine.low %v1725_v0, %v1735_v26  ;;  %v1538_v34 = vrot.slane %v1537_v22, 4  ;;  %v3779_v36 = vrot.slane %v3763_v16, 9  ;;  %v1946_v41 = vrot.slane %v4608_v9, 5  ;;  %4144 = vmatprep.subr.bf16.mxu0 %v4255_v6  ;;  %4186 = vmatprep.subr.bf16.mxu1 %v4255_v6 }
  0x57   : > { %2680 = vrot.lane.b32.xlu0 %v3907_v18, %s4342_s26  ;;  %v2003_v43 = vsel %vm4419_vm2, %v3787_v23, %v2002_v17  ;;  %v2004_v1 = vrot.slane %v2002_v17, 4  ;;  %v1949_v35 = vrot.slane %v4655_v37, 5  ;;  %v516_v53 = vshrl.u32 %v244_v25, 16  ;;  %v246_v23 = vld [vmem:[%s4388_s19 + $0x84] sm:$0xf]  ;;  %4145 = vmatpush3.bf16.msra.mxu0 %v4255_v6 }
  0x58   : > { %v1543_v24 = vsel %vm4477_vm5, %v1538_v34, %v1542_v29  ;;  %v1947_v44 = vsel %vm4419_vm2, %v3779_v36, %v1946_v41  ;;  %v1948_v9 = vrot.slane %v1946_v41, 4  ;;  %v519_v47 = vshll.u32 %v244_v25, 16  ;;  %4191 = vmatpush3.bf16.msra.mxu1 %v4255_v6  ;;  %v4749_v34 = vld [vmem:[%s4388_s19 + $0x88] sm:$0xf] }
  0x59   : > { %2698 = vrot.lane.b32.xlu1 %v3916_v33, %s4342_s26  ;;  %v3908_v50 = vcombine.low %v1533_v20, %v1543_v24  ;;  %v2006_v7 = vsel %vm4419_vm2, %v2004_v1, %v2005_v32  ;;  %v518_v37 = vrot.slane %v516_v53, 4  ;;  %v525_v48 = vshll.u32 %v4698_v42, 16  ;;  %v4256_v36 = vld [vmem:[%s6268_s1 + $0x8] sm:$0xff]  }
  0x5a   : > { %v3931_v52 = vcombine.low %v2003_v43, %v2006_v7  ;;  %v1950_v10 = vsel %vm4419_vm2, %v1948_v9, %v1949_v35  ;;  %v521_v31 = vrot.slane %v519_v47, 5  ;;  %v529_v3 = vshrl.u32 %v4698_v42, 16  ;;  %v4757_v35 = vld [vmem:[%s4388_s19 + $0x8c] sm:$0x1]  ;;  %v230_v9 = vld [vmem:[%s4388_s19 + $0x24] sm:$0xf]  ;;  %4146 = vmatprep.subr.bf16.mxu0 %v4256_v36  ;;  %4187 = vmatprep.subr.bf16.mxu1 %v4256_v36 }
  0x5b   : > { %2682 = vrot.lane.b32.xlu0 %v3908_v50, %s4342_s26  ;;  %v3923_v55 = vcombine.low %v1947_v44, %v1950_v10  ;;  %v527_v56 = vrot.slane %v525_v48, 5  ;;  %v535_v58 = vshll.u32 %v4709_v46, 16  ;;  %v324_v59 = vshrl.u32 %v228_v49, 16  ;;  %4147 = vmatpush3.bf16.msra.mxu0 %v4256_v36 }
  0x5c   : > { %v522_v60 = vor.u32 %v521_v31, %v518_v37  ;;  %v531_v40 = vrot.slane %v529_v3, 4  ;;  %v327_v13 = vshll.u32 %v228_v49, 16  ;;  %v333_v61 = vshll.u32 %v4717_v51, 16  ;;  %v4769_v37 = vld [vmem:[%s4388_s19 + $0x28] sm:$0xf]  ;;  %4192 = vmatpush3.bf16.msra.mxu1 %v4256_v36 }
  0x5d   : > { %2776 = vrot.lane.b32.xlu1 %v3931_v52, %s4343_s27  ;;  %v537_v63 = vrot.slane %v535_v58, 5  ;;  %v326_v12 = vrot.slane %v324_v59, 4  ;;  %v337_v0 = vshrl.u32 %v4717_v51, 16  ;;  %v343_v2 = vshll.u32 %v4723_v54, 16  ;;  %v4776_v3 = vld [vmem:[%s4388_s19 + $0x2c] sm:$0x1] }
  0x5e   : > { %v523_v38 = vrot.slane %v522_v60, 4  ;;  %v532_v45 = vor.u32 %v531_v40, %v527_v56  ;;  %v329_v4 = vrot.slane %v327_v13, 5  ;;  %v335_v39 = vrot.slane %v333_v61, 5  ;;  %v669_v60 = vld [vmem:[%s4388_s19 + $0x78] sm:$0xe]  ;;  %v4257_v40 = vld [vmem:[%s6268_s1 + $0x10] sm:$0xff]  }
  0x5f   : > { %2760 = vrot.lane.b32.xlu0 %v3923_v55, %s4343_s27  ;;  %v339_v8 = vrot.slane %v337_v0, 4  ;;  %v345_v11 = vrot.slane %v343_v2, 5  ;;  %v3788_v14 = vrot.slane %v3772_v62, 9  ;;  %v2009_v15 = vrot.slane %v4623_v19, 5  ;;  %4148 = vmatprep.subr.bf16.mxu0 %v4257_v40 }
  0x60   : > { %v528_v16 = vsel %vm4477_vm5, %v523_v38, %v527_v56  ;;  %v533_v18 = vrot.slane %v532_v45, 4  ;;  %v330_v20 = vor.u32 %v329_v4, %v326_v12  ;;  %v2012_v22 = vrot.slane %v4664_v27, 5  ;;  %v661_v45 = vld [vmem:[%s4388_s19 + $0x18] sm:$0xe]  ;;  %4188 = vmatprep.subr.bf16.mxu1 %v4257_v40  ;;  %4149 = vmatpush3.bf16.msra.mxu0 %v4257_v40 }
  0x61   : > { %v340_v25 = vor.u32 %v339_v8, %v335_v39  ;;  %v2010_v26 = vsel %vm4419_vm2, %v3788_v14, %v2009_v15  ;;  %v2011_v29 = vrot.slane %v2009_v15, 4  ;;  %v3780_v17 = vrot.slane %v3764_v5, 9  ;;  %v4260_v8 = vld [vmem:[%s6268_s1 + $0x18] sm:$0xff]   ;;  %4193 = vmatpush3.bf16.msra.mxu1 %v4257_v40 }
  0x62   : > { %v538_v19 = vsel %vm4477_vm5, %v533_v18, %v537_v63  ;;  %v331_v32 = vrot.slane %v330_v20, 4  ;;  %v1953_v33 = vrot.slane %v4639_v28, 5  ;;  %v1956_v27 = vrot.slane %v4674_v57, 5  ;;  %4150 = vmatprep.subr.bf16.mxu0 %v4260_v8  ;;  %4189 = vmatprep.subr.bf16.mxu1 %v4260_v8 }
  0x63   : > { %v3821_v41 = vcombine.low %v528_v16, %v538_v19  ;;  %v341_v43 = vrot.slane %v340_v25, 4  ;;  %v2013_v1 = vsel %vm4419_vm2, %v2011_v29, %v2012_v22  ;;  %v540_v53 = vshrl.u32 %v246_v23, 16  ;;  %v670_v25 = vld [vmem:[%s4388_s19 + $0x84] sm:$0xe] }
  0x64   : > { %v336_v28 = vsel %vm4477_vm5, %v331_v32, %v335_v39  ;;  %v3932_v24 = vcombine.low %v2010_v26, %v2013_v1  ;;  %v1954_v57 = vsel %vm4419_vm2, %v3780_v17, %v1953_v33  ;;  %v1955_v44 = vrot.slane %v1953_v33, 4  ;;  %4151 = vmatpush3.bf16.msra.mxu0 %v4260_v8 }
  0x65   : > { %2188 = vrot.lane.b32.xlu1 %v3821_v41, %s4338_s22  ;;  %v346_v47 = vsel %vm4477_vm5, %v341_v43, %v345_v11  ;;  %v542_v49 = vrot.slane %v540_v53, 4  ;;  %v543_v50 = vshll.u32 %v246_v23, 16  ;;  %v549_v7 = vshll.u32 %v4749_v34, 16  ;;  %4194 = vmatpush3.bf16.msra.mxu1 %v4260_v8 }
  0x66   : > { %v3813_v48 = vcombine.low %v336_v28, %v346_v47  ;;  %v1957_v52 = vsel %vm4419_vm2, %v1955_v44, %v1956_v27  ;;  %v553_v10 = vshrl.u32 %v4749_v34, 16  ;;  %v559_v31 = vshll.u32 %v4757_v35, 16  ;;  %v662_v27 = vld [vmem:[%s4388_s19 + $0x24] sm:$0xe] }
  0x67   : > { %v3924_v55 = vcombine.low %v1954_v57, %v1957_v52  ;;  %v545_v56 = vrot.slane %v543_v50, 5  ;;  %v551_v58 = vrot.slane %v549_v7, 5  ;;  %v348_v59 = vshrl.u32 %v230_v9, 16 }
  0x68   : > { %2172 = vrot.lane.b32.xlu0 %v3813_v48, %s4338_s22  ;;  %v555_v13 = vrot.slane %v553_v10, 4  ;;  %v561_v61 = vrot.slane %v559_v31, 5  ;;  %v351_v62 = vshll.u32 %v230_v9, 16  ;;  %v357_v63 = vshll.u32 %v4769_v37, 16  ;;  %v4826_v10 = vld [vmem:[%s4388_s19 + $0x24] sm:$0xf] }
  0x69   : > { %2778 = vrot.lane.b32.xlu1 %v3932_v24, %s4343_s27  ;;  %v546_v12 = vor.u32 %v545_v56, %v542_v49  ;;  %v350_v0 = vrot.slane %v348_v59, 4  ;;  %v361_v2 = vshrl.u32 %v4769_v37, 16  ;;  %v367_v38 = vshll.u32 %v4776_v3, 16  ;;  %v4819_v49 = vld [vmem:[%s4388_s19 + $0x88] sm:$0xf] }
  0x6a   : > { %v556_v4 = vor.u32 %v555_v13, %v551_v58  ;;  %v353_v39 = vrot.slane %v351_v62, 5  ;;  %v359_v5 = vrot.slane %v357_v63, 5  ;;  %v3629_v6 = vrot.slane %v669_v60, 9  ;;  %v4837_v59 = vld [vmem:[%s4388_s19 + $0x28] sm:$0xf] }
  0x6b   : > { %v547_v11 = vrot.slane %v546_v12, 4  ;;  %v363_v14 = vrot.slane %v361_v2, 4  ;;  %v369_v15 = vrot.slane %v367_v38, 5  ;;  %v798_v16 = vrot.slane %v4698_v42, 5  ;;  %v3657_v62 = vld [vmem:[%s4388_s19 + $0x90] sm:$0xf] }
  0x6c   : > { %2762 = vrot.lane.b32.xlu0 %v3924_v55, %s4343_s27  ;;  %v557_v18 = vrot.slane %v556_v4, 4  ;;  %v354_v20 = vor.u32 %v353_v39, %v350_v0  ;;  %v801_v22 = vrot.slane %v4709_v46, 5  ;;  %v3621_v23 = vrot.slane %v661_v45, 9  ;;  %v4847_v63 = vld [vmem:[%s4388_s19 + $0x94] sm:$0xf] }
  0x6d   : > { %v552_v26 = vsel %vm4477_vm5, %v547_v11, %v551_v58  ;;  %v364_v29 = vor.u32 %v363_v14, %v359_v5  ;;  %v799_v17 = vsel %vm4419_vm2, %v3629_v6, %v798_v16  ;;  %v800_v19 = vrot.slane %v798_v16, 4  ;;  %v4853_v45 = vld [vmem:[%s4388_s19 + $0x30] sm:$0xf]  ;;  %v4856_v4 = vld [vmem:[%s4388_s19 + $0x34] sm:$0xf] }
  0x6e   : > { %v562_v42 = vsel %vm4477_vm5, %v557_v18, %v561_v61  ;;  %v355_v32 = vrot.slane %v354_v20, 4  ;;  %v742_v33 = vrot.slane %v4717_v51, 5  ;;  %v745_v46 = vrot.slane %v4723_v54, 5  ;;  %v4811_v54 = vld [vmem:[%s4388_s19 + $0x84] sm:$0xf] }
  0x6f   : > { %v3822_v36 = vcombine.low %v552_v26, %v562_v42  ;;  %v365_v41 = vrot.slane %v364_v29, 4  ;;  %v802_v43 = vsel %vm4419_vm2, %v800_v19, %v801_v22  ;;  %v3630_v1 = vrot.slane %v670_v25, 9  ;;  %v4869_v25 = vld [vmem:[%s4388_s19 + $0x8c] sm:$0x1] }
  0x70   : > { %v360_v53 = vsel %vm4477_vm5, %v355_v32, %v359_v5  ;;  %v3837_v28 = vcombine.low %v799_v17, %v802_v43  ;;  %v743_v51 = vsel %vm4419_vm2, %v3621_v23, %v742_v33  ;;  %v744_v24 = vrot.slane %v742_v33, 4  ;;  %v4874_v42 = vld [vmem:[%s4388_s19 + $0x2c] sm:$0x1] }
  0x71   : > { %2190 = vrot.lane.b32.xlu1 %v3822_v36, %s4338_s22  ;;  %v370_v57 = vsel %vm4477_vm5, %v365_v41, %v369_v15  ;;  %v805_v44 = vrot.slane %v4749_v34, 5  ;;  %v808_v9 = vrot.slane %v4757_v35, 5  ;;  %v3622_v47 = vrot.slane %v662_v27, 9 }
  0x72   : > { %v3814_v50 = vcombine.low %v360_v53, %v370_v57  ;;  %v746_v7 = vsel %vm4419_vm2, %v744_v24, %v745_v46  ;;  %v749_v48 = vrot.slane %v4769_v37, 5  ;;  %v752_v52 = vrot.slane %v4776_v3, 5 }
  0x73   : > { %v3829_v31 = vcombine.low %v743_v51, %v746_v7  ;;  %v806_v34 = vsel %vm4419_vm2, %v3630_v1, %v805_v44  ;;  %v807_v35 = vrot.slane %v805_v44, 4  ;;  %v1128_v55 = vshrl.u32 %v4811_v54, 16 }
  0x74   : > { %2174 = vrot.lane.b32.xlu0 %v3814_v50, %s4338_s22  ;;  %v750_v56 = vsel %vm4419_vm2, %v3622_v47, %v749_v48  ;;  %v751_v37 = vrot.slane %v749_v48, 4  ;;  %v1131_v3 = vshll.u32 %v4811_v54, 16  ;;  %v1141_v58 = vshrl.u32 %v4819_v49, 16 }
  0x75   : > { %2268 = vrot.lane.b32.xlu1 %v3837_v28, %s4337_s21  ;;  %v809_v60 = vsel %vm4419_vm2, %v807_v35, %v808_v9  ;;  %v1130_v40 = vrot.slane %v1128_v55, 4  ;;  %v3853_v13 = vcombine.low %v4811_v54, %v4819_v49  ;;  %v936_v61 = vshrl.u32 %v4826_v10, 16  ;;  %v4883_v9 = vld [vmem:[%s4388_s19 + $0x98] sm:$0x1] }
  0x76   : > { %v3838_v12 = vcombine.low %v806_v34, %v809_v60  ;;  %v753_v0 = vsel %vm4419_vm2, %v751_v37, %v752_v52  ;;  %v1133_v2 = vrot.slane %v1131_v3, 5  ;;  %v939_v38 = vshll.u32 %v4826_v10, 16  ;;  %v4894_v37 = vld [vmem:[%s4388_s19 + $0x38] sm:$0x1] }
  0x77   : > { %v3830_v39 = vcombine.low %v750_v56, %v753_v0  ;;  %v938_v5 = vrot.slane %v936_v61, 4  ;;  %v949_v6 = vshrl.u32 %v4837_v59, 16  ;;  %v3845_v8 = vcombine.low %v4826_v10, %v4837_v59 }
  0x78   : > { %2252 = vrot.lane.b32.xlu0 %v3829_v31, %s4337_s21  ;;  %v941_v11 = vrot.slane %v939_v38, 5  ;;  %v1152_v14 = vshrl.u32 %v3657_v62, 16  ;;  %v1155_v15 = vshll.u32 %v3657_v62, 16  ;;  %v1165_v16 = vshrl.u32 %v4847_v63, 16 }
  0x79   : > { %2270 = vrot.lane.b32.xlu1 %v3838_v12, %s4337_s21  ;;  %v3854_v18 = vcombine.low %v3657_v62, %v4847_v63  ;;  %v960_v20 = vshrl.u32 %v4853_v45, 16  ;;  %v963_v22 = vshll.u32 %v4853_v45, 16  ;;  %v973_v23 = vshrl.u32 %v4856_v4, 16  ;;  %v3693_v62 = vld [vmem:[%s4388_s19 + $0x84] sm:$0xe] }
  0x7a   : > { %v1154_v26 = vrot.slane %v1152_v14, 4  ;;  %v1157_v29 = vrot.slane %v1155_v15, 5  ;;  %v3846_v17 = vcombine.low %v4853_v45, %v4856_v4  ;;  %v1134_v19 = vor.u32 %v1133_v2, %v1130_v40 }
  0x7b   : > { %v962_v32 = vrot.slane %v960_v20, 4  ;;  %v965_v33 = vrot.slane %v963_v22, 5  ;;  %v1137_v46 = vshll.u32 %v4819_v49, 16  ;;  %v1143_v27 = vrot.slane %v1141_v58, 4 }
  0x7c   : > { %2254 = vrot.lane.b32.xlu0 %v3830_v39, %s4337_s21  ;;  %v1135_v36 = vrot.slane %v1134_v19, 4  ;;  %v1147_v41 = vshll.u32 %v4869_v25, 16  ;;  %v942_v43 = vor.u32 %v941_v11, %v938_v5  ;;  %v945_v1 = vshll.u32 %v4837_v59, 16 }
  0x7d   : > { %2364 = vrot.lane.b32.xlu1 %v3853_v13, %s4336_s20  ;;  %v1139_v53 = vrot.slane %v1137_v46, 5  ;;  %v951_v28 = vrot.slane %v949_v6, 4  ;;  %v955_v51 = vshll.u32 %v4874_v42, 16  ;;  %v1158_v24 = vor.u32 %v1157_v29, %v1154_v26 }
  0x7e   : > { %v1149_v54 = vrot.slane %v1147_v41, 5  ;;  %v943_v57 = vrot.slane %v942_v43, 4  ;;  %v947_v44 = vrot.slane %v945_v1, 5  ;;  %v1161_v47 = vshll.u32 %v4847_v63, 16  ;;  %v4927_v1 = vld [vmem:[%s4388_s19 + $0x90] sm:$0xf] }
  0x7f   : > { %v1140_v50 = vsel %vm4477_vm5, %v1135_v36, %v1139_v53  ;;  %v1144_v7 = vor.u32 %v1143_v27, %v1139_v53  ;;  %v957_v48 = vrot.slane %v955_v51, 5  ;;  %v1159_v52 = vrot.slane %v1158_v24, 4  ;;  %v4934_v24 = vld [vmem:[%s4388_s19 + $0x94] sm:$0xf] }
  0x80   : > { %2348 = vrot.lane.b32.xlu0 %v3845_v8, %s4336_s20  ;;  %v948_v10 = vsel %vm4477_vm5, %v943_v57, %v947_v44  ;;  %v952_v31 = vor.u32 %v951_v28, %v947_v44  ;;  %v1163_v34 = vrot.slane %v1161_v47, 5  ;;  %v1167_v35 = vrot.slane %v1165_v16, 4  ;;  %v3685_v8 = vld [vmem:[%s4388_s19 + $0x24] sm:$0xe]  ;;  %v4941_v47 = vld [vmem:[%s4388_s19 + $0x30] sm:$0xf] }
  0x81   : > { %2366 = vrot.lane.b32.xlu1 %v3854_v18, %s4336_s20  ;;  %v1145_v55 = vrot.slane %v1144_v7, 4  ;;  %v1171_v56 = vshll.u32 %v4883_v9, 16  ;;  %v966_v3 = vor.u32 %v965_v33, %v962_v32  ;;  %v969_v58 = vshll.u32 %v4856_v4, 16  ;;  %v3694_v18 = vld [vmem:[%s4388_s19 + $0x90] sm:$0xe] }
  0x82   : > { %v953_v60 = vrot.slane %v952_v31, 4  ;;  %v1164_v40 = vsel %vm4477_vm5, %v1159_v52, %v1163_v34  ;;  %v1168_v13 = vor.u32 %v1167_v35, %v1163_v34  ;;  %v975_v61 = vrot.slane %v973_v23, 4  ;;  %v3686_v33 = vld [vmem:[%s4388_s19 + $0x30] sm:$0xe]  ;;  %v4948_v52 = vld [vmem:[%s4388_s19 + $0x34] sm:$0xf] }
  0x83   : > { %v1150_v12 = vsel %vm4477_vm5, %v1145_v55, %v1149_v54  ;;  %v1173_v0 = vrot.slane %v1171_v56, 5  ;;  %v967_v2 = vrot.slane %v966_v3, 4  ;;  %v971_v38 = vrot.slane %v969_v58, 5 }
  0x84   : > { %2350 = vrot.lane.b32.xlu0 %v3846_v17, %s4336_s20  ;;  %v3869_v45 = vcombine.low %v1140_v50, %v1150_v12  ;;  %v958_v39 = vsel %vm4477_vm5, %v953_v60, %v957_v48  ;;  %v1169_v5 = vrot.slane %v1168_v13, 4  ;;  %v979_v6 = vshll.u32 %v4894_v37, 16  ;;  %v4965_v60 = vld [vmem:[%s4388_s19 + $0xa0] sm:$0xf]  ;;  %v4971_v12 = vld [vmem:[%s4388_s19 + $0x3c] sm:$0xf] }
  0x85   : > { %v3861_v11 = vcombine.low %v948_v10, %v958_v39  ;;  %v972_v14 = vsel %vm4477_vm5, %v967_v2, %v971_v38  ;;  %v976_v15 = vor.u32 %v975_v61, %v971_v38  ;;  %v3709_v16 = vrot.slane %v3693_v62, 9  ;;  %v4981_v39 = vld [vmem:[%s4388_s19 + $0x40] sm:$0xf] }
  0x86   : > { %2444 = vrot.lane.b32.xlu1 %v3869_v45, %s4339_s23  ;;  %v1174_v20 = vsel %vm4477_vm5, %v1169_v5, %v1173_v0  ;;  %v981_v22 = vrot.slane %v979_v6, 5  ;;  %v1407_v23 = vrot.slane %v4819_v49, 5  ;;  %v1410_v26 = vrot.slane %v4869_v25, 5 }
  0x87   : > { %v3870_v29 = vcombine.low %v1164_v40, %v1174_v20  ;;  %v977_v17 = vrot.slane %v976_v15, 4  ;;  %v3701_v19 = vrot.slane %v3685_v8, 9  ;;  %v1351_v32 = vrot.slane %v4837_v59, 5  ;;  %v4950_v10 = vpop.permute.xlu1 %2360 }
  0x88   : > { %2428 = vrot.lane.b32.xlu0 %v3861_v11, %s4339_s23  ;;  %v1408_v46 = vsel %vm4419_vm2, %v3709_v16, %v1407_v23  ;;  %v1409_v27 = vrot.slane %v1407_v23, 4  ;;  %v1354_v36 = vrot.slane %v4874_v42, 5  ;;  %v3710_v41 = vrot.slane %v3694_v18, 9 }
  0x89   : > { %v982_v49 = vsel %vm4477_vm5, %v977_v17, %v981_v22  ;;  %v1352_v25 = vsel %vm4419_vm2, %v3701_v19, %v1351_v32  ;;  %v1353_v43 = vrot.slane %v1351_v32, 4  ;;  %v1414_v59 = vrot.slane %v4847_v63, 5  ;;  %v4987_v15 = vpop.permute.xlu0 %2344  ;;  %v5000_v32 = vld [vmem:[%s4388_s19 + $0x38] sm:$0x1] }
  0x8a   : > { %2446 = vrot.lane.b32.xlu1 %v3870_v29, %s4339_s23  ;;  %v3862_v53 = vcombine.low %v972_v14, %v982_v49  ;;  %v1411_v42 = vsel %vm4419_vm2, %v1409_v27, %v1410_v26  ;;  %v1417_v28 = vrot.slane %v4883_v9, 5  ;;  %v3702_v51 = vrot.slane %v3686_v33, 9  ;;  %v4985_v14 = vld [vmem:[%s4388_s19 + $0x98] sm:$0x1] }
  0x8b   : > { %v3885_v54 = vcombine.low %v1408_v46, %v1411_v42  ;;  %v1355_v57 = vsel %vm4419_vm2, %v1353_v43, %v1354_v36  ;;  %v1415_v63 = vsel %vm4419_vm2, %v3710_v41, %v1414_v59  ;;  %v1416_v44 = vrot.slane %v1414_v59, 4 }
  0x8c   : > { %2430 = vrot.lane.b32.xlu0 %v3862_v53, %s4339_s23  ;;  %v3877_v50 = vcombine.low %v1352_v25, %v1355_v57  ;;  %v1358_v9 = vrot.slane %v4856_v4, 5  ;;  %v1361_v7 = vrot.slane %v4894_v37, 5  ;;  %v1737_v48 = vshrl.u32 %v4927_v1, 16  ;;  %v4959_v4 = vld [vmem:[%s4388_s19 + $0x9c] sm:$0xf] }
  0x8d   : > { %v1418_v31 = vsel %vm4419_vm2, %v1416_v44, %v1417_v28  ;;  %v1740_v34 = vshll.u32 %v4927_v1, 16  ;;  %v1750_v35 = vshrl.u32 %v4934_v24, 16  ;;  %v3901_v55 = vcombine.low %v4927_v1, %v4934_v24 }
  0x8e   : > { %2524 = vrot.lane.b32.xlu1 %v3885_v54, %s4340_s24  ;;  %v3886_v56 = vcombine.low %v1415_v63, %v1418_v31  ;;  %v1359_v37 = vsel %vm4419_vm2, %v3702_v51, %v1358_v9  ;;  %v1360_v3 = vrot.slane %v1358_v9, 4  ;;  %v1739_v58 = vrot.slane %v1737_v48, 4  ;;  %v5009_v54 = vld [vmem:[%s4388_s19 + $0xa4] sm:$0x1] }
  0x8f   : > { %v1742_v40 = vrot.slane %v1740_v34, 5  ;;  %v1545_v13 = vshrl.u32 %v4941_v47, 16  ;;  %v1548_v61 = vshll.u32 %v4941_v47, 16  ;;  %v1558_v62 = vshrl.u32 %v4948_v52, 16  ;;  %v4993_v23 = vpop.permute.xlu1 %2264 }
  0x90   : > { %2508 = vrot.lane.b32.xlu0 %v3877_v50, %s4340_s24  ;;  %v1362_v0 = vsel %vm4419_vm2, %v1360_v3, %v1361_v7  ;;  %v3893_v2 = vcombine.low %v4941_v47, %v4948_v52  ;;  %v1761_v38 = vshrl.u32 %v4959_v4, 16  ;;  %v1764_v45 = vshll.u32 %v4959_v4, 16 }
  0x91   : > { %v3878_v5 = vcombine.low %v1359_v37, %v1362_v0  ;;  %v1547_v6 = vrot.slane %v1545_v13, 4  ;;  %v1550_v8 = vrot.slane %v1548_v61, 5  ;;  %v1774_v11 = vshrl.u32 %v4965_v60, 16  ;;  %v5012_v44 = vpop.permute.xlu0 %2248  ;;  %v5024_v37 = vld [vmem:[%s4388_s19 + $0x44] sm:$0x1] }
  0x92   : > { %2526 = vrot.lane.b32.xlu1 %v3886_v56, %s4340_s24  ;;  %v1763_v16 = vrot.slane %v1761_v38, 4  ;;  %v1766_v18 = vrot.slane %v1764_v45, 5  ;;  %v3902_v20 = vcombine.low %v4959_v4, %v4965_v60  ;;  %v1569_v22 = vshrl.u32 %v4971_v12, 16 }
  0x93   : > { %v1572_v26 = vshll.u32 %v4971_v12, 16  ;;  %v1582_v29 = vshrl.u32 %v4981_v39, 16  ;;  %v3894_v17 = vcombine.low %v4971_v12, %v4981_v39  ;;  %v1743_v19 = vor.u32 %v1742_v40, %v1739_v58  ;;  %v5017_v48 = vpop.permute.xlu1 %2266  ;;  %v3773_v12 = vld [vmem:[%s4388_s19 + $0x90] sm:$0xe] }
  0x94   : > { %2510 = vrot.lane.b32.xlu0 %v3878_v5, %s4340_s24  ;;  %v1571_v33 = vrot.slane %v1569_v22, 4  ;;  %v1746_v46 = vshll.u32 %v4934_v24, 16  ;;  %v1752_v27 = vrot.slane %v1750_v35, 4  ;;  %v1756_v36 = vshll.u32 %v4985_v14, 16 }
  0x95   : > { %v1574_v41 = vrot.slane %v1572_v26, 5  ;;  %v1744_v49 = vrot.slane %v1743_v19, 4  ;;  %v1551_v25 = vor.u32 %v1550_v8, %v1547_v6  ;;  %v1554_v43 = vshll.u32 %v4948_v52, 16 }
  0x96   : > { %2620 = vrot.lane.b32.xlu1 %v3901_v55, %s4341_s25  ;;  %v1748_v59 = vrot.slane %v1746_v46, 5  ;;  %v1758_v1 = vrot.slane %v1756_v36, 5  ;;  %v1560_v53 = vrot.slane %v1558_v62, 4  ;;  %v1564_v42 = vshll.u32 %v5000_v32, 16 }
  0x97   : > { %v1552_v28 = vrot.slane %v1551_v25, 4  ;;  %v1556_v51 = vrot.slane %v1554_v43, 5  ;;  %v1767_v57 = vor.u32 %v1766_v18, %v1763_v16  ;;  %v1770_v63 = vshll.u32 %v4965_v60, 16  ;;  %v3765_v16 = vld [vmem:[%s4388_s19 + $0x30] sm:$0xe]  ;;  %v5037_v18 = vpop.permute.xlu0 %2250 }
  0x98   : > { %2604 = vrot.lane.b32.xlu0 %v3893_v2, %s4341_s25  ;;  %v1749_v47 = vsel %vm4477_vm5, %v1744_v49, %v1748_v59  ;;  %v1753_v50 = vor.u32 %v1752_v27, %v1748_v59  ;;  %v1566_v9 = vrot.slane %v1564_v42, 5  ;;  %v1776_v7 = vrot.slane %v1774_v11, 4  ;;  %v5052_v59 = vld [vmem:[%s4388_s19 + $0x94] sm:$0xf] }
  0x99   : > { %v1557_v31 = vsel %vm4477_vm5, %v1552_v28, %v1556_v51  ;;  %v1561_v34 = vor.u32 %v1560_v53, %v1556_v51  ;;  %v1768_v35 = vrot.slane %v1767_v57, 4  ;;  %v1772_v55 = vrot.slane %v1770_v63, 5  ;;  %v5062_v57 = vld [vmem:[%s4388_s19 + $0x98] sm:$0x1]  ;;  %v232_v63 = vld [vmem:[%s4388_s19 + $0x30] sm:$0xf] }
  0x9a   : > { %2622 = vrot.lane.b32.xlu1 %v3902_v20, %s4341_s25  ;;  %v1754_v4 = vrot.slane %v1753_v50, 4  ;;  %v1780_v56 = vshll.u32 %v5009_v54, 16  ;;  %v1575_v3 = vor.u32 %v1574_v41, %v1571_v33  ;;  %v1578_v58 = vshll.u32 %v4981_v39, 16 }
  0x9b   : > { %v1562_v40 = vrot.slane %v1561_v34, 4  ;;  %v1773_v13 = vsel %vm4477_vm5, %v1768_v35, %v1772_v55  ;;  %v1777_v61 = vor.u32 %v1776_v7, %v1772_v55  ;;  %v1584_v62 = vrot.slane %v1582_v29, 4  ;;  %v5070_v7 = vld [vmem:[%s4388_s19 + $0x34] sm:$0xf] }
  0x9c   : > { %2606 = vrot.lane.b32.xlu0 %v3894_v17, %s4341_s25  ;;  %v1759_v0 = vsel %vm4477_vm5, %v1754_v4, %v1758_v1  ;;  %v1782_v2 = vrot.slane %v1780_v56, 5  ;;  %v1576_v38 = vrot.slane %v1575_v3, 4  ;;  %v1580_v45 = vrot.slane %v1578_v58, 5  ;;  %v248_v17 = vld [vmem:[%s4388_s19 + $0x90] sm:$0xf]  ;;  %v5042_v19 = vpop.permute.xlu1 %2170 }
  0x9d   : > { %v3917_v5 = vcombine.low %v1749_v47, %v1759_v0  ;;  %v1567_v6 = vsel %vm4477_vm5, %v1562_v40, %v1566_v9  ;;  %v1778_v8 = vrot.slane %v1777_v61, 4  ;;  %v1588_v11 = vshll.u32 %v5024_v37, 16  ;;  %v5076_v56 = vld [vmem:[%s4388_s19 + $0x38] sm:$0x1] }
  0x9e   : > { %v3909_v20 = vcombine.low %v1557_v31, %v1567_v6  ;;  %v1581_v22 = vsel %vm4477_vm5, %v1576_v38, %v1580_v45  ;;  %v1585_v26 = vor.u32 %v1584_v62, %v1580_v45  ;;  %v3789_v29 = vrot.slane %v3773_v12, 9 }
  0x9f   : > { %2700 = vrot.lane.b32.xlu1 %v3917_v5, %s4342_s26  ;;  %v1783_v33 = vsel %vm4477_vm5, %v1778_v8, %v1782_v2  ;;  %v1590_v46 = vrot.slane %v1588_v11, 5  ;;  %v2016_v27 = vrot.slane %v4934_v24, 5  ;;  %v2019_v36 = vrot.slane %v4985_v14, 5 }
  0xa0   : > { %2684 = vrot.lane.b32.xlu0 %v3909_v20, %s4342_s26  ;;  %v3918_v41 = vcombine.low %v1773_v13, %v1783_v33  ;;  %v1586_v49 = vrot.slane %v1585_v26, 4  ;;  %v3781_v25 = vrot.slane %v3765_v16, 9  ;;  %v1960_v43 = vrot.slane %v4948_v52, 5  ;;  %v2169_v31 = vpop.permute.xlu0 %2168 }
  0xa1   : > { %v2017_v1 = vsel %vm4419_vm2, %v3789_v29, %v2016_v27  ;;  %v2018_v53 = vrot.slane %v2016_v27, 4  ;;  %v1963_v42 = vrot.slane %v5000_v32, 5  ;;  %v564_v24 = vshrl.u32 %v248_v17, 16 }
  0xa2   : > { %v1591_v14 = vsel %vm4477_vm5, %v1586_v49, %v1590_v46  ;;  %v1961_v28 = vsel %vm4419_vm2, %v3781_v25, %v1960_v43  ;;  %v1962_v51 = vrot.slane %v1960_v43, 4  ;;  %v567_v52 = vshll.u32 %v248_v17, 16 }
  0xa3   : > { %2702 = vrot.lane.b32.xlu1 %v3918_v41, %s4342_s26  ;;  %v3910_v47 = vcombine.low %v1581_v22, %v1591_v14  ;;  %v2020_v50 = vsel %vm4419_vm2, %v2018_v53, %v2019_v36  ;;  %v566_v32 = vrot.slane %v564_v24, 4  ;;  %v573_v9 = vshll.u32 %v5052_v59, 16  ;;  %v3774_v22 = vld [vmem:[%s4388_s19 + $0x9c] sm:$0xe]  ;;  %v4284_v36 = vld [vmem:[%s4388_s19 + $0x4] sm:$0xf] }
  0xa4   : > { %v3933_v34 = vcombine.low %v2017_v1, %v2020_v50  ;;  %v1964_v35 = vsel %vm4419_vm2, %v1962_v51, %v1963_v42  ;;  %v569_v55 = vrot.slane %v567_v52, 5  ;;  %v577_v4 = vshrl.u32 %v5052_v59, 16  ;;  %v5078_v3 = vpop.permute.xlu1 %2186  ;;  %v4285_v41 = vld [vmem:[%s4388_s19] sm:$0xf]  ;;  %v4286_v1 = vld [vmem:[%s4388_s19 + $0x10] sm:$0xf] }
  0xa5   : > { %2686 = vrot.lane.b32.xlu0 %v3910_v47, %s4342_s26  ;;  %v3925_v58 = vcombine.low %v1961_v28, %v1964_v35  ;;  %v575_v40 = vrot.slane %v573_v9, 5  ;;  %v583_v13 = vshll.u32 %v5062_v57, 16  ;;  %v372_v61 = vshrl.u32 %v232_v63, 16  ;;  %v4287_v53 = vld [vmem:[%s4388_s19 + $0xc] sm:$0xf] }
  0xa6   : > { %v570_v62 = vor.u32 %v569_v55, %v566_v32  ;;  %v579_v12 = vrot.slane %v577_v4, 4  ;;  %v375_v0 = vshll.u32 %v232_v63, 16  ;;  %v381_v2 = vshll.u32 %v5070_v7, 16  ;;  %v3766_v14 = vld [vmem:[%s4388_s19 + $0x3c] sm:$0xe] }
  0xa7   : > { %2780 = vrot.lane.b32.xlu1 %v3933_v34, %s4343_s27  ;;  %v585_v38 = vrot.slane %v583_v13, 5  ;;  %v374_v45 = vrot.slane %v372_v61, 4  ;;  %v385_v5 = vshrl.u32 %v5070_v7, 16  ;;  %v391_v6 = vshll.u32 %v5076_v56, 16  ;;  %v250_v9 = vld [vmem:[%s4388_s19 + $0x9c] sm:$0xf] }
  0xa8   : > { %v571_v8 = vrot.slane %v570_v62, 4  ;;  %v580_v11 = vor.u32 %v579_v12, %v575_v40  ;;  %v377_v16 = vrot.slane %v375_v0, 5  ;;  %v383_v20 = vrot.slane %v381_v2, 5  ;;  %v5087_v26 = vpop.permute.xlu1 %2362  ;;  %v4288_v13 = vld [vmem:[%s4388_s19 + $0x70] sm:$0xf] }
  0xa9   : > { %2764 = vrot.lane.b32.xlu0 %v3925_v58, %s4343_s27  ;;  %v387_v29 = vrot.slane %v385_v5, 4  ;;  %v5090_v17 = vpop.permute.xlu0 %2184  ;;  %v3795_v49 = vcombine.low %v4285_v41, %v4284_v36  ;;  %v393_v43 = vrot.slane %v391_v6, 5  ;;  %v3796_v42 = vcombine.low %v4287_v53, %v4286_v1  ;;  %v4289_v61 = vld [vmem:[%s4388_s19 + $0x6c] sm:$0xf]  ;;  %v5121_v12 = vld [vmem:[%s4388_s19 + $0xa0] sm:$0xf] }
  0xaa   : > { %v576_v33 = vsel %vm4477_vm5, %v571_v8, %v575_v40  ;;  %v581_v46 = vrot.slane %v580_v11, 4  ;;  %v378_v27 = vor.u32 %v377_v16, %v374_v45  ;;  %v3790_v24 = vrot.slane %v3774_v22, 9  ;;  %v5130_v45 = vld [vmem:[%s4388_s19 + $0xa4] sm:$0x1]  ;;  %v4291_v11 = vld [vmem:[%s4388_s19 + $0x60] sm:$0xf] }
  0xab   : > { %v388_v25 = vor.u32 %v387_v29, %v383_v20  ;;  %v2023_v52 = vrot.slane %v4965_v60, 5  ;;  %v2795_v50 = vsel %vm2792_vm6, %v3795_v49, %v2169_v31  ;;  %v2026_v32 = vrot.slane %v5009_v54, 5  ;;  %v4290_v8 = vld [vmem:[%s4388_s19 + $0x64] sm:$0xf] }
  0xac   : > { %v586_v28 = vsel %vm4477_vm5, %v581_v46, %v585_v38  ;;  %v379_v51 = vrot.slane %v378_v27, 4  ;;  %v5107_v35 = vpop.permute.xlu1 %2440  ;;  %v3782_v58 = vrot.slane %v3766_v14, 9  ;;  %v1967_v31 = vrot.slane %v4981_v39, 5  ;;  %v5146_v27 = vld [vmem:[%s4388_s19 + $0x40] sm:$0xf] }
  0xad   : > { %v3823_v63 = vcombine.low %v576_v33, %v586_v28  ;;  %v389_v47 = vrot.slane %v388_v25, 4  ;;  %v5105_v34 = vpop.permute.xlu0 %2346  ;;  %v2024_v60 = vsel %vm4419_vm2, %v3790_v24, %v2023_v52  ;;  %v2025_v4 = vrot.slane %v2023_v52, 4 }
  0xae   : > { %v384_v55 = vsel %vm4477_vm5, %v379_v51, %v383_v20  ;;  %v1970_v40 = vrot.slane %v5024_v37, 5  ;;  %v3804_v62 = vcombine.low %v4289_v61, %v4288_v13  ;;  %v5125_v2 = vsel %vm2792_vm6, %v3796_v42, %v5042_v19  ;;  %v234_v20 = vld [vmem:[%s4388_s19 + $0x3c] sm:$0xf] }
  0xaf   : > { %2192 = vrot.lane.b32.xlu1 %v3823_v63, %s4338_s22  ;;  %v394_v54 = vsel %vm4477_vm5, %v389_v47, %v393_v43  ;;  %v2027_v38 = vsel %vm4419_vm2, %v2025_v4, %v2026_v32  ;;  %v588_v39 = vshrl.u32 %v250_v9, 16  ;;  %v1968_v37 = vsel %vm4419_vm2, %v3782_v58, %v1967_v31 }
  0xb0   : > { %v3815_v0 = vcombine.low %v384_v55, %v394_v54  ;;  %v3934_v5 = vcombine.low %v2024_v60, %v2027_v38  ;;  %v1969_v6 = vrot.slane %v1967_v31, 4  ;;  %v3803_v16 = vcombine.low %v4291_v11, %v4290_v8  ;;  %v663_v38 = vld [vmem:[%s4388_s19 + $0x30] sm:$0xe] }
  0xb1   : > { %v5137_v22 = vpop.permute.xlu0 %2424  ;;  %v5142_v19 = vsel %vm2841_vm7, %v2795_v50, %v5012_v44  ;;  %v590_v29 = vrot.slane %v588_v39, 4  ;;  %v591_v33 = vshll.u32 %v250_v9, 16  ;;  %v597_v46 = vshll.u32 %v5121_v12, 16  ;;  %v5156_v44 = vld [vmem:[%s4388_s19 + $0x44] sm:$0x1] }
  0xb2   : > { %2176 = vrot.lane.b32.xlu0 %v3815_v0, %s4338_s22  ;;  %v1971_v36 = vsel %vm4419_vm2, %v1969_v6, %v1970_v40  ;;  %v2822_v41 = vsel %vm2792_vm6, %v3804_v62, %v5078_v3  ;;  %v601_v49 = vshrl.u32 %v5121_v12, 16  ;;  %v607_v25 = vshll.u32 %v5130_v45, 16 }
  0xb3   : > { %2782 = vrot.lane.b32.xlu1 %v3934_v5, %s4343_s27  ;;  %v5158_v43 = vpop.permute.xlu1 %2442  ;;  %v3926_v1 = vcombine.low %v1968_v37, %v1971_v36  ;;  %v593_v53 = vrot.slane %v591_v33, 5  ;;  %v599_v42 = vrot.slane %v597_v46, 5  ;;  %v396_v24 = vshrl.u32 %v234_v20, 16 }
  0xb4   : > { %v2819_v14 = vsel %vm2792_vm6, %v3803_v16, %v5090_v17  ;;  %v603_v28 = vrot.slane %v601_v49, 4  ;;  %v399_v51 = vshll.u32 %v234_v20, 16  ;;  %v405_v3 = vshll.u32 %v5146_v27, 16  ;;  %v671_v17 = vld [vmem:[%s4388_s19 + $0x90] sm:$0xe] }
  0xb5   : > { %v5163_v52 = vpop.permute.xlu0 %2426  ;;  %v594_v63 = vor.u32 %v593_v53, %v590_v29  ;;  %v398_v47 = vrot.slane %v396_v24, 4  ;;  %v409_v50 = vshrl.u32 %v5146_v27, 16  ;;  %v415_v32 = vshll.u32 %v5156_v44, 16 }
  0xb6   : > { %2766 = vrot.lane.b32.xlu0 %v3926_v1, %s4343_s27  ;;  %v604_v9 = vor.u32 %v603_v28, %v599_v42  ;;  %v609_v55 = vrot.slane %v607_v25, 5  ;;  %v401_v60 = vrot.slane %v399_v51, 5  ;;  %v407_v4 = vrot.slane %v405_v3, 5  ;;  %v664_v28 = vld [vmem:[%s4388_s19 + $0x3c] sm:$0xe] }
  0xb7   : > { %v5169_v58 = vpop.permute.xlu1 %2520  ;;  %v2859_v54 = vsel %vm2841_vm7, %v2819_v14, %v4993_v23  ;;  %v595_v31 = vrot.slane %v594_v63, 4  ;;  %v411_v40 = vrot.slane %v409_v50, 4  ;;  %v2861_v13 = vsel %vm2841_vm7, %v2822_v41, %v5017_v48 }
  0xb8   : > { %v605_v61 = vrot.slane %v604_v9, 4  ;;  %v402_v62 = vor.u32 %v401_v60, %v398_v47  ;;  %v417_v0 = vrot.slane %v415_v32, 5  ;;  %v2894_v6 = vsel %vm2874_vm8, %v2861_v13, %v5087_v26 }
  0xb9   : > { %v5176_v39 = vpop.permute.xlu0 %2504  ;;  %v600_v5 = vsel %vm4477_vm5, %v595_v31, %v599_v42  ;;  %v412_v37 = vor.u32 %v411_v40, %v407_v4  ;;  %v3631_v23 = vrot.slane %v671_v17, 9  ;;  %v812_v48 = vrot.slane %v5052_v59, 5  ;;  %v672_v42 = vld [vmem:[%s4388_s19 + $0x9c] sm:$0xe] }
  0xba   : > { %v610_v8 = vsel %vm4477_vm5, %v605_v61, %v609_v55  ;;  %v403_v11 = vrot.slane %v402_v62, 4  ;;  %v815_v16 = vrot.slane %v5062_v57, 5  ;;  %v3623_v46 = vrot.slane %v663_v38, 9  ;;  %v5226_v55 = vld [vmem:[%s4388_s19 + $0xa0] sm:$0xf] }
  0xbb   : > { %v5186_v20 = vpop.permute.xlu1 %2522  ;;  %v3824_v29 = vcombine.low %v600_v5, %v610_v8  ;;  %v413_v33 = vrot.slane %v412_v37, 4  ;;  %v756_v36 = vrot.slane %v5070_v7, 5  ;;  %v813_v41 = vsel %vm4419_vm2, %v3631_v23, %v812_v48  ;;  %v3643_v17 = vld [vmem:[%s4388_s19 + $0x3c] sm:$0xf]  ;;  %v3661_v5 = vld [vmem:[%s4388_s19 + $0xa8] sm:$0xf] }
  0xbc   : > { %v408_v26 = vsel %vm4477_vm5, %v403_v11, %v407_v4  ;;  %v814_v49 = vrot.slane %v812_v48, 4  ;;  %v759_v59 = vrot.slane %v5076_v56, 5  ;;  %v2845_v7 = vsel %vm2841_vm7, %v5125_v2, %v5037_v18 }
  0xbd   : > { %v5194_v25 = vpop.permute.xlu0 %2506  ;;  %2194 = vrot.lane.b32.xlu1 %v3824_v29, %s4338_s22  ;;  %v418_v57 = vsel %vm4477_vm5, %v413_v33, %v417_v0  ;;  %v757_v1 = vsel %vm4419_vm2, %v3623_v46, %v756_v36  ;;  %v758_v53 = vrot.slane %v756_v36, 4  ;;  %v2878_v56 = vsel %vm2874_vm8, %v2845_v7, %v5105_v34  ;;  %v5220_v34 = vld [vmem:[%s4388_s19 + $0x9c] sm:$0xf]  ;;  %v5255_v0 = vld [vmem:[%s4388_s19 + $0x40] sm:$0xf] }
  0xbe   : > { %v3816_v24 = vcombine.low %v408_v26, %v418_v57  ;;  %v816_v14 = vsel %vm4419_vm2, %v814_v49, %v815_v16  ;;  %v2892_v2 = vsel %vm2874_vm8, %v2859_v54, %v4950_v10  ;;  %v2876_v63 = vsel %vm2874_vm8, %v5142_v19, %v4987_v15  ;;  %v5265_v29 = vld [vmem:[%s4388_s19 + $0xac] sm:$0xf]  ;;  %v3645_v33 = vld [vmem:[%s4388_s19 + $0x48] sm:$0xf] }
  0xbf   : > { %v5210_v51 = vpop.permute.xlu1 %2616  ;;  %v3839_v3 = vcombine.low %v813_v41, %v816_v14  ;;  %v760_v18 = vsel %vm4419_vm2, %v758_v53, %v759_v59  ;;  %v3632_v50 = vrot.slane %v672_v42, 9  ;;  %v819_v32 = vrot.slane %v5121_v12, 5  ;;  %v5273_v49 = vld [vmem:[%s4388_s19 + $0x4c] sm:$0xf] }
  0xc0   : > { %2178 = vrot.lane.b32.xlu0 %v3816_v24, %s4338_s22  ;;  %v3831_v47 = vcombine.low %v757_v1, %v760_v18  ;;  %v822_v9 = vrot.slane %v5130_v45, 5  ;;  %v2925_v10 = vsel %vm2907_vm9, %v2892_v2, %v5107_v35  ;;  %v3624_v15 = vrot.slane %v664_v28, 9  ;;  %v5288_v28 = vld [vmem:[%s4388_s19 + $0xa4] sm:$0x1] }
  0xc1   : > { %v5228_v60 = vpop.permute.xlu0 %2600  ;;  %2272 = vrot.lane.b32.xlu1 %v3839_v3, %s4337_s21  ;;  %v763_v19 = vrot.slane %v5146_v27, 5  ;;  %v766_v4 = vrot.slane %v5156_v44, 5  ;;  %v2909_v12 = vsel %vm2907_vm9, %v2876_v63, %v5137_v22  ;;  %v820_v45 = vsel %vm4419_vm2, %v3632_v50, %v819_v32  ;;  %v5293_v63 = vld [vmem:[%s4388_s19 + $0x44] sm:$0x1] }
  0xc2   : > { %v821_v54 = vrot.slane %v819_v32, 4  ;;  %v1176_v31 = vshrl.u32 %v5220_v34, 16  ;;  %v2927_v44 = vsel %vm2907_vm9, %v2894_v6, %v5158_v43  ;;  %v1179_v13 = vshll.u32 %v5220_v34, 16 }
  0xc3   : > { %v5241_v40 = vpop.permute.xlu1 %2618  ;;  %v764_v35 = vsel %vm4419_vm2, %v3624_v15, %v763_v19  ;;  %v765_v27 = vrot.slane %v763_v19, 4  ;;  %v2911_v61 = vsel %vm2907_vm9, %v2878_v56, %v5163_v52  ;;  %v1189_v62 = vshrl.u32 %v5226_v55, 16 }
  0xc4   : > { %2256 = vrot.lane.b32.xlu0 %v3831_v47, %s4337_s21  ;;  %v823_v22 = vsel %vm4419_vm2, %v821_v54, %v822_v9  ;;  %v984_v38 = vshrl.u32 %v3643_v17, 16  ;;  %v1178_v23 = vrot.slane %v1176_v31, 4  ;;  %v987_v8 = vshll.u32 %v3643_v17, 16 }
  0xc5   : > { %v5258_v37 = vpop.permute.xlu0 %2602  ;;  %v3840_v43 = vcombine.low %v820_v45, %v823_v22  ;;  %v767_v6 = vsel %vm4419_vm2, %v765_v27, %v766_v4  ;;  %v1181_v48 = vrot.slane %v1179_v13, 5  ;;  %v3855_v52 = vcombine.low %v5220_v34, %v5226_v55  ;;  %v5314_v27 = vld [vmem:[%s4388_s19 + $0xb0] sm:$0x1] }
  0xc6   : > { %v3832_v11 = vcombine.low %v764_v35, %v767_v6  ;;  %v986_v16 = vrot.slane %v984_v38, 4  ;;  %v997_v36 = vshrl.u32 %v5255_v0, 16  ;;  %v1200_v26 = vshrl.u32 %v3661_v5, 16 }
  0xc7   : > { %v5268_v46 = vpop.permute.xlu1 %2696  ;;  %2274 = vrot.lane.b32.xlu1 %v3840_v43, %s4337_s21  ;;  %v1203_v41 = vshll.u32 %v3661_v5, 16  ;;  %v989_v59 = vrot.slane %v987_v8, 5  ;;  %v3847_v57 = vcombine.low %v3643_v17, %v5255_v0  ;;  %v2958_v7 = vsel %vm2940_vm10, %v2925_v10, %v5169_v58 }
  0xc8   : > { %2258 = vrot.lane.b32.xlu0 %v3832_v11, %s4337_s21  ;;  %v5281_v1 = vsel %vm2940_vm10, %v2909_v12, %v5176_v39  ;;  %v1202_v42 = vrot.slane %v1200_v26, 4  ;;  %v1213_v56 = vshrl.u32 %v5265_v29, 16  ;;  %v3856_v14 = vcombine.low %v3661_v5, %v5265_v29 }
  0xc9   : > { %v5283_v53 = vpop.permute.xlu0 %2680  ;;  %v1205_v24 = vrot.slane %v1203_v41, 5  ;;  %v1008_v3 = vshrl.u32 %v3645_v33, 16  ;;  %v1011_v18 = vshll.u32 %v3645_v33, 16  ;;  %v1021_v2 = vshrl.u32 %v5273_v49, 16 }
  0xca   : > { %v3848_v58 = vcombine.low %v3645_v33, %v5273_v49  ;;  %v5300_v34 = vsel %vm2940_vm10, %v2927_v44, %v5186_v20  ;;  %v5304_v47 = vsel %vm2940_vm10, %v2911_v61, %v5194_v25  ;;  %v1182_v50 = vor.u32 %v1181_v48, %v1178_v23 }
  0xcb   : > { %v5295_v39 = vpop.permute.xlu1 %2698  ;;  %2368 = vrot.lane.b32.xlu1 %v3855_v52, %s4336_s20  ;;  %v1185_v32 = vshll.u32 %v5226_v55, 16  ;;  %v1191_v9 = vrot.slane %v1189_v62, 4  ;;  %v1195_v10 = vshll.u32 %v5288_v28, 16  ;;  %v990_v15 = vor.u32 %v989_v59, %v986_v16  ;;  %v5327_v16 = vld [vmem:[%s4388_s19 + $0x50] sm:$0x1] }
  0xcc   : > { %2352 = vrot.lane.b32.xlu0 %v3847_v57, %s4336_s20  ;;  %v993_v19 = vshll.u32 %v5255_v0, 16  ;;  %v1183_v4 = vrot.slane %v1182_v50, 4  ;;  %v999_v20 = vrot.slane %v997_v36, 4  ;;  %v1003_v12 = vshll.u32 %v5293_v63, 16 }
  0xcd   : > { %v1187_v17 = vrot.slane %v1185_v32, 5  ;;  %v5311_v45 = vpop.permute.xlu0 %2682  ;;  %v1010_v25 = vrot.slane %v1008_v3, 4  ;;  %v1013_v54 = vrot.slane %v1011_v18, 5  ;;  %v991_v31 = vrot.slane %v990_v15, 4  ;;  %v3695_v18 = vld [vmem:[%s4388_s19 + $0x9c] sm:$0xe] }
  0xce   : > { %v995_v35 = vrot.slane %v993_v19, 5  ;;  %v1197_v22 = vrot.slane %v1195_v10, 5  ;;  %v1005_v38 = vrot.slane %v1003_v12, 5  ;;  %v1206_v5 = vor.u32 %v1205_v24, %v1202_v42  ;;  %v3687_v10 = vld [vmem:[%s4388_s19 + $0x3c] sm:$0xe] }
  0xcf   : > { %2370 = vrot.lane.b32.xlu1 %v3856_v14, %s4336_s20  ;;  %v1188_v44 = vsel %vm4477_vm5, %v1183_v4, %v1187_v17  ;;  %v1192_v13 = vor.u32 %v1191_v9, %v1187_v17  ;;  %v5322_v43 = vpop.permute.xlu1 %2776  ;;  %v1209_v23 = vshll.u32 %v5265_v29, 16  ;;  %v1215_v8 = vrot.slane %v1213_v56, 4 }
  0xd0   : > { %2354 = vrot.lane.b32.xlu0 %v3848_v58, %s4336_s20  ;;  %v996_v61 = vsel %vm4477_vm5, %v991_v31, %v995_v35  ;;  %v1000_v62 = vor.u32 %v999_v20, %v995_v35  ;;  %v1219_v11 = vshll.u32 %v5314_v27, 16  ;;  %v1207_v52 = vrot.slane %v1206_v5, 4  ;;  %v3696_v31 = vld [vmem:[%s4388_s19 + $0xa8] sm:$0xe] }
  0xd1   : > { %v1193_v6 = vrot.slane %v1192_v13, 4  ;;  %v1014_v33 = vor.u32 %v1013_v54, %v1010_v25  ;;  %v1017_v36 = vshll.u32 %v5273_v49, 16  ;;  %v2991_v41 = vsel %vm2973_vm11, %v2958_v7, %v5210_v51  ;;  %v5334_v42 = vpop.permute.xlu0 %2760 }
  0xd2   : > { %v1001_v48 = vrot.slane %v1000_v62, 4  ;;  %v1211_v59 = vrot.slane %v1209_v23, 5  ;;  %v1023_v57 = vrot.slane %v1021_v2, 4  ;;  %v1221_v32 = vrot.slane %v1219_v11, 5 }
  0xd3   : > { %v1198_v26 = vsel %vm4477_vm5, %v1193_v6, %v1197_v22  ;;  %v1015_v14 = vrot.slane %v1014_v33, 4  ;;  %v1019_v3 = vrot.slane %v1017_v36, 5  ;;  %v1027_v9 = vshll.u32 %v5327_v16, 16 }
  0xd4   : > { %v3871_v24 = vcombine.low %v1188_v44, %v1198_v26  ;;  %v1006_v56 = vsel %vm4477_vm5, %v1001_v48, %v1005_v38  ;;  %v1216_v50 = vor.u32 %v1215_v8, %v1211_v59  ;;  %v2975_v51 = vsel %vm2973_vm11, %v5281_v1, %v5228_v60  ;;  %v3688_v38 = vld [vmem:[%s4388_s19 + $0x48] sm:$0xe] }
  0xd5   : > { %v3863_v58 = vcombine.low %v996_v61, %v1006_v56  ;;  %v1212_v7 = vsel %vm4477_vm5, %v1207_v52, %v1211_v59  ;;  %v1020_v2 = vsel %vm4477_vm5, %v1015_v14, %v1019_v3  ;;  %v1024_v15 = vor.u32 %v1023_v57, %v1019_v3  ;;  %v5380_v52 = vld [vmem:[%s4388_s19 + $0xa8] sm:$0xf] }
  0xd6   : > { %2448 = vrot.lane.b32.xlu1 %v3871_v24, %s4339_s23  ;;  %v1217_v4 = vrot.slane %v1216_v50, 4  ;;  %v1029_v17 = vrot.slane %v1027_v9, 5  ;;  %v3711_v20 = vrot.slane %v3695_v18, 9  ;;  %v1421_v12 = vrot.slane %v5226_v55, 5  ;;  %v5394_v24 = vld [vmem:[%s4388_s19 + $0xac] sm:$0xf] }
  0xd7   : > { %v5349_v19 = vpop.permute.xlu1 %2188  ;;  %2432 = vrot.lane.b32.xlu0 %v3863_v58, %s4339_s23  ;;  %v1025_v25 = vrot.slane %v1024_v15, 4  ;;  %v1424_v60 = vrot.slane %v5288_v28, 5  ;;  %v3703_v1 = vrot.slane %v3687_v10, 9  ;;  %v1365_v54 = vrot.slane %v5255_v0, 5  ;;  %v3723_v56 = vld [vmem:[%s4388_s19 + $0x48] sm:$0xf] }
  0xd8   : > { %v1222_v35 = vsel %vm4477_vm5, %v1217_v4, %v1221_v32  ;;  %v1422_v44 = vsel %vm4419_vm2, %v3711_v20, %v1421_v12  ;;  %v1423_v13 = vrot.slane %v1421_v12, 4  ;;  %v1368_v22 = vrot.slane %v5293_v63, 5  ;;  %v5415_v18 = vld [vmem:[%s4388_s19 + $0x4c] sm:$0xf]  ;;  %v5418_v58 = vld [vmem:[%s4388_s19 + $0xb4] sm:$0xf] }
  0xd9   : > { %v3872_v55 = vcombine.low %v1212_v7, %v1222_v35  ;;  %v1030_v28 = vsel %vm4477_vm5, %v1025_v25, %v1029_v17  ;;  %v1366_v0 = vsel %vm4419_vm2, %v3703_v1, %v1365_v54  ;;  %v1367_v62 = vrot.slane %v1365_v54, 4  ;;  %v5432_v15 = vld [vmem:[%s4388_s19 + $0x54] sm:$0xf] }
  0xda   : > { %v5361_v61 = vpop.permute.xlu0 %2172  ;;  %v3864_v5 = vcombine.low %v1020_v2, %v1030_v28  ;;  %v1425_v6 = vsel %vm4419_vm2, %v1423_v13, %v1424_v60  ;;  %v3712_v23 = vrot.slane %v3696_v31, 9  ;;  %v2993_v63 = vsel %vm2973_vm11, %v5300_v34, %v5241_v40  ;;  %v5429_v2 = vld [vmem:[%s4388_s19 + $0xb8] sm:$0xf]  ;;  %v4265_v28 = vld [vmem:[%s6268_s1 + $0x20] ss:$0 sps:$4 sm:$0xff]  }
  0xdb   : > { %2450 = vrot.lane.b32.xlu1 %v3872_v55, %s4339_s23  ;;  %v2977_v8 = vsel %vm2973_vm11, %v5304_v47, %v5258_v37  ;;  %v3887_v11 = vcombine.low %v1422_v44, %v1425_v6  ;;  %v1369_v48 = vsel %vm4419_vm2, %v1367_v62, %v1368_v22  ;;  %v5382_v33 = vpop.permute.xlu1 %2778  ;;  %v1428_v26 = vrot.slane %v5265_v29, 5  ;;  %v5439_v60 = vld [vmem:[%s4388_s19 + $0x58] sm:$0xf]  ;;  %4196 = vmatprep.subr.msk.bf16.mxu0 %vm3147_vm15, %v4265_v28 }
  0xdc   : > { %2434 = vrot.lane.b32.xlu0 %v3864_v5, %s4339_s23  ;;  %v3879_v36 = vcombine.low %v1366_v0, %v1369_v48  ;;  %v1431_v40 = vrot.slane %v5314_v27, 5  ;;  %v3704_v34 = vrot.slane %v3688_v38, 9  ;;  %v3024_v59 = vsel %vm3006_vm12, %v2991_v41, %v5268_v46  ;;  %v5459_v5 = vld [vmem:[%s4388_s19 + $0xb0] sm:$0x1]  ;;  %4197 = vmatprep.subr.msk.bf16.mxu1 %vm3147_vm15, %v4265_v28 }
  0xdd   : > { %v3008_v37 = vsel %vm3006_vm12, %v2975_v51, %v5283_v53  ;;  %v1372_v47 = vrot.slane %v5273_v49, 5  ;;  %v1375_v57 = vrot.slane %v5327_v16, 5  ;;  %v1429_v29 = vsel %vm4419_vm2, %v3712_v23, %v1428_v26 }
  0xde   : > { %v1430_v27 = vrot.slane %v1428_v26, 4  ;;  %v1785_v14 = vshrl.u32 %v5380_v52, 16  ;;  %v1788_v46 = vshll.u32 %v5380_v52, 16  ;;  %v5401_v41 = vpop.permute.xlu0 %2762  ;;  %v5408_v16 = vsel %vm3006_vm12, %v2993_v63, %v5295_v39 }
  0xdf   : > { %2528 = vrot.lane.b32.xlu1 %v3887_v11, %s4340_s24  ;;  %v1373_v49 = vsel %vm4419_vm2, %v3704_v34, %v1372_v47  ;;  %v1374_v53 = vrot.slane %v1372_v47, 4  ;;  %v5412_v3 = vsel %vm3006_vm12, %v2977_v8, %v5311_v45  ;;  %v1798_v32 = vshrl.u32 %v5394_v24, 16  ;;  %v5488_v47 = vld [vmem:[%s4388_s19 + $0x7c] sm:$0xf] }
  0xe0   : > { %2512 = vrot.lane.b32.xlu0 %v3879_v36, %s4340_s24  ;;  %v1432_v50 = vsel %vm4419_vm2, %v1430_v27, %v1431_v40  ;;  %v3903_v39 = vcombine.low %v5380_v52, %v5394_v24  ;;  %v1593_v9 = vshrl.u32 %v3723_v56, 16  ;;  %v1787_v51 = vrot.slane %v1785_v14, 4  ;;  %v5480_v40 = vld [vmem:[%s4388_s19 + $0x50] sm:$0x1] }
  0xe1   : > { %v3888_v10 = vcombine.low %v1429_v29, %v1432_v50  ;;  %v1376_v45 = vsel %vm4419_vm2, %v1374_v53, %v1375_v57  ;;  %v1596_v7 = vshll.u32 %v3723_v56, 16  ;;  %v1790_v20 = vrot.slane %v1788_v46, 5  ;;  %v5496_v29 = vld [vmem:[%s4388_s19 + $0x1c] sm:$0xf] }
  0xe2   : > { %v3880_v17 = vcombine.low %v1373_v49, %v1376_v45  ;;  %v1606_v12 = vshrl.u32 %v5415_v18, 16  ;;  %v1809_v25 = vshrl.u32 %v5418_v58, 16  ;;  %v1595_v1 = vrot.slane %v1593_v9, 4 }
  0xe3   : > { %v5434_v4 = vpop.permute.xlu1 %2190  ;;  %2530 = vrot.lane.b32.xlu1 %v3888_v10, %s4340_s24  ;;  %v1598_v54 = vrot.slane %v1596_v7, 5  ;;  %v3895_v31 = vcombine.low %v3723_v56, %v5415_v18  ;;  %v1812_v35 = vshll.u32 %v5418_v58, 16  ;;  %v1822_v44 = vshrl.u32 %v5429_v2, 16  ;;  %v5493_v56 = vld [vmem:[%s4388_s19 + $0x18] sm:$0xf] }
  0xe4   : > { %2514 = vrot.lane.b32.xlu0 %v3880_v17, %s4340_s24  ;;  %v3904_v13 = vcombine.low %v5418_v58, %v5429_v2  ;;  %v1617_v22 = vshrl.u32 %v5432_v15, 16  ;;  %v1620_v55 = vshll.u32 %v5432_v15, 16  ;;  %v5455_v62 = vrot.slane %v1809_v25, 4 }
  0xe5   : > { %v1630_v38 = vshrl.u32 %v5439_v60, 16  ;;  %v1814_v23 = vrot.slane %v1812_v35, 5  ;;  %v3896_v63 = vcombine.low %v5432_v15, %v5439_v60  ;;  %v3041_v8 = vsel %vm3039_vm13, %v3008_v37, %v5334_v42  ;;  %v5485_v37 = vld [vmem:[%s4388_s19 + $0x78] sm:$0xf] }
  0xe6   : > { %v5453_v0 = vpop.permute.xlu0 %2174  ;;  %v3057_v11 = vsel %vm3039_vm13, %v3024_v59, %v5322_v43  ;;  %v5470_v48 = vrot.slane %v1617_v22, 4  ;;  %v5472_v52 = vrot.slane %v1620_v55, 5  ;;  %4154 = vmatprep.mubr.msk.bf16.mxu0 %vm3114_vm14, %v3041_v8  ;;  %v1791_v36 = vor.u32 %v1790_v20, %v1787_v51  ;;  %v5512_v51 = vld [vmem:[%s4388_s19 + $0xbc] sm:$0x1] }
  0xe7   : > { %v5461_v6 = vpop.permute.xlu1 %2268  ;;  %2624 = vrot.lane.b32.xlu1 %v3903_v39, %s4341_s25  ;;  %4170 = vmatprep.mubr.msk.bf16.mxu1 %vm3114_vm14, %v3057_v11  ;;  %v1794_v42 = vshll.u32 %v5394_v24, 16  ;;  %v1800_v43 = vrot.slane %v1798_v32, 4  ;;  %v1804_v26 = vshll.u32 %v5459_v5, 16  ;;  %v1599_v34 = vor.u32 %v1598_v54, %v1595_v1  ;;  %v5532_v55 = vld [vmem:[%s4388_s19 + $0x5c] sm:$0x1] }
  0xe8   : > { %2608 = vrot.lane.b32.xlu0 %v3895_v31, %s4341_s25  ;;  %v3805_v57 = vcombine.low %v5485_v37, %v5488_v47  ;;  %v3797_v27 = vcombine.low %v5493_v56, %v5496_v29  ;;  %v1792_v14 = vrot.slane %v1791_v36, 4  ;;  %v1602_v46 = vshll.u32 %v5415_v18, 16  ;;  %v3775_v11 = vld [vmem:[%s4388_s19 + $0xa8] sm:$0xe] }
  0xe9   : > { %v1796_v53 = vrot.slane %v1794_v42, 5  ;;  %v1806_v58 = vrot.slane %v1804_v26, 5  ;;  %v1600_v50 = vrot.slane %v1599_v34, 4  ;;  %v1608_v32 = vrot.slane %v1606_v12, 4  ;;  %v4297_v29 = vld [vmem:[%s4388_s19 + $0x88] sm:$0xf] }
  0xea   : > { %v5482_v59 = vpop.permute.xlu0 %2252  ;;  %v1604_v39 = vrot.slane %v1602_v46, 5  ;;  %v1612_v9 = vshll.u32 %v5480_v40, 16  ;;  %v3149_v10 = vsel %vm3147_vm15, %v4265_v28, 0  ;;  %v3059_v45 = vsel %vm3039_vm13, %v5408_v16, %v5382_v33 }
  0xeb   : > { %v5503_v49 = vpop.permute.xlu1 %2270  ;;  %2626 = vrot.lane.b32.xlu1 %v3904_v13, %s4341_s25  ;;  %v1797_v7 = vsel %vm4477_vm5, %v1792_v14, %v1796_v53  ;;  %v1801_v15 = vor.u32 %v1800_v43, %v1796_v53  ;;  %4153 = vmatpush3.bf16.msra.mxu0 %v3149_v10  ;;  %v3043_v17 = vsel %vm3039_vm13, %v5412_v3, %v5401_v41  ;;  %v1818_v20 = vshll.u32 %v5429_v2, 16 }
  0xec   : > { %2610 = vrot.lane.b32.xlu0 %v3896_v63, %s4341_s25  ;;  %v1605_v33 = vsel %vm4477_vm5, %v1600_v50, %v1604_v39  ;;  %v1609_v16 = vor.u32 %v1608_v32, %v1604_v39  ;;  %v1614_v25 = vrot.slane %v1612_v9, 5  ;;  %4195 = vmatpush3.bf16.msra.mxu1 %v3149_v10  ;;  %v1815_v1 = vor.u32 %v1814_v23, %v5455_v62  ;;  %v3767_v50 = vld [vmem:[%s4388_s19 + $0x48] sm:$0xe] }
  0xed   : > { %v1802_v31 = vrot.slane %v1801_v15, 4  ;;  %v1820_v35 = vrot.slane %v1818_v20, 5  ;;  %v1824_v41 = vrot.slane %v1822_v44, 4  ;;  %v1828_v3 = vshll.u32 %v5512_v51, 16 }
  0xee   : > { %v5521_v12 = vpop.permute.xlu0 %2254  ;;  %v1610_v13 = vrot.slane %v1609_v16, 4  ;;  %v1816_v22 = vrot.slane %v1815_v1, 4  ;;  %v1623_v28 = vor.u32 %v5472_v52, %v5470_v48  ;;  %v1626_v63 = vshll.u32 %v5439_v60, 16  ;;  %4155 = vmatmul.mubr.msk.bf16.vlgmr.msra.gmra.mrb[0].mxu0 %vm3114_vm14, %v3043_v17  ;;  %v4299_v16 = vld [vmem:[%s4388_s19 + $0x28] sm:$0xf] }
  0xef   : > { %v5526_v54 = vpop.permute.xlu1 %2364  ;;  %v1807_v62 = vsel %vm4477_vm5, %v1802_v31, %v1806_v58  ;;  %v1825_v23 = vor.u32 %v1824_v41, %v1820_v35  ;;  %v1830_v8 = vrot.slane %v1828_v3, 5  ;;  %v1632_v44 = vrot.slane %v1630_v38, 4  ;;  %4171 = vmatmul.mubr.msk.bf16.vlgmr.msra.gmra.mrb[0].mxu1 %vm3114_vm14, %v3059_v45  ;;  %v5598_v3 = vld [vmem:[%s4388_s19 + $0xb0] sm:$0x1] }
  0xf0   : > { %v3919_v42 = vcombine.low %v1797_v7, %v1807_v62  ;;  %v1615_v48 = vsel %vm4477_vm5, %v1610_v13, %v1614_v25  ;;  %v1821_v52 = vsel %vm4477_vm5, %v1816_v22, %v1820_v35  ;;  %v1624_v43 = vrot.slane %v1623_v28, 4  ;;  %v5591_v35 = vld [vmem:[%s4388_s19 + $0xac] sm:$0xf]  ;;  %v236_v28 = vld [vmem:[%s4388_s19 + $0x48] sm:$0xf] }
  0xf1   : > { %v3911_v34 = vcombine.low %v1605_v33, %v1615_v48  ;;  %v1826_v14 = vrot.slane %v1825_v23, 4  ;;  %v1628_v46 = vrot.slane %v1626_v63, 5  ;;  %v1636_v38 = vshll.u32 %v5532_v55, 16  ;;  %v4298_v33 = vld [vmem:[%s4388_s19 + $0x24] sm:$0xf] }
  0xf2   : > { %v5544_v36 = vpop.permute.xlu0 %2348  ;;  %2704 = vrot.lane.b32.xlu1 %v3919_v42, %s4342_s26  ;;  %v3791_v53 = vrot.slane %v3775_v11, 9  ;;  %v2030_v58 = vrot.slane %v5394_v24, 5  ;;  %v5561_v32 = vsel %vm2792_vm6, %v3805_v57, %v5349_v19  ;;  %v5573_v19 = vsel %vm2792_vm6, %v3797_v27, %v5361_v61  ;;  %v252_v57 = vld [vmem:[%s4388_s19 + $0xa8] sm:$0xf]  ;;  %v4296_v61 = vld [vmem:[%s4388_s19 + $0x84] sm:$0xf] }
  0xf3   : > { %v5550_v26 = vpop.permute.xlu1 %2366  ;;  %2688 = vrot.lane.b32.xlu0 %v3911_v34, %s4342_s26  ;;  %v1831_v39 = vsel %vm4477_vm5, %v1826_v14, %v1830_v8  ;;  %v1633_v9 = vor.u32 %v1632_v44, %v1628_v46  ;;  %v1638_v10 = vrot.slane %v1636_v38, 5  ;;  %v1629_v37 = vsel %vm4477_vm5, %v1624_v43, %v1628_v46  ;;  %v5608_v48 = vld [vmem:[%s4388_s19 + $0x4c] sm:$0xf]  ;;  %v5622_v46 = vld [vmem:[%s4388_s19 + $0x50] sm:$0x1] }
  0xf4   : > { %v3920_v24 = vcombine.low %v1821_v52, %v1831_v39  ;;  %v2031_v47 = vsel %vm4419_vm2, %v3791_v53, %v2030_v58  ;;  %v2032_v15 = vrot.slane %v2030_v58, 4  ;;  %v2033_v17 = vrot.slane %v5459_v5, 5 }
  0xf5   : > { %v1634_v7 = vrot.slane %v1633_v9, 4  ;;  %v3783_v20 = vrot.slane %v3767_v50, 9  ;;  %v3806_v27 = vcombine.low %v4296_v61, %v4297_v29  ;;  %v3798_v25 = vcombine.low %v4298_v33, %v4299_v16  ;;  %v3768_v16 = vld [vmem:[%s4388_s19 + $0x54] sm:$0xe] }
  0xf6   : > { %v5566_v45 = vpop.permute.xlu0 %2350  ;;  %2706 = vrot.lane.b32.xlu1 %v3920_v24, %s4342_s26  ;;  %v1974_v1 = vrot.slane %v5415_v18, 5  ;;  %v1977_v31 = vrot.slane %v5480_v40, 5  ;;  %v2034_v41 = vsel %vm4419_vm2, %v2032_v15, %v2033_v17  ;;  %v612_v13 = vshrl.u32 %v252_v57, 16  ;;  %v3776_v17 = vld [vmem:[%s4388_s19 + $0xb4] sm:$0xe] }
  0xf7   : > { %v1639_v5 = vsel %vm4477_vm5, %v1634_v7, %v1638_v10  ;;  %v615_v22 = vshll.u32 %v252_v57, 16  ;;  %v3935_v62 = vcombine.low %v2031_v47, %v2034_v41  ;;  %v621_v11 = vshll.u32 %v5591_v35, 16 }
  0xf8   : > { %v5581_v56 = vpop.permute.xlu1 %2444  ;;  %v3912_v18 = vcombine.low %v1629_v37, %v1639_v5  ;;  %v1975_v40 = vsel %vm4419_vm2, %v3783_v20, %v1974_v1  ;;  %v1976_v23 = vrot.slane %v1974_v1, 4  ;;  %v614_v8 = vrot.slane %v612_v13, 4 }
  0xf9   : > { %v617_v44 = vrot.slane %v615_v22, 5  ;;  %v625_v42 = vshrl.u32 %v5591_v35, 16  ;;  %v5615_v43 = vsel %vm2792_vm6, %v3806_v27, %v5434_v4  ;;  %v631_v14 = vshll.u32 %v5598_v3, 16 }
  0xfa   : > { %v5601_v63 = vpop.permute.xlu0 %2428  ;;  %2690 = vrot.lane.b32.xlu0 %v3912_v18, %s4342_s26  ;;  %2784 = vrot.lane.b32.xlu1 %v3935_v62, %s4343_s27  ;;  %v1978_v34 = vsel %vm4419_vm2, %v1976_v23, %v1977_v31  ;;  %v420_v38 = vshrl.u32 %v236_v28, 16  ;;  %v623_v50 = vrot.slane %v621_v11, 5  ;;  %v423_v24 = vshll.u32 %v236_v28, 16  ;;  %v5657_v18 = vld [vmem:[%s4388_s19 + $0xb4] sm:$0xf] }
  0xfb   : > { %v3927_v53 = vcombine.low %v1975_v40, %v1978_v34  ;;  %v618_v58 = vor.u32 %v617_v44, %v614_v8  ;;  %v627_v39 = vrot.slane %v625_v42, 4  ;;  %v633_v4 = vrot.slane %v631_v14, 5  ;;  %v5667_v34 = vld [vmem:[%s4388_s19 + $0xb8] sm:$0xf] }
  0xfc   : > { %v5610_v52 = vpop.permute.xlu1 %2446  ;;  %v422_v10 = vrot.slane %v420_v38, 4  ;;  %v429_v37 = vshll.u32 %v5608_v48, 16  ;;  %v433_v7 = vshrl.u32 %v5608_v48, 16  ;;  %v439_v15 = vshll.u32 %v5622_v46, 16 }
  0xfd   : > { %v619_v47 = vrot.slane %v618_v58, 4  ;;  %v628_v57 = vor.u32 %v627_v39, %v623_v50  ;;  %v5634_v61 = vsel %vm2792_vm6, %v3798_v25, %v5453_v0  ;;  %v5640_v29 = vsel %vm2841_vm7, %v5561_v32, %v5461_v6 }
  0xfe   : > { %v5624_v9 = vpop.permute.xlu0 %2430  ;;  %2768 = vrot.lane.b32.xlu0 %v3927_v53, %s4343_s27  ;;  %v425_v27 = vrot.slane %v423_v24, 5  ;;  %v431_v33 = vrot.slane %v429_v37, 5  ;;  %v5646_v1 = vsel %vm2841_vm7, %v5573_v19, %v5482_v59  ;;  %v435_v31 = vrot.slane %v433_v7, 4 }
  0xff   : > { %v624_v0 = vsel %vm4477_vm5, %v619_v47, %v623_v50  ;;  %v629_v25 = vrot.slane %v628_v57, 4  ;;  %v441_v13 = vrot.slane %v439_v15, 5  ;;  %v3792_v6 = vrot.slane %v3776_v17, 9  ;;  %v5678_v50 = vld [vmem:[%s4388_s19 + $0xbc] sm:$0x1] }
 0x100   : > { %v5630_v20 = vpop.permute.xlu1 %2524  ;;  %v426_v41 = vor.u32 %v425_v27, %v422_v10  ;;  %v2037_v32 = vrot.slane %v5429_v2, 5  ;;  %v436_v28 = vor.u32 %v435_v31, %v431_v33  ;;  %v2040_v59 = vrot.slane %v5512_v51, 5  ;;  %v5693_v17 = vld [vmem:[%s4388_s19 + $0x58] sm:$0xf] }
 0x101   : > { %v634_v22 = vsel %vm4477_vm5, %v629_v25, %v633_v4  ;;  %v3784_v19 = vrot.slane %v3768_v16, 9  ;;  %v829_v2 = vrot.slane %v5598_v3, 5  ;;  %v1981_v42 = vrot.slane %v5439_v60, 5 }
 0x102   : > { %v5650_v5 = vpop.permute.xlu0 %2508  ;;  %v3825_v40 = vcombine.low %v624_v0, %v634_v22  ;;  %v427_v23 = vrot.slane %v426_v41, 4  ;;  %v2038_v8 = vsel %vm4419_vm2, %v3792_v6, %v2037_v32  ;;  %v2039_v44 = vrot.slane %v2037_v32, 4  ;;  %v5700_v0 = vld [vmem:[%s4388_s19 + $0x5c] sm:$0x1] }
 0x103   : > { %v437_v11 = vrot.slane %v436_v28, 4  ;;  %v1984_v51 = vrot.slane %v5532_v55, 5  ;;  %v773_v53 = vrot.slane %v5622_v46, 5  ;;  %v636_v60 = vshrl.u32 %v5657_v18, 16  ;;  %v5682_v55 = vld [vmem:[%s4388_s19 + $0x54] sm:$0xf] }
 0x104   : > { %v5659_v62 = vpop.permute.xlu1 %2526  ;;  %2196 = vrot.lane.b32.xlu1 %v3825_v40, %s4338_s22  ;;  %v432_v38 = vsel %vm4477_vm5, %v427_v23, %v431_v33  ;;  %v2041_v58 = vsel %vm4419_vm2, %v2039_v44, %v2040_v59  ;;  %v1982_v10 = vsel %vm4419_vm2, %v3784_v19, %v1981_v42  ;;  %v1983_v24 = vrot.slane %v1981_v42, 4  ;;  %v673_v40 = vld [vmem:[%s4388_s19 + $0xa8] sm:$0xe] }
 0x105   : > { %v442_v39 = vsel %vm4477_vm5, %v437_v11, %v441_v13  ;;  %v3936_v4 = vcombine.low %v2038_v8, %v2041_v58  ;;  %v638_v57 = vrot.slane %v636_v60, 4  ;;  %v639_v7 = vshll.u32 %v5657_v18, 16 }
 0x106   : > { %v5669_v14 = vpop.permute.xlu0 %2510  ;;  %v3817_v47 = vcombine.low %v432_v38, %v442_v39  ;;  %v645_v15 = vshll.u32 %v5667_v34, 16  ;;  %v1985_v27 = vsel %vm4419_vm2, %v1983_v24, %v1984_v51  ;;  %v649_v33 = vshrl.u32 %v5667_v34, 16  ;;  %v665_v51 = vld [vmem:[%s4388_s19 + $0x48] sm:$0xe] }
 0x107   : > { %v655_v16 = vshll.u32 %v5678_v50, 16  ;;  %v444_v25 = vshrl.u32 %v5682_v55, 16  ;;  %v3928_v41 = vcombine.low %v1982_v10, %v1985_v27  ;;  %v641_v13 = vrot.slane %v639_v7, 5 }
 0x108   : > { %v5688_v37 = vpop.permute.xlu1 %2620  ;;  %2180 = vrot.lane.b32.xlu0 %v3817_v47, %s4338_s22  ;;  %2786 = vrot.lane.b32.xlu1 %v3936_v4, %s4343_s27  ;;  %v647_v6 = vrot.slane %v645_v15, 5  ;;  %v447_v32 = vshll.u32 %v5682_v55, 16  ;;  %v2865_v22 = vsel %vm2841_vm7, %v5615_v43, %v5503_v49  ;;  %v651_v28 = vrot.slane %v649_v33, 4 }
 0x109   : > { %v446_v59 = vrot.slane %v444_v25, 4  ;;  %v453_v19 = vshll.u32 %v5693_v17, 16  ;;  %v642_v8 = vor.u32 %v641_v13, %v638_v57  ;;  %v457_v11 = vshrl.u32 %v5693_v17, 16 }
 0x10a   : > { %v5703_v31 = vpop.permute.xlu0 %2604  ;;  %v449_v44 = vrot.slane %v447_v32, 5  ;;  %v463_v42 = vshll.u32 %v5700_v0, 16  ;;  %v2849_v38 = vsel %vm2841_vm7, %v5634_v61, %v5521_v12  ;;  %v652_v58 = vor.u32 %v651_v28, %v647_v6 }
 0x10b   : > { %v657_v49 = vrot.slane %v655_v16, 5  ;;  %v455_v43 = vrot.slane %v453_v19, 5  ;;  %v643_v60 = vrot.slane %v642_v8, 4  ;;  %v459_v4 = vrot.slane %v457_v11, 4  ;;  %v674_v16 = vld [vmem:[%s4388_s19 + $0xb4] sm:$0xe] }
 0x10c   : > { %v5713_v23 = vpop.permute.xlu1 %2622  ;;  %2770 = vrot.lane.b32.xlu0 %v3928_v41, %s4343_s27  ;;  %v450_v39 = vor.u32 %v449_v44, %v446_v59  ;;  %v465_v10 = vrot.slane %v463_v42, 5  ;;  %v653_v47 = vrot.slane %v652_v58, 4  ;;  %v3633_v57 = vrot.slane %v673_v40, 9 }
 0x10d   : > { %v826_v7 = vrot.slane %v5591_v35, 5  ;;  %v3625_v15 = vrot.slane %v665_v51, 9  ;;  %v648_v12 = vsel %vm4477_vm5, %v643_v60, %v647_v6  ;;  %v460_v27 = vor.u32 %v459_v4, %v455_v43  ;;  %v5769_v4 = vld [vmem:[%s4388_s19 + $0x54] sm:$0xf] }
 0x10e   : > { %v5722_v24 = vpop.permute.xlu0 %2606  ;;  %v451_v61 = vrot.slane %v450_v39, 4  ;;  %v770_v33 = vrot.slane %v5608_v48, 5  ;;  %v2896_v25 = vsel %vm2874_vm8, %v5640_v29, %v5526_v54  ;;  %v658_v41 = vsel %vm4477_vm5, %v653_v47, %v657_v49  ;;  %v666_v54 = vld [vmem:[%s4388_s19 + $0x54] sm:$0xe] }
 0x10f   : > { %v827_v35 = vsel %vm4419_vm2, %v3633_v57, %v826_v7  ;;  %v828_v13 = vrot.slane %v826_v7, 4  ;;  %v2880_v6 = vsel %vm2874_vm8, %v5646_v1, %v5544_v36  ;;  %v3826_v28 = vcombine.low %v648_v12, %v658_v41  ;;  %v3663_v49 = vld [vmem:[%s4388_s19 + $0xb4] sm:$0xf]  ;;  %v5791_v12 = vld [vmem:[%s4388_s19 + $0x58] sm:$0xf] }
 0x110   : > { %v456_v48 = vsel %vm4477_vm5, %v451_v61, %v455_v43  ;;  %v461_v59 = vrot.slane %v460_v27, 4  ;;  %v771_v19 = vsel %vm4419_vm2, %v3625_v15, %v770_v33  ;;  %v772_v40 = vrot.slane %v770_v33, 4  ;;  %v3665_v27 = vld [vmem:[%s4388_s19 + $0xc0] sm:$0xf] }
 0x111   : > { %v5736_v32 = vpop.permute.xlu1 %2700  ;;  %v830_v29 = vsel %vm4419_vm2, %v828_v13, %v829_v2  ;;  %v3634_v8 = vrot.slane %v674_v16, 9  ;;  %2198 = vrot.lane.b32.xlu1 %v3826_v28, %s4338_s22  ;;  %v833_v44 = vrot.slane %v5667_v34, 5  ;;  %v836_v11 = vrot.slane %v5678_v50, 5 }
 0x112   : > { %v466_v36 = vsel %vm4477_vm5, %v461_v59, %v465_v10  ;;  %v3841_v1 = vcombine.low %v827_v35, %v830_v29  ;;  %v5755_v3 = vpop.permute.xlu0 %2684  ;;  %v774_v42 = vsel %vm4419_vm2, %v772_v40, %v773_v53  ;;  %v3626_v51 = vrot.slane %v666_v54, 9 }
 0x113   : > { %v3818_v2 = vcombine.low %v456_v48, %v466_v36  ;;  %v777_v58 = vrot.slane %v5693_v17, 5  ;;  %v2898_v43 = vsel %vm2874_vm8, %v2865_v22, %v5550_v26  ;;  %v834_v60 = vsel %vm4419_vm2, %v3634_v8, %v833_v44  ;;  %v5777_v22 = vld [vmem:[%s4388_s19 + $0xb8] sm:$0xf]  ;;  %v3649_v48 = vld [vmem:[%s4388_s19 + $0x60] sm:$0xf] }
 0x114   : > { %v835_v50 = vrot.slane %v833_v44, 4  ;;  %v780_v39 = vrot.slane %v5700_v0, 5  ;;  %v2882_v46 = vsel %vm2874_vm8, %v2849_v38, %v5566_v45  ;;  %v3833_v53 = vcombine.low %v771_v19, %v774_v42  ;;  %v5814_v19 = vld [vmem:[%s4388_s19 + $0x64] sm:$0xf]  ;;  %v5827_v44 = vld [vmem:[%s4388_s19 + $0xbc] sm:$0x1] }
 0x115   : > { %2182 = vrot.lane.b32.xlu0 %v3818_v2, %s4338_s22  ;;  %v2929_v10 = vsel %vm2907_vm9, %v2896_v25, %v5581_v56  ;;  %v779_v26 = vrot.slane %v777_v58, 4  ;;  %v5779_v47 = vpop.permute.xlu1 %2702  ;;  %2276 = vrot.lane.b32.xlu1 %v3841_v1, %s4337_s21  ;;  %v778_v57 = vsel %vm4419_vm2, %v3626_v51, %v777_v58  ;;  %v1224_v7 = vshrl.u32 %v3663_v49, 16 }
 0x116   : > { %v837_v0 = vsel %vm4419_vm2, %v835_v50, %v836_v11  ;;  %v1227_v45 = vshll.u32 %v3663_v49, 16  ;;  %v2913_v38 = vsel %vm2907_vm9, %v2880_v6, %v5601_v63  ;;  %v1032_v61 = vshrl.u32 %v5769_v4, 16 }
 0x117   : > { %v3842_v56 = vcombine.low %v834_v60, %v837_v0  ;;  %v781_v15 = vsel %vm4419_vm2, %v779_v26, %v780_v39  ;;  %v2931_v33 = vsel %vm2907_vm9, %v2898_v43, %v5610_v52  ;;  %v5799_v16 = vsel %vm2907_vm9, %v2882_v46, %v5624_v9  ;;  %v5803_v41 = vpop.permute.xlu0 %2686  ;;  %v5808_v52 = vld [vmem:[%s4388_s19 + $0xc4] sm:$0xf] }
 0x118   : > { %v1237_v63 = vshrl.u32 %v5777_v22, 16  ;;  %v1035_v25 = vshll.u32 %v5769_v4, 16  ;;  %v3834_v35 = vcombine.low %v778_v57, %v781_v15  ;;  %v1226_v13 = vrot.slane %v1224_v7, 4  ;;  %v5847_v15 = vld [vmem:[%s4388_s19 + $0xc8] sm:$0x1] }
 0x119   : > { %2260 = vrot.lane.b32.xlu0 %v3833_v53, %s4337_s21  ;;  %v1229_v6 = vrot.slane %v1227_v45, 5  ;;  %v3857_v28 = vcombine.low %v3663_v49, %v5777_v22  ;;  %2278 = vrot.lane.b32.xlu1 %v3842_v56, %s4337_s21  ;;  %v1034_v9 = vrot.slane %v1032_v61, 4  ;;  %v1045_v59 = vshrl.u32 %v5791_v12, 16  ;;  %v5829_v11 = vpop.permute.xlu1 %2780  ;;  %v5834_v49 = vld [vmem:[%s4388_s19 + $0x5c] sm:$0x1] }
 0x11a   : > { %v1248_v54 = vshrl.u32 %v3665_v27, 16  ;;  %v1251_v29 = vshll.u32 %v3665_v27, 16  ;;  %v1037_v40 = vrot.slane %v1035_v25, 5  ;;  %v3849_v8 = vcombine.low %v5769_v4, %v5791_v12 }
 0x11b   : > { %v5820_v36 = vsel %vm2940_vm10, %v2929_v10, %v5630_v20  ;;  %v5824_v1 = vsel %vm2940_vm10, %v2913_v38, %v5650_v5  ;;  %v1261_v2 = vshrl.u32 %v5808_v52, 16  ;;  %v3858_v42 = vcombine.low %v3665_v27, %v5808_v52  ;;  %v5842_v53 = vpop.permute.xlu0 %2764 }
 0x11c   : > { %v1056_v51 = vshrl.u32 %v3649_v48, 16  ;;  %v1059_v58 = vshll.u32 %v3649_v48, 16  ;;  %v1250_v20 = vrot.slane %v1248_v54, 4  ;;  %v1253_v43 = vrot.slane %v1251_v29, 5 }
 0x11d   : > { %2262 = vrot.lane.b32.xlu0 %v3834_v35, %s4337_s21  ;;  %v1069_v60 = vshrl.u32 %v5814_v19, 16  ;;  %v3850_v5 = vcombine.low %v3649_v48, %v5814_v19  ;;  %2372 = vrot.lane.b32.xlu1 %v3857_v28, %s4336_s20  ;;  %v1230_v50 = vor.u32 %v1229_v6, %v1226_v13  ;;  %v1233_v39 = vshll.u32 %v5777_v22, 16 }
 0x11e   : > { %v1239_v4 = vrot.slane %v1237_v63, 4  ;;  %v1243_v46 = vshll.u32 %v5827_v44, 16  ;;  %v1038_v10 = vor.u32 %v1037_v40, %v1034_v9  ;;  %v1041_v26 = vshll.u32 %v5791_v12, 16 }
 0x11f   : > { %v1047_v0 = vrot.slane %v1045_v59, 4  ;;  %v1051_v57 = vshll.u32 %v5834_v49, 16  ;;  %v1058_v7 = vrot.slane %v1056_v51, 4  ;;  %v1061_v45 = vrot.slane %v1059_v58, 5 }
 0x120   : > { %v1231_v38 = vrot.slane %v1230_v50, 4  ;;  %v1235_v56 = vrot.slane %v1233_v39, 5  ;;  %v5852_v61 = vsel %vm2940_vm10, %v2931_v33, %v5659_v62  ;;  %v1245_v27 = vrot.slane %v1243_v46, 5 }
 0x121   : > { %2356 = vrot.lane.b32.xlu0 %v3849_v8, %s4336_s20  ;;  %v1039_v63 = vrot.slane %v1038_v10, 4  ;;  %v1043_v25 = vrot.slane %v1041_v26, 5  ;;  %v5854_v35 = vpop.permute.xlu1 %2192  ;;  %2374 = vrot.lane.b32.xlu1 %v3858_v42, %s4336_s20  ;;  %v1053_v6 = vrot.slane %v1051_v57, 5  ;;  %v1254_v28 = vor.u32 %v1253_v43, %v1250_v20  ;;  %v5862_v8 = vld [vmem:[%s4388_s19 + $0x68] sm:$0x1] }
 0x122   : > { %v1240_v13 = vor.u32 %v1239_v4, %v1235_v56  ;;  %v1257_v48 = vshll.u32 %v5808_v52, 16  ;;  %v1236_v9 = vsel %vm4477_vm5, %v1231_v38, %v1235_v56  ;;  %v1263_v54 = vrot.slane %v1261_v2, 4  ;;  %v3697_v10 = vld [vmem:[%s4388_s19 + $0xb4] sm:$0xe] }
 0x123   : > { %v1048_v59 = vor.u32 %v1047_v0, %v1043_v25  ;;  %v1267_v62 = vshll.u32 %v5847_v15, 16  ;;  %v1255_v29 = vrot.slane %v1254_v28, 4  ;;  %v1062_v51 = vor.u32 %v1061_v45, %v1058_v7  ;;  %v3689_v7 = vld [vmem:[%s4388_s19 + $0x54] sm:$0xe] }
 0x124   : > { %v1241_v33 = vrot.slane %v1240_v13, 4  ;;  %v1259_v40 = vrot.slane %v1257_v48, 5  ;;  %v5864_v42 = vpop.permute.xlu0 %2176  ;;  %v1044_v58 = vsel %vm4477_vm5, %v1039_v63, %v1043_v25  ;;  %v1065_v2 = vshll.u32 %v5814_v19, 16 }
 0x125   : > { %2358 = vrot.lane.b32.xlu0 %v3850_v5, %s4336_s20  ;;  %v1049_v20 = vrot.slane %v1048_v59, 4  ;;  %v1071_v43 = vrot.slane %v1069_v60, 4  ;;  %v1269_v4 = vrot.slane %v1267_v62, 5  ;;  %v1063_v46 = vrot.slane %v1062_v51, 4  ;;  %v5877_v45 = vpop.permute.xlu1 %2782 }
 0x126   : > { %v1246_v50 = vsel %vm4477_vm5, %v1241_v33, %v1245_v27  ;;  %v1264_v39 = vor.u32 %v1263_v54, %v1259_v40  ;;  %v1067_v57 = vrot.slane %v1065_v2, 5  ;;  %v1075_v5 = vshll.u32 %v5862_v8, 16 }
 0x127   : > { %v3873_v26 = vcombine.low %v1236_v9, %v1246_v50  ;;  %v1054_v0 = vsel %vm4477_vm5, %v1049_v20, %v1053_v6  ;;  %v2948_v60 = vsel %vm2940_vm10, %v5799_v16, %v5669_v14  ;;  %v1260_v56 = vsel %vm4477_vm5, %v1255_v29, %v1259_v40  ;;  %v3698_v9 = vld [vmem:[%s4388_s19 + $0xc0] sm:$0xe] }
 0x128   : > { %v3865_v38 = vcombine.low %v1044_v58, %v1054_v0  ;;  %v1265_v27 = vrot.slane %v1264_v39, 4  ;;  %v1068_v63 = vsel %vm4477_vm5, %v1063_v46, %v1067_v57  ;;  %v1072_v25 = vor.u32 %v1071_v43, %v1067_v57  ;;  %v5893_v59 = vpop.permute.xlu0 %2766  ;;  %v3690_v58 = vld [vmem:[%s4388_s19 + $0x60] sm:$0xe] }
 0x129   : > { %2452 = vrot.lane.b32.xlu1 %v3873_v26, %s4339_s23  ;;  %v1077_v13 = vrot.slane %v1075_v5, 5  ;;  %v3713_v6 = vrot.slane %v3697_v10, 9  ;;  %v1435_v14 = vrot.slane %v5777_v22, 5  ;;  %v1438_v16 = vrot.slane %v5827_v44, 5  ;;  %v3743_v10 = vld [vmem:[%s4388_s19 + $0xc0] sm:$0xf] }
 0x12a   : > { %2436 = vrot.lane.b32.xlu0 %v3865_v38, %s4339_s23  ;;  %v1270_v28 = vsel %vm4477_vm5, %v1265_v27, %v1269_v4  ;;  %v3705_v48 = vrot.slane %v3689_v7, 9  ;;  %v1073_v62 = vrot.slane %v1072_v25, 4  ;;  %v1379_v33 = vrot.slane %v5791_v12, 5  ;;  %v5926_v5 = vld [vmem:[%s4388_s19 + $0x60] sm:$0xf] }
 0x12b   : > { %v3874_v54 = vcombine.low %v1260_v56, %v1270_v28  ;;  %v1382_v29 = vrot.slane %v5834_v49, 5  ;;  %v2995_v40 = vsel %vm2973_vm11, %v5820_v36, %v5688_v37  ;;  %v2979_v22 = vsel %vm2973_vm11, %v5824_v1, %v5703_v31  ;;  %v5945_v25 = vld [vmem:[%s4388_s19 + $0xc4] sm:$0xf]  ;;  %v3745_v28 = vld [vmem:[%s4388_s19 + $0xcc] sm:$0xf] }
 0x12c   : > { %v1436_v44 = vsel %vm4419_vm2, %v3713_v6, %v1435_v14  ;;  %v1437_v51 = vrot.slane %v1435_v14, 4  ;;  %v1078_v12 = vsel %vm4477_vm5, %v1073_v62, %v1077_v13  ;;  %v1380_v49 = vsel %vm4419_vm2, %v3705_v48, %v1379_v33  ;;  %v5960_v48 = vld [vmem:[%s4388_s19 + $0x6c] sm:$0xf] }
 0x12d   : > { %2454 = vrot.lane.b32.xlu1 %v3874_v54, %s4339_s23  ;;  %v1381_v20 = vrot.slane %v1379_v33, 4  ;;  %v3714_v37 = vrot.slane %v3698_v9, 9  ;;  %v3866_v31 = vcombine.low %v1068_v63, %v1078_v12  ;;  %v1442_v2 = vrot.slane %v5808_v52, 5 }
 0x12e   : > { %v1439_v1 = vsel %vm4419_vm2, %v1437_v51, %v1438_v16  ;;  %v1445_v43 = vrot.slane %v5847_v15, 5  ;;  %v3706_v4 = vrot.slane %v3690_v58, 9  ;;  %v1386_v46 = vrot.slane %v5814_v19, 5  ;;  %v5979_v58 = vld [vmem:[%s4388_s19 + $0x70] sm:$0xf] }
 0x12f   : > { %v5911_v36 = vpop.permute.xlu1 %2194  ;;  %v3889_v50 = vcombine.low %v1436_v44, %v1439_v1  ;;  %v1383_v39 = vsel %vm4419_vm2, %v1381_v20, %v1382_v29  ;;  %2438 = vrot.lane.b32.xlu0 %v3866_v31, %s4339_s23  ;;  %v1443_v0 = vsel %vm4419_vm2, %v3714_v37, %v1442_v2  ;;  %v1444_v57 = vrot.slane %v1442_v2, 4  ;;  %v5968_v29 = vld [vmem:[%s4388_s19 + $0x64] sm:$0xf] }
 0x130   : > { %v3881_v26 = vcombine.low %v1380_v49, %v1383_v39  ;;  %v1389_v52 = vrot.slane %v5862_v8, 5  ;;  %v2997_v19 = vsel %vm2973_vm11, %v5852_v61, %v5713_v23  ;;  %v2981_v7 = vsel %vm2973_vm11, %v2948_v60, %v5722_v24 }
 0x131   : > { %2532 = vrot.lane.b32.xlu1 %v3889_v50, %s4340_s24  ;;  %v1387_v38 = vsel %vm4419_vm2, %v3706_v4, %v1386_v46  ;;  %v1388_v56 = vrot.slane %v1386_v46, 4  ;;  %v3028_v8 = vsel %vm3006_vm12, %v2995_v40, %v5736_v32  ;;  %v1446_v63 = vsel %vm4419_vm2, %v1444_v57, %v1445_v43 }
 0x132   : > { %v5928_v15 = vpop.permute.xlu0 %2178  ;;  %v1833_v23 = vshrl.u32 %v3743_v10, 16  ;;  %v1836_v61 = vshll.u32 %v3743_v10, 16  ;;  %v3012_v24 = vsel %vm3006_vm12, %v2979_v22, %v5755_v3  ;;  %v3890_v60 = vcombine.low %v1443_v0, %v1446_v63 }
 0x133   : > { %v5938_v27 = vpop.permute.xlu1 %2272  ;;  %v1390_v13 = vsel %vm4419_vm2, %v1388_v56, %v1389_v52  ;;  %v1641_v6 = vshrl.u32 %v5926_v5, 16  ;;  %2516 = vrot.lane.b32.xlu0 %v3881_v26, %s4340_s24  ;;  %v3030_v14 = vsel %vm3006_vm12, %v2997_v19, %v5779_v47  ;;  %v3014_v16 = vsel %vm3006_vm12, %v2981_v7, %v5803_v41  ;;  %v5973_v41 = vld [vmem:[%s4388_s19 + $0xd0] sm:$0xf] }
 0x134   : > { %v3882_v32 = vcombine.low %v1387_v38, %v1390_v13  ;;  %v1644_v3 = vshll.u32 %v5926_v5, 16  ;;  %v1835_v54 = vrot.slane %v1833_v23, 4  ;;  %v1846_v62 = vshrl.u32 %v5945_v25, 16 }
 0x135   : > { %2534 = vrot.lane.b32.xlu1 %v3890_v60, %s4340_s24  ;;  %v3905_v33 = vcombine.low %v3743_v10, %v5945_v25  ;;  %v3061_v47 = vsel %vm3039_vm13, %v3028_v8, %v5829_v11  ;;  %v1838_v40 = vrot.slane %v1836_v61, 5  ;;  %v3045_v22 = vsel %vm3039_vm13, %v3012_v24, %v5842_v53  ;;  %v5985_v11 = vld [vmem:[%s4388_s19 + $0xc8] sm:$0x1] }
 0x136   : > { %v5962_v9 = vpop.permute.xlu0 %2256  ;;  %v1857_v44 = vshrl.u32 %v3745_v28, 16  ;;  %v1860_v51 = vshll.u32 %v3745_v28, 16  ;;  %4174 = vmatprep.mubr.msk.bf16.mxu1 %vm3114_vm14, %v3061_v47  ;;  %v1643_v12 = vrot.slane %v1641_v6, 4  ;;  %v1646_v49 = vrot.slane %v1644_v3, 5  ;;  %4158 = vmatprep.mubr.msk.bf16.mxu0 %vm3114_vm14, %v3045_v22  ;;  %v6017_v3 = vld [vmem:[%s4388_s19 + $0xd4] sm:$0x1] }
 0x137   : > { %v1665_v20 = vshrl.u32 %v5960_v48, 16  ;;  %v1668_v37 = vshll.u32 %v5960_v48, 16  ;;  %2518 = vrot.lane.b32.xlu0 %v3882_v32, %s4340_s24  ;;  %v1654_v53 = vshrl.u32 %v5968_v29, 16  ;;  %v3897_v1 = vcombine.low %v5926_v5, %v5968_v29  ;;  %v6004_v5 = vld [vmem:[%s4388_s19 + $0x68] sm:$0x1] }
 0x138   : > { %v1870_v2 = vshrl.u32 %v5973_v41, 16  ;;  %v3906_v43 = vcombine.low %v3745_v28, %v5973_v41  ;;  %v1859_v39 = vrot.slane %v1857_v44, 4  ;;  %v1862_v4 = vrot.slane %v1860_v51, 5 }
 0x139   : > { %v5987_v31 = vpop.permute.xlu1 %2274  ;;  %2628 = vrot.lane.b32.xlu1 %v3905_v33, %s4341_s25  ;;  %v1678_v46 = vshrl.u32 %v5979_v58, 16  ;;  %v3898_v10 = vcombine.low %v5960_v48, %v5979_v58  ;;  %v1839_v26 = vor.u32 %v1838_v40, %v1835_v54  ;;  %v1842_v0 = vshll.u32 %v5945_v25, 16 }
 0x13a   : > { %v5995_v50 = vpop.permute.xlu0 %2258  ;;  %v1848_v57 = vrot.slane %v1846_v62, 4  ;;  %v1852_v52 = vshll.u32 %v5985_v11, 16  ;;  %v1667_v19 = vrot.slane %v1665_v20, 4  ;;  %v1670_v7 = vrot.slane %v1668_v37, 5 }
 0x13b   : > { %v1647_v38 = vor.u32 %v1646_v49, %v1643_v12  ;;  %v1650_v56 = vshll.u32 %v5968_v29, 16  ;;  %2612 = vrot.lane.b32.xlu0 %v3897_v1, %s4341_s25  ;;  %v1840_v63 = vrot.slane %v1839_v26, 4  ;;  %v1844_v23 = vrot.slane %v1842_v0, 5 }
 0x13c   : > { %v1854_v61 = vrot.slane %v1852_v52, 5  ;;  %v1656_v24 = vrot.slane %v1654_v53, 4  ;;  %v1660_v28 = vshll.u32 %v6004_v5, 16  ;;  %v3063_v32 = vsel %vm3039_vm13, %v3030_v14, %v5877_v45  ;;  %v6028_v45 = vld [vmem:[%s4388_s19 + $0x74] sm:$0x1] }
 0x13d   : > { %v6007_v8 = vpop.permute.xlu1 %2368  ;;  %2630 = vrot.lane.b32.xlu1 %v3906_v43, %s4341_s25  ;;  %v1648_v13 = vrot.slane %v1647_v38, 4  ;;  %v1652_v6 = vrot.slane %v1650_v56, 5  ;;  %v1845_v48 = vsel %vm4477_vm5, %v1840_v63, %v1844_v23  ;;  %v1849_v54 = vor.u32 %v1848_v57, %v1844_v23  ;;  %4175 = vmatmul.mubr.msk.bf16.gmra.mrb[4].mxu1 %vm3114_vm14, %v3063_v32 }
 0x13e   : > { %v6010_v60 = vpop.permute.xlu0 %2352  ;;  %v3047_v62 = vsel %vm3039_vm13, %v3014_v16, %v5893_v59  ;;  %v1863_v33 = vor.u32 %v1862_v4, %v1859_v39  ;;  %v1662_v22 = vrot.slane %v1660_v28, 5  ;;  %v1866_v44 = vshll.u32 %v5973_v41, 16 }
 0x13f   : > { %v1653_v47 = vsel %vm4477_vm5, %v1648_v13, %v1652_v6  ;;  %v1657_v40 = vor.u32 %v1656_v24, %v1652_v6  ;;  %4159 = vmatmul.mubr.msk.bf16.gmra.mrb[4].mxu0 %vm3114_vm14, %v3047_v62  ;;  %2614 = vrot.lane.b32.xlu0 %v3898_v10, %s4341_s25  ;;  %v1850_v14 = vrot.slane %v1849_v54, 4  ;;  %v1872_v59 = vrot.slane %v1870_v2, 4  ;;  %v3777_v10 = vld [vmem:[%s4388_s19 + $0xc0] sm:$0xe]  ;;  %v3778_v54 = vld [vmem:[%s4388_s19 + $0xcc] sm:$0xe] }
 0x140   : > { %v1864_v51 = vrot.slane %v1863_v33, 4  ;;  %v1876_v16 = vshll.u32 %v6017_v3, 16  ;;  %v1868_v20 = vrot.slane %v1866_v44, 5  ;;  %v1671_v37 = vor.u32 %v1670_v7, %v1667_v19  ;;  %v3769_v7 = vld [vmem:[%s4388_s19 + $0x60] sm:$0xe] }
 0x141   : > { %v6033_v12 = vpop.permute.xlu1 %2370  ;;  %v1658_v49 = vrot.slane %v1657_v40, 4  ;;  %v1674_v53 = vshll.u32 %v5979_v58, 16  ;;  %v1855_v43 = vsel %vm4477_vm5, %v1850_v14, %v1854_v61  ;;  %v1680_v39 = vrot.slane %v1678_v46, 4  ;;  %v3770_v44 = vld [vmem:[%s4388_s19 + $0x6c] sm:$0xe] }
 0x142   : > { %v6036_v1 = vpop.permute.xlu0 %2354  ;;  %v1684_v4 = vshll.u32 %v6028_v45, 16  ;;  %v3921_v2 = vcombine.low %v1845_v48, %v1855_v43  ;;  %v1873_v0 = vor.u32 %v1872_v59, %v1868_v20  ;;  %v1878_v57 = vrot.slane %v1876_v16, 5 }
 0x143   : > { %v1663_v26 = vsel %vm4477_vm5, %v1658_v49, %v1662_v22  ;;  %v1672_v38 = vrot.slane %v1671_v37, 4  ;;  %v1676_v19 = vrot.slane %v1674_v53, 5  ;;  %v1869_v56 = vsel %vm4477_vm5, %v1864_v51, %v1868_v20 }
 0x144   : > { %v3913_v52 = vcombine.low %v1653_v47, %v1663_v26  ;;  %2708 = vrot.lane.b32.xlu1 %v3921_v2, %s4342_s26  ;;  %v1874_v46 = vrot.slane %v1873_v0, 4  ;;  %v3793_v63 = vrot.slane %v3777_v10, 9  ;;  %v1686_v61 = vrot.slane %v1684_v4, 5 }
 0x145   : > { %v1681_v23 = vor.u32 %v1680_v39, %v1676_v19  ;;  %v2044_v24 = vrot.slane %v5945_v25, 5  ;;  %v2047_v13 = vrot.slane %v5985_v11, 5  ;;  %v1677_v32 = vsel %vm4477_vm5, %v1672_v38, %v1676_v19 }
 0x146   : > { %2692 = vrot.lane.b32.xlu0 %v3913_v52, %s4342_s26  ;;  %v1879_v28 = vsel %vm4477_vm5, %v1874_v46, %v1878_v57  ;;  %v3785_v48 = vrot.slane %v3769_v7, 9  ;;  %v1988_v11 = vrot.slane %v5968_v29, 5  ;;  %v1991_v22 = vrot.slane %v6004_v5, 5 }
 0x147   : > { %v3922_v33 = vcombine.low %v1869_v56, %v1879_v28  ;;  %v1682_v47 = vrot.slane %v1681_v23, 4  ;;  %v2045_v40 = vsel %vm4419_vm2, %v3793_v63, %v2044_v24  ;;  %v2046_v25 = vrot.slane %v2044_v24, 4  ;;  %v4300_v24 = vld [vmem:[%s4388_s19 + $0x90] sm:$0xf] }
 0x148   : > { %v6051_v6 = vpop.permute.xlu1 %2448  ;;  %v3794_v59 = vrot.slane %v3778_v54, 9  ;;  %v2051_v16 = vrot.slane %v5973_v41, 5  ;;  %v1989_v37 = vsel %vm4419_vm2, %v3785_v48, %v1988_v11  ;;  %v1990_v29 = vrot.slane %v1988_v11, 4  ;;  %v4302_v48 = vld [vmem:[%s4388_s19 + $0x30] sm:$0xf] }
 0x149   : > { %v6058_v62 = vpop.permute.xlu0 %2432  ;;  %2710 = vrot.lane.b32.xlu1 %v3922_v33, %s4342_s26  ;;  %v1687_v14 = vsel %vm4477_vm5, %v1682_v47, %v1686_v61  ;;  %v2048_v51 = vsel %vm4419_vm2, %v2046_v25, %v2047_v13  ;;  %v2054_v43 = vrot.slane %v6017_v3, 5  ;;  %v3786_v30 = vrot.slane %v3770_v44, 9  ;;  %v4301_v13 = vld [vmem:[%s4388_s19 + $0x94] sm:$0xf] }
 0x14a   : > { %v3914_v49 = vcombine.low %v1677_v32, %v1687_v14  ;;  %v3937_v20 = vcombine.low %v2045_v40, %v2048_v51  ;;  %v2052_v5 = vsel %vm4419_vm2, %v3794_v59, %v2051_v16  ;;  %v2053_v53 = vrot.slane %v2051_v16, 4  ;;  %v4303_v54 = vld [vmem:[%s4388_s19 + $0x34] sm:$0xf] }
 0x14b   : > { %v1992_v41 = vsel %vm4419_vm2, %v1990_v29, %v1991_v22  ;;  %v1995_v4 = vrot.slane %v5979_v58, 5  ;;  %v1998_v10 = vrot.slane %v6028_v45, 5  ;;  %v3807_v28 = vcombine.low %v4300_v24, %v4301_v13 }
 0x14c   : > { %2694 = vrot.lane.b32.xlu0 %v3914_v49, %s4342_s26  ;;  %v3929_v26 = vcombine.low %v1989_v37, %v1992_v41  ;;  %v2055_v3 = vsel %vm4419_vm2, %v2053_v53, %v2054_v43  ;;  %v3799_v33 = vcombine.low %v4302_v48, %v4303_v54  ;;  %v4305_v37 = vld [vmem:[%s4388_s19 + $0xa0] sm:$0xf]  ;;  %v4306_v43 = vld [vmem:[%s4388_s19 + $0x3c] sm:$0xf] }
 0x14d   : > { %v6076_v39 = vpop.permute.xlu1 %2450  ;;  %2788 = vrot.lane.b32.xlu1 %v3937_v20, %s4343_s27  ;;  %v3938_v0 = vcombine.low %v2052_v5, %v2055_v3  ;;  %v1996_v57 = vsel %vm4419_vm2, %v3786_v30, %v1995_v4  ;;  %v1997_v52 = vrot.slane %v1995_v4, 4  ;;  %v2831_v21 = vsel %vm2792_vm6, %v3807_v28, %v5854_v35  ;;  %v4304_v20 = vld [vmem:[%s4388_s19 + $0x9c] sm:$0xf]  ;;  %v4307_v30 = vld [vmem:[%s4388_s19 + $0x40] sm:$0xf] }
 0x14e   : > { %v6083_v2 = vpop.permute.xlu0 %2434  ;;  %v2867_v40 = vsel %vm2841_vm7, %v2831_v21, %v5938_v27  ;;  %v2807_v44 = vsel %vm2792_vm6, %v3799_v33, %v5864_v42  ;;  %v3800_v41 = vcombine.low %v4306_v43, %v4307_v30 }
 0x14f   : > { %v1999_v58 = vsel %vm4419_vm2, %v1997_v52, %v1998_v10  ;;  %v2900_v25 = vsel %vm2874_vm8, %v2867_v40, %v6007_v8  ;;  %v2851_v14 = vsel %vm2841_vm7, %v2807_v44, %v5962_v9 }
 0x150   : > { %2772 = vrot.lane.b32.xlu0 %v3929_v26, %s4343_s27  ;;  %v3930_v19 = vcombine.low %v1996_v57, %v1999_v58  ;;  %v2933_v22 = vsel %vm2907_vm9, %v2900_v25, %v6051_v6  ;;  %v2884_v27 = vsel %vm2874_vm8, %v2851_v14, %v6010_v60  ;;  %v3808_v60 = vcombine.low %v4304_v20, %v4305_v37 }
 0x151   : > { %v2529_v38 = vpop.permute.xlu1 %2528  ;;  %2790 = vrot.lane.b32.xlu1 %v3938_v0, %s4343_s27  ;;  %v2917_v6 = vsel %vm2907_vm9, %v2884_v27, %v6058_v62  ;;  %v2810_v0 = vsel %vm2792_vm6, %v3800_v41, %v5928_v15  ;;  %v4309_v27 = vld [vmem:[%s4388_s19 + $0xac] sm:$0xf]  ;;  %v3810_v20 = vcombine.low %v5657_v18, %v5667_v34  ;;  %v3802_v37 = vcombine.low %v5682_v55, %v5693_v17 }
 0x152   : > { %v2513_v45 = vpop.permute.xlu0 %2512  ;;  %v2966_v35 = vsel %vm2940_vm10, %v2933_v22, %v2529_v38  ;;  %v2834_v62 = vsel %vm2792_vm6, %v3808_v60, %v5911_v36  ;;  %v2853_v36 = vsel %vm2841_vm7, %v2810_v0, %v5995_v50 }
 0x153   : > { %v2950_v49 = vsel %vm2940_vm10, %v2917_v6, %v2513_v45  ;;  %v2869_v4 = vsel %vm2841_vm7, %v2834_v62, %v5987_v31  ;;  %v2886_v31 = vsel %vm2874_vm8, %v2853_v36, %v6036_v1  ;;  %v4311_v6 = vld [vmem:[%s4388_s19 + $0x4c] sm:$0xf]  ;;  %v6182_v36 = vld [vmem:[%s6269_s2] ss:$0 sm:$0xff] }
 0x154   : > { %2774 = vrot.lane.b32.xlu0 %v3930_v19, %s4343_s27  ;;  %v2902_v10 = vsel %vm2874_vm8, %v2869_v4, %v6033_v12 }
 0x155   : > { %v2531_v7 = vpop.permute.xlu1 %2530  ;;  %v2935_v3 = vsel %vm2907_vm9, %v2902_v10, %v6076_v39  ;;  %v2919_v39 = vsel %vm2907_vm9, %v2886_v31, %v6083_v2 }
 0x156   : > { %v2515_v56 = vpop.permute.xlu0 %2514  ;;  %v2968_v57 = vsel %vm2940_vm10, %v2935_v3, %v2531_v7 }
 0x157   : > { %v2952_v15 = vsel %vm2940_vm10, %v2919_v39, %v2515_v56 }
 0x159   : > { %v2625_v46 = vpop.permute.xlu1 %2624 }
 0x15a   : > { %v2609_v63 = vpop.permute.xlu0 %2608  ;;  %v2999_v51 = vsel %vm2973_vm11, %v2966_v35, %v2625_v46 }
 0x15b   : > { %v2983_v9 = vsel %vm2973_vm11, %v2950_v49, %v2609_v63 }
 0x15d   : > { %v2627_v23 = vpop.permute.xlu1 %2626 }
 0x15e   : > { %v2611_v61 = vpop.permute.xlu0 %2610  ;;  %v3001_v52 = vsel %vm2973_vm11, %v2968_v57, %v2627_v23 }
 0x15f   : > { %v2985_v50 = vsel %vm2973_vm11, %v2952_v15, %v2611_v61 }
 0x164   : > { %v2705_v32 = vpop.permute.xlu1 %2704 }
 0x165   : > { %v2689_v47 = vpop.permute.xlu0 %2688  ;;  %v3032_v8 = vsel %vm3006_vm12, %v2999_v51, %v2705_v32  ;;  %v4308_v51 = vld [vmem:[%s4388_s19 + $0xa8] sm:$0xf] }
 0x166   : > { %v3016_v29 = vsel %vm3006_vm12, %v2983_v9, %v2689_v47 }
 0x168   : > { %v2707_v11 = vpop.permute.xlu1 %2706 }
 0x169   : > { %v3034_v38 = vsel %vm3006_vm12, %v3001_v52, %v2707_v11 }
 0x16c   : > { %v2691_v59 = vpop.permute.xlu0 %2690  ;;  %v2785_v16 = vpop.permute.xlu1 %2784 }
 0x16d   : > { %v3065_v42 = vsel %vm3039_vm13, %v3032_v8, %v2785_v16  ;;  %v3018_v19 = vsel %vm3006_vm12, %v2985_v50, %v2691_v59  ;;  %v3809_v8 = vcombine.low %v4308_v51, %v4309_v27  ;;  %v4310_v16 = vld [vmem:[%s4388_s19 + $0x48] sm:$0xf]  ;;  %s6215_s19 = scalar_lea.vmem %s6270_s3, %s3995_s17 }
 0x16e   : > { %4178 = vmatprep.mubr.msk.bf16.mxu1 %vm3114_vm14, %v3065_v42  ;;  %v3801_v42 = vcombine.low %v4310_v16, %v4311_v6 }
 0x170   : > { %v2769_v5 = vpop.permute.xlu0 %2768 }
 0x171   : > { %v3049_v53 = vsel %vm3039_vm13, %v3016_v29, %v2769_v5 }
 0x172   : > { %4162 = vmatprep.mubr.msk.bf16.mxu0 %vm3114_vm14, %v3049_v53 }
 0x176   : > { %v2197_v26 = vpop.permute.xlu1 %2196 }
 0x177   : > { %v2837_v9 = vsel %vm2792_vm6, %v3809_v8, %v2197_v26 }
 0x17a   : > { %v2181_v12 = vpop.permute.xlu0 %2180  ;;  %v2787_v58 = vpop.permute.xlu1 %2786 }
 0x17b   : > { %v3067_v45 = vsel %vm3039_vm13, %v3034_v38, %v2787_v58  ;;  %v2813_v53 = vsel %vm2792_vm6, %v3801_v42, %v2181_v12 }
 0x17c   : > { %4179 = vmatmul.mubr.msk.bf16.gmra.mrb[8].mxu1 %vm3114_vm14, %v3067_v45 }
 0x17e   : > { %v2771_v7 = vpop.permute.xlu0 %2770 }
 0x17f   : > { %v3051_v1 = vsel %vm3039_vm13, %v3018_v19, %v2771_v7 }
 0x180   : > { %4163 = vmatmul.mubr.msk.bf16.gmra.mrb[8].mxu0 %vm3114_vm14, %v3051_v1 }
 0x183   : > { %v2199_v46 = vpop.permute.xlu1 %2198 }
 0x184   : > { %v2840_v43 = vsel %vm2792_vm6, %v3810_v20, %v2199_v46 }
 0x187   : > { %v2183_v63 = vpop.permute.xlu0 %2182  ;;  %v2277_v23 = vpop.permute.xlu1 %2276 }
 0x188   : > { %v2871_v60 = vsel %vm2841_vm7, %v2837_v9, %v2277_v23  ;;  %v2816_v18 = vsel %vm2792_vm6, %v3802_v37, %v2183_v63 }
 0x18b   : > { %v2261_v24 = vpop.permute.xlu0 %2260  ;;  %v2279_v2 = vpop.permute.xlu1 %2278 }
 0x18c   : > { %v2855_v30 = vsel %vm2841_vm7, %v2813_v53, %v2261_v24  ;;  %v2873_v34 = vsel %vm2841_vm7, %v2840_v43, %v2279_v2 }
 0x18f   : > { %v2263_v13 = vpop.permute.xlu0 %2262  ;;  %v2373_v28 = vpop.permute.xlu1 %2372 }
 0x190   : > { %v2904_v29 = vsel %vm2874_vm8, %v2871_v60, %v2373_v28  ;;  %v2857_v10 = vsel %vm2841_vm7, %v2816_v18, %v2263_v13 }
 0x193   : > { %v2357_v56 = vpop.permute.xlu0 %2356  ;;  %v2375_v32 = vpop.permute.xlu1 %2374 }
 0x194   : > { %v2888_v55 = vsel %vm2874_vm8, %v2855_v30, %v2357_v56  ;;  %v2906_v26 = vsel %vm2874_vm8, %v2873_v34, %v2375_v32 }
 0x197   : > { %v2359_v21 = vpop.permute.xlu0 %2358 }
 0x198   : > { %v2890_v52 = vsel %vm2874_vm8, %v2857_v10, %v2359_v21 }
 0x19b   : > { %v2453_v61 = vpop.permute.xlu1 %2452 }
 0x19c   : > { %v2437_v48 = vpop.permute.xlu0 %2436  ;;  %v2937_v62 = vsel %vm2907_vm9, %v2904_v29, %v2453_v61 }
 0x19d   : > { %v2921_v3 = vsel %vm2907_vm9, %v2888_v55, %v2437_v48 }
 0x19f   : > { %v2455_v54 = vpop.permute.xlu1 %2454 }
 0x1a0   : > { %v2939_v31 = vsel %vm2907_vm9, %v2906_v26, %v2455_v54 }
 0x1a1   : > { %v2439_v33 = vpop.permute.xlu0 %2438 }
 0x1a2   : > { %v2923_v39 = vsel %vm2907_vm9, %v2890_v52, %v2439_v33 }
 0x1a3   : > { %v2533_v47 = vpop.permute.xlu1 %2532 }
 0x1a4   : > { %v2970_v41 = vsel %vm2940_vm10, %v2937_v62, %v2533_v47 }
 0x1a5   : > { %v2517_v40 = vpop.permute.xlu0 %2516 }
 0x1a6   : > { %v2954_v38 = vsel %vm2940_vm10, %v2921_v3, %v2517_v40 }
 0x1a7   : > { %v2535_v25 = vpop.permute.xlu1 %2534 }
 0x1a8   : > { %v2972_v45 = vsel %vm2940_vm10, %v2939_v31, %v2535_v25 }
 0x1a9   : > { %v2519_v11 = vpop.permute.xlu0 %2518 }
 0x1aa   : > { %v2956_v2 = vsel %vm2940_vm10, %v2923_v39, %v2519_v11 }
 0x1ab   : > { %v2629_v22 = vpop.permute.xlu1 %2628 }
 0x1ac   : > { %v3003_v17 = vsel %vm2973_vm11, %v2970_v41, %v2629_v22 }
 0x1ad   : > { %v2613_v44 = vpop.permute.xlu0 %2612 }
 0x1ae   : > { %v2987_v15 = vsel %vm2973_vm11, %v2954_v38, %v2613_v44 }
 0x1af   : > { %v2631_v35 = vpop.permute.xlu1 %2630 }
 0x1b0   : > { %v3005_v7 = vsel %vm2973_vm11, %v2972_v45, %v2631_v35 }
 0x1b1   : > { %v2615_v14 = vpop.permute.xlu0 %2614 }
 0x1b2   : > { %v2989_v61 = vsel %vm2973_vm11, %v2956_v2, %v2615_v14 }
 0x1b6   : > { %v2709_v59 = vpop.permute.xlu1 %2708 }
 0x1b7   : > { %v3036_v0 = vsel %vm3006_vm12, %v3003_v17, %v2709_v59 }
 0x1b8   : > { %v2693_v49 = vpop.permute.xlu0 %2692 }
 0x1b9   : > { %v3020_v1 = vsel %vm3006_vm12, %v2987_v15, %v2693_v49 }
 0x1bb   : > { %v2711_v5 = vpop.permute.xlu1 %2710 }
 0x1bc   : > { %v3038_v13 = vsel %vm3006_vm12, %v3005_v7, %v2711_v5 }
 0x1be   : > { %v2695_v4 = vpop.permute.xlu0 %2694 }
 0x1bf   : > { %v2789_v57 = vpop.permute.xlu1 %2788  ;;  %v3022_v25 = vsel %vm3006_vm12, %v2989_v61, %v2695_v4 }
 0x1c0   : > { %v3069_v12 = vsel %vm3039_vm13, %v3036_v0, %v2789_v57 }
 0x1c1   : > { %v4156_v58 = vpop.f32.mrb[0].mxu0  ;;  %4182 = vmatprep.mubr.msk.bf16.mxu1 %vm3114_vm14, %v3069_v12 }
 0x1c2   : > { %v4172_v50 = vpop.f32.mrb[0].mxu1  ;;  %v3185_v19 = vpop.f32.mrb[1].mxu0  ;;  %v3194_v63 = vadd.f32 %v4156_v58, %v6182_v36 }
 0x1c3   : > { %v2773_v46 = vpop.permute.xlu0 %2772  ;;  %v3258_v23 = vadd.f32 %v4172_v50, %v6182_v36  ;;  %v3249_v24 = vpop.f32.mrb[1].mxu1  ;;  %v3186_v32 = vadd.f32 %v6182_v36, %v3185_v19 }
 0x1c4   : > { %v3053_v28 = vsel %vm3039_vm13, %v3020_v1, %v2773_v46  ;;  %v2791_v56 = vpop.permute.xlu1 %2790  ;;  %v4157_v21 = vpop.f32.mrb[2].mxu0  ;;  %v3250_v54 = vadd.f32 %v6182_v36, %v3249_v24  ;;  %v3314_v14 = vmax.f32 %v3194_v63, 0.0 }
 0x1c5   : > { %4166 = vmatprep.mubr.msk.bf16.mxu0 %vm3114_vm14, %v3053_v28  ;;  %v3071_v48 = vsel %vm3039_vm13, %v3038_v13, %v2791_v56  ;;  %v3197_v33 = vadd.f32 %v4157_v21, %v6182_v36  ;;  %v4173_v47 = vpop.f32.mrb[2].mxu1  ;;  %v3188_v40 = vpop.f32.mrb[3].mxu0  ;;  %v3330_v51 = vmax.f32 %v3258_v23, 0.0  ;;  %v3312_v16 = vmax.f32 %v3186_v32, 0.0 }
 0x1c6   : > { %4183 = vmatmul.mubr.msk.bf16.gmra.mrb[12].mxu1 %vm3114_vm14, %v3071_v48  ;;  %v3261_v11 = vadd.f32 %v4173_v47, %v6182_v36  ;;  %v3189_v22 = vadd.f32 %v6182_v36, %v3188_v40  ;;  %v3252_v44 = vpop.f32.mrb[3].mxu1  ;;  %v3328_v49 = vmax.f32 %v3250_v54, 0.0 }
 0x1c7   : > { %v2775_v35 = vpop.permute.xlu0 %2774  ;;  %v3315_v27 = vmax.f32 %v3197_v33, 0.0  ;;  %v3253_v8 = vadd.f32 %v6182_v36, %v3252_v44 }
 0x1c8   : > { %v3055_v59 = vsel %vm3039_vm13, %v3022_v25, %v2775_v35  ;;  %v3331_v6 = vmax.f32 %v3261_v11, 0.0  ;;  %v3313_v42 = vmax.f32 %v3189_v22, 0.0 }
 0x1c9   : > { %4167 = vmatmul.mubr.msk.bf16.gmra.mrb[12].mxu0 %vm3114_vm14, %v3055_v59  ;;  %v4036_v9 = vpack.c.bf16 %v3315_v27, %v3314_v14  ;;  %v3329_v20 = vmax.f32 %v3253_v8, 0.0 }
 0x1ca   : > { %v4076_v37 = vpack.c.bf16 %v3331_v6, %v3330_v51  ;;  %v4031_v60 = vpack.c.bf16 %v3313_v42, %v3312_v16 }
 0x1cb   : > { %4108 = vst [vmem:[%s6215_s19 + $0x8] sm:$0xff] %v4036_v9   ;;  %v4071_v29 = vpack.c.bf16 %v3329_v20, %v3328_v49 }
 0x1cc   : > { %4116 = vst [vmem:[%s6215_s19 + $0x48] sm:$0xff] %v4076_v37   ;;  %4032 = vst [vmem:[%s6215_s19] sm:$0xff] %v4031_v60  }
 0x1cd   : > { %4115 = vst [vmem:[%s6215_s19 + $0x40] sm:$0xff] %v4071_v29  }
 0x210   : > { %v4176_v5 = vpop.f32.mrb[4].mxu1 }
 0x211   : > { %v3274_v62 = vadd.f32 %v4176_v5, %v6182_v36  ;;  %v3265_v43 = vpop.f32.mrb[5].mxu1 }
 0x212   : > { %v4160_v53 = vpop.f32.mrb[4].mxu0  ;;  %v3266_v18 = vadd.f32 %v6182_v36, %v3265_v43  ;;  %v4177_v34 = vpop.f32.mrb[6].mxu1 }
 0x213   : > { %v3210_v30 = vadd.f32 %v4160_v53, %v6182_v36  ;;  %v3201_v41 = vpop.f32.mrb[5].mxu0  ;;  %v3277_v4 = vadd.f32 %v4177_v34, %v6182_v36  ;;  %v3268_v10 = vpop.f32.mrb[7].mxu1  ;;  %v3334_v57 = vmax.f32 %v3274_v62, 0.0 }
 0x214   : > { %v3202_v55 = vadd.f32 %v6182_v36, %v3201_v41  ;;  %v4161_v17 = vpop.f32.mrb[6].mxu0  ;;  %v3269_v0 = vadd.f32 %v6182_v36, %v3268_v10  ;;  %v3332_v12 = vmax.f32 %v3266_v18, 0.0 }
 0x215   : > { %v3213_v26 = vadd.f32 %v4161_v17, %v6182_v36  ;;  %v3204_v3 = vpop.f32.mrb[7].mxu0  ;;  %v3335_v52 = vmax.f32 %v3277_v4, 0.0  ;;  %v3318_v38 = vmax.f32 %v3210_v30, 0.0 }
 0x216   : > { %v3205_v31 = vadd.f32 %v6182_v36, %v3204_v3  ;;  %v3333_v39 = vmax.f32 %v3269_v0, 0.0  ;;  %v3316_v45 = vmax.f32 %v3202_v55, 0.0 }
 0x217   : > { %v3319_v58 = vmax.f32 %v3213_v26, 0.0  ;;  %v4086_v15 = vpack.c.bf16 %v3335_v52, %v3334_v57 }
 0x218   : > { %v3317_v50 = vmax.f32 %v3205_v31, 0.0  ;;  %v4081_v7 = vpack.c.bf16 %v3333_v39, %v3332_v12 }
 0x219   : > { %v4046_v19 = vpack.c.bf16 %v3319_v58, %v3318_v38  ;;  %4118 = vst [vmem:[%s6215_s19 + $0x58] sm:$0xff] %v4086_v15  }
 0x21a   : > { %v4041_v1 = vpack.c.bf16 %v3317_v50, %v3316_v45  ;;  %4117 = vst [vmem:[%s6215_s19 + $0x50] sm:$0xff] %v4081_v7  }
 0x21b   : > { %4110 = vst [vmem:[%s6215_s19 + $0x18] sm:$0xff] %v4046_v19  }
 0x21c   : > { %4109 = vst [vmem:[%s6215_s19 + $0x10] sm:$0xff] %v4041_v1  }
 0x24f   : > { %v4180_v46 = vpop.f32.mrb[8].mxu1 }
 0x250   : > { %v3290_v63 = vadd.f32 %v4180_v46, %v6182_v36  ;;  %v3281_v23 = vpop.f32.mrb[9].mxu1 }
 0x251   : > { %v3282_v24 = vadd.f32 %v6182_v36, %v3281_v23  ;;  %v4181_v2 = vpop.f32.mrb[10].mxu1 }
 0x252   : > { %v3293_v13 = vadd.f32 %v4181_v2, %v6182_v36  ;;  %v3284_v28 = vpop.f32.mrb[11].mxu1  ;;  %v3338_v61 = vmax.f32 %v3290_v63, 0.0 }
 0x253   : > { %v4164_v56 = vpop.f32.mrb[8].mxu0  ;;  %v3285_v32 = vadd.f32 %v6182_v36, %v3284_v28  ;;  %v3336_v47 = vmax.f32 %v3282_v24, 0.0 }
 0x254   : > { %v3226_v21 = vadd.f32 %v4164_v56, %v6182_v36  ;;  %v3217_v48 = vpop.f32.mrb[9].mxu0  ;;  %v3339_v54 = vmax.f32 %v3293_v13, 0.0 }
 0x255   : > { %v3218_v33 = vadd.f32 %v6182_v36, %v3217_v48  ;;  %v4165_v40 = vpop.f32.mrb[10].mxu0  ;;  %v3337_v25 = vmax.f32 %v3285_v32, 0.0 }
 0x256   : > { %v3229_v11 = vadd.f32 %v4165_v40, %v6182_v36  ;;  %v4096_v22 = vpack.c.bf16 %v3339_v54, %v3338_v61  ;;  %v3220_v44 = vpop.f32.mrb[11].mxu0  ;;  %v3322_v51 = vmax.f32 %v3226_v21, 0.0 }
 0x257   : > { %v3221_v35 = vadd.f32 %v6182_v36, %v3220_v44  ;;  %v4091_v14 = vpack.c.bf16 %v3337_v25, %v3336_v47  ;;  %v3320_v8 = vmax.f32 %v3218_v33, 0.0 }
 0x258   : > { %v3323_v27 = vmax.f32 %v3229_v11, 0.0  ;;  %4120 = vst [vmem:[%s6215_s19 + $0x68] sm:$0xff] %v4096_v22  }
 0x259   : > { %v3321_v59 = vmax.f32 %v3221_v35, 0.0  ;;  %4119 = vst [vmem:[%s6215_s19 + $0x60] sm:$0xff] %v4091_v14  }
 0x25a   : > { %v4056_v16 = vpack.c.bf16 %v3323_v27, %v3322_v51 }
 0x25b   : > { %v4051_v6 = vpack.c.bf16 %v3321_v59, %v3320_v8 }
 0x25c   : > { %4112 = vst [vmem:[%s6215_s19 + $0x28] sm:$0xff] %v4056_v16  }
 0x25d   : > { %4111 = vst [vmem:[%s6215_s19 + $0x20] sm:$0xff] %v4051_v6  }
 0x299   : > { %v4184_v42 = vpop.f32.mrb[12].mxu1 }
 0x29a   : > { %v3306_v49 = vadd.f32 %v4184_v42, %v6182_v36  ;;  %v3297_v9 = vpop.f32.mrb[13].mxu1 }
 0x29b   : > { %v3298_v20 = vadd.f32 %v6182_v36, %v3297_v9  ;;  %v4185_v37 = vpop.f32.mrb[14].mxu1 }
 0x29c   : > { %v4168_v60 = vpop.f32.mrb[12].mxu0  ;;  %v3309_v29 = vadd.f32 %v4185_v37, %v6182_v36  ;;  %v3300_v5 = vpop.f32.mrb[15].mxu1  ;;  %v3342_v30 = vmax.f32 %v3306_v49, 0.0 }
 0x29d   : > { %v3242_v53 = vadd.f32 %v4168_v60, %v6182_v36  ;;  %v3233_v62 = vpop.f32.mrb[13].mxu0  ;;  %v3301_v43 = vadd.f32 %v6182_v36, %v3300_v5  ;;  %v3340_v55 = vmax.f32 %v3298_v20, 0.0 }
 0x29e   : > { %v3234_v41 = vadd.f32 %v6182_v36, %v3233_v62  ;;  %v4169_v18 = vpop.f32.mrb[14].mxu0  ;;  %v3343_v34 = vmax.f32 %v3309_v29, 0.0 }
 0x29f   : > { %v3245_v17 = vadd.f32 %v4169_v18, %v6182_v36  ;;  %v3236_v4 = vpop.f32.mrb[15].mxu0  ;;  %v3341_v10 = vmax.f32 %v3301_v43, 0.0  ;;  %v3326_v0 = vmax.f32 %v3242_v53, 0.0 }
 0x2a0   : > { %v4106_v26 = vpack.c.bf16 %v3343_v34, %v3342_v30  ;;  %v3237_v3 = vadd.f32 %v6182_v36, %v3236_v4  ;;  %v3324_v31 = vmax.f32 %v3234_v41, 0.0 }
 0x2a1   : > { %v3327_v57 = vmax.f32 %v3245_v17, 0.0  ;;  %v4101_v52 = vpack.c.bf16 %v3341_v10, %v3340_v55 }
 0x2a2   : > { %4122 = vst [vmem:[%s6215_s19 + $0x78] sm:$0xff] %v4106_v26   ;;  %v3325_v38 = vmax.f32 %v3237_v3, 0.0 }
 0x2a3   : > { %v4066_v12 = vpack.c.bf16 %v3327_v57, %v3326_v0  ;;  %4121 = vst [vmem:[%s6215_s19 + $0x70] sm:$0xff] %v4101_v52  }
 0x2a4   : > { %v4061_v58 = vpack.c.bf16 %v3325_v38, %v3324_v31 }
 0x2a5   : > { %4114 = vst [vmem:[%s6215_s19 + $0x38] sm:$0xff] %v4066_v12  }
 0x2a6   : > { %4113 = vst [vmem:[%s6215_s19 + $0x30] sm:$0xff] %v4061_v58  }
 0x2a7 PF: > { %s13_s14 = sadd.s32 1, %s4334_s14   ;;  %s6275_s12 = smov %s4330_s13 }
 0x2a8   : > { %p10_p5 = scmp.ge.s32.totalorder %s13_s14, 4   ;;  %s6276_s13 = smov %s6278_s15 }
 0x2aa   :  { %12 = sbr.rel (!%p10_p5) target bundleno = 2 (0x2), region = 70 }

// kernel: basic_block.3
= control target key start
LH: loop header
LB: loop body
LE: loop exit
PB: predicated region body
PF: predicated region fallthrough
CT: control target
= control target key end

     0   :  { %s4225_s15 = smov 0   ;;  %s4227_s16 = smov 0   ;;  %s6185_s0 = inlined_call_operand.vmem [shape: bf16[2,1,18,18,8], index: 0, kind: input, shape index: {}]   ;;  %s6186_s1 = inlined_call_operand.vmem [shape: bf16[72,128], index: 1, kind: input, shape index: {}]   ;;  %s6187_s2 = inlined_call_operand.vmem [shape: f32[1,128], index: 2, kind: input, shape index: {}]   ;;  %s6188_s3 = inlined_call_operand.vmem [shape: f32[2,16,16,128], index: 3, kind: input, shape index: {}]   ;;  %s6189_s4 = inlined_call_operand.vmem [shape: f32[2,16,16,128], index: 4, kind: output, shape index: {}]  }
   0x1   :  { %s4229_s17 = smov 0  }
   0x2 LB: > { %s26_s18 = sadd.s32 1, %s4186_s16  ;;  %p3627_p0 = scmp.ge.s32.totalorder %s4190_s17, 1  ;;  %s4190_s17 = sphi %s4229_s17, %s14_s17   ;;  %s4186_s16 = sphi %s4227_s16, %s6195_s16   ;;  %s4182_s15 = sphi %s4225_s15, %s6194_s15  }
   0x3   : > { %p28_p1 = scmp.ge.s32.totalorder %s26_s18, 2  ;;  %p208_p2 = scmp.lt.s32.totalorder %s4190_s17, 3 }
   0x5   : > { %s6197_s18 = smov (%p28_p1, %s26_s18), 0  ;;  %p209_p3 = pnand %p3627_p0, %p208_p2 }
   0x6   : > { %p252_p4 = scmp.lt.s32.totalorder (!%p209_p3), %s4182_s15, 1  ;;  %vm781_vm0 = vcmask (!%p209_p3), 1042432   ;;  %vm782_vm1 = vcmask (!%p209_p3), 1046532   ;;  %s4192_s23 = smov (!%p209_p3), 24   ;;  %vm330_vm3 = vsmask.f32 (!%p209_p3), 3328 }
   0x7   : > { %212 = sbr.rel (%p209_p3) target bundleno = 679 (0x2a7), region = 36  ;;  %vm4280_vm2 = vmor (!%p209_p3), %vm781_vm0, %vm782_vm1  ;;  %vm331_vm4 = vsmask.f32 (!%p209_p3), 7440  ;;  %s4193_s24 = smov (!%p209_p3), 16   ;;  %vm2850_vm6 = vcmask (!%p209_p3), 64512   ;;  %vm2899_vm7 = vcmask (!%p209_p3), 130048  }
   0x8   : > { %vm4338_vm5 = vmor (!%p209_p3), %vm330_vm3, %vm331_vm4  ;;  %s4194_s25 = smov (!%p209_p3), 8   ;;  %s4195_s26 = smov (!%p209_p3), 32   ;;  %vm2932_vm8 = vcmask (!%p209_p3), 195584   ;;  %vm2965_vm9 = vcmask (!%p209_p3), 261120   ;;  %vm2998_vm10 = vcmask (!%p209_p3), 326656   ;;  %vm3031_vm11 = vcmask (!%p209_p3), 392192  }
   0x9   : > { %s4196_s27 = smov (!%p209_p3), 40   ;;  %s4197_s28 = smov (!%p209_p3), 48   ;;  %vm3064_vm12 = vcmask (!%p209_p3), 457728   ;;  %vm3097_vm13 = vcmask (!%p209_p3), 523264   ;;  %vm3172_vm14 = vcmask (!%p209_p3), 588800   ;;  %vm3205_vm15 = vcmask (!%p209_p3), 1043456  }
   0xa   : > { %s4198_s29 = smov (!%p209_p3), 56   ;;  %s4199_s30 = smov (!%p209_p3), 64  }
   0xe   : > { %s6199_s15 = smov (!%p252_p4, %s4182_s15), 1 }
   0xf   : > { %s4054_s19 = smul.u32 216, %s6199_s15 }
  0x11   : > { %s4249_s22 = scalar_lea.vmem %s6185_s0, %s4054_s19  ;;  %s3977_s19 = sshll.u32 %s6199_s15, 8 }
  0x12   : > { %v3665_v0 = vld [vmem:[%s4249_s22 + $0x6c] sm:$0xf]  ;;  %v4253_v1 = vld [vmem:[%s4249_s22 + $0x70] sm:$0xf]  ;;  %v4266_v12 = vld [vmem:[%s4249_s22 + $0x64] sm:$0xf] }
  0x13   : > { %v3649_v2 = vld [vmem:[%s4249_s22 + $0xc] sm:$0xf]  ;;  %v1147_v3 = vshll.u32 %v4253_v1, 16  ;;  %v1151_v4 = vshrl.u32 %v4253_v1, 16  ;;  %v3865_v5 = vcombine.low %v3665_v0, %v4253_v1  ;;  %v1138_v6 = vshrl.u32 %v3665_v0, 16 }
  0x14   : > { %v4260_v7 = vld [vmem:[%s4249_s22 + $0x10] sm:$0xf]  ;;  %v1141_v8 = vshll.u32 %v3665_v0, 16  ;;  %v946_v15 = vshrl.u32 %v3649_v2, 16  ;;  %v949_v16 = vshll.u32 %v3649_v2, 16  ;;  %v842_v22 = vrot.slane %v4266_v12, 5 }
  0x15   : > { %v955_v9 = vshll.u32 %v4260_v7, 16  ;;  %v959_v10 = vshrl.u32 %v4260_v7, 16  ;;  %v3857_v11 = vcombine.low %v3649_v2, %v4260_v7  ;;  %v4268_v13 = vrot.slane %v1151_v4, 4  ;;  %2418 = vrot.lane.b32.xlu1 %v3865_v5, %s4192_s23  ;;  %v4272_v17 = vld [vmem:[%s4249_s22 + $0x68] sm:$0x1] }
  0x16   : > { %v1140_v14 = vrot.slane %v1138_v6, 4  ;;  %v1143_v18 = vrot.slane %v1141_v8, 5  ;;  %v725_v20 = vld [vmem:[%s4249_s22 + $0x60] sm:$0xe]  ;;  %v845_v23 = vrot.slane %v4272_v17, 5  ;;  %v948_v24 = vrot.slane %v946_v15, 4 }
  0x17   : > { %v4274_v19 = vrot.slane %v959_v10, 4  ;;  %2402 = vrot.lane.b32.xlu0 %v3857_v11, %s4192_s23  ;;  %v951_v25 = vrot.slane %v949_v16, 5  ;;  %v3641_v26 = vrot.slane %v725_v20, 9  ;;  %v4287_v27 = vld [vmem:[%s4249_s22 + $0x4] sm:$0xf]  ;;  %v535_v28 = vshll.u32 %v4266_v12, 16 }
  0x18   : > { %v1144_v29 = vor.u32 %v1143_v18, %v1140_v14  ;;  %v844_v30 = vrot.slane %v842_v22, 4  ;;  %v4291_v31 = vld [vmem:[%s4249_s22 + $0x8] sm:$0x1]  ;;  %v717_v32 = vld [vmem:[%s4249_s22] sm:$0xe]  ;;  %v786_v33 = vrot.slane %v4287_v27, 5 }
  0x19   : > { %v952_v34 = vor.u32 %v951_v25, %v948_v24  ;;  %v843_v35 = vsel %vm4280_vm2, %v3641_v26, %v842_v22  ;;  %v3633_v36 = vrot.slane %v717_v32, 9  ;;  %v789_v37 = vrot.slane %v4291_v31, 5  ;;  %v4299_v38 = vld [vmem:[%s4249_s22 + $0x70] sm:$0xf]  ;;  %v4302_v39 = vld [vmem:[%s4249_s22 + $0x74] sm:$0x1] }
  0x1a   : > { %v4304_v40 = vrot.slane %v1144_v29, 4  ;;  %v846_v41 = vsel %vm4280_vm2, %v844_v30, %v845_v23  ;;  %v788_v42 = vrot.slane %v786_v33, 4  ;;  %v726_v43 = vld [vmem:[%s4249_s22 + $0x6c] sm:$0xe]  ;;  %v849_v44 = vrot.slane %v4299_v38, 5 }
  0x1b   : > { %v4310_v45 = vrot.slane %v952_v34, 4  ;;  %v3849_v46 = vcombine.low %v843_v35, %v846_v41  ;;  %v787_v47 = vsel %vm4280_vm2, %v3633_v36, %v786_v33  ;;  %v3642_v48 = vrot.slane %v726_v43, 9  ;;  %v285_v49 = vld [vmem:[%s4249_s22 + $0x10] sm:$0xf]  ;;  %v315_v50 = vld [vmem:[%s4249_s22 + $0x14] sm:$0x1] }
  0x1c   : > { %v790_v51 = vsel %vm4280_vm2, %v788_v42, %v789_v37  ;;  %v851_v52 = vrot.slane %v849_v44, 4  ;;  %v852_v53 = vrot.slane %v4302_v39, 5  ;;  %v718_v54 = vld [vmem:[%s4249_s22 + $0xc] sm:$0xe]  ;;  %v793_v55 = vrot.slane %v285_v49, 5 }
  0x1d   : > { %2322 = vrot.lane.b32.xlu1 %v3849_v46, %s4193_s24  ;;  %v3841_v56 = vcombine.low %v787_v47, %v790_v51  ;;  %v850_v57 = vsel %vm4280_vm2, %v3642_v48, %v849_v44  ;;  %v3634_v58 = vrot.slane %v718_v54, 9  ;;  %v796_v59 = vrot.slane %v315_v50, 5  ;;  %v284_v60 = vld [vmem:[%s4249_s22 + $0xc] sm:$0xf]  ;;  %v282_v2 = vld [vmem:[%s4249_s22] sm:$0xf] }
  0x1e   : > { %v853_v61 = vsel %vm4280_vm2, %v851_v52, %v852_v53  ;;  %v795_v62 = vrot.slane %v793_v55, 4  ;;  %v358_v63 = vshrl.u32 %v284_v60, 16  ;;  %v361_v0 = vshll.u32 %v284_v60, 16  ;;  %v300_v23 = vld [vmem:[%s4249_s22 + $0x6c] sm:$0xf] }
  0x1f   : > { %2306 = vrot.lane.b32.xlu0 %v3841_v56, %s4193_s24  ;;  %v3850_v4 = vcombine.low %v850_v57, %v853_v61  ;;  %v794_v5 = vsel %vm4280_vm2, %v3634_v58, %v793_v55  ;;  %v367_v6 = vshll.u32 %v285_v49, 16  ;;  %v371_v8 = vshrl.u32 %v285_v49, 16  ;;  %v298_v52 = vld [vmem:[%s4249_s22 + $0x60] sm:$0xf] }
  0x20   : > { %v797_v10 = vsel %vm4280_vm2, %v795_v62, %v796_v59  ;;  %v360_v11 = vrot.slane %v358_v63, 4  ;;  %v363_v14 = vrot.slane %v361_v0, 5  ;;  %v377_v15 = vshll.u32 %v315_v50, 16 }
  0x21   : > { %2324 = vrot.lane.b32.xlu1 %v3850_v4, %s4193_s24  ;;  %v3842_v16 = vcombine.low %v794_v5, %v797_v10  ;;  %v369_v18 = vrot.slane %v367_v6, 5  ;;  %v373_v20 = vrot.slane %v371_v8, 4  ;;  %v334_v22 = vshrl.u32 %v282_v2, 16  ;;  %v3667_v4 = vld [vmem:[%s4249_s22 + $0x78] sm:$0xf] }
  0x22   : > { %v364_v24 = vor.u32 %v363_v14, %v360_v11  ;;  %v379_v25 = vrot.slane %v377_v15, 5  ;;  %v337_v26 = vshll.u32 %v282_v2, 16  ;;  %v343_v29 = vshll.u32 %v4287_v27, 16  ;;  %v4361_v10 = vld [vmem:[%s4249_s22 + $0x7c] sm:$0xf] }
  0x23   : > { %2308 = vrot.lane.b32.xlu0 %v3842_v16, %s4193_s24  ;;  %v374_v32 = vor.u32 %v373_v20, %v369_v18  ;;  %v336_v33 = vrot.slane %v334_v22, 4  ;;  %v347_v34 = vshrl.u32 %v4287_v27, 16  ;;  %v353_v35 = vshll.u32 %v4291_v31, 16 }
  0x24   : > { %v365_v36 = vrot.slane %v364_v24, 4  ;;  %v339_v37 = vrot.slane %v337_v26, 5  ;;  %v345_v41 = vrot.slane %v343_v29, 5  ;;  %v550_v42 = vshrl.u32 %v300_v23, 16 }
  0x25   : > { %v375_v43 = vrot.slane %v374_v32, 4  ;;  %v349_v44 = vrot.slane %v347_v34, 4  ;;  %v355_v46 = vrot.slane %v353_v35, 5  ;;  %v553_v47 = vshll.u32 %v300_v23, 16  ;;  %v4368_v23 = vld [vmem:[%s4249_s22 + $0x18] sm:$0xf] }
  0x26   : > { %v370_v48 = vsel %vm4338_vm5, %v365_v36, %v369_v18  ;;  %v340_v49 = vor.u32 %v339_v37, %v336_v33  ;;  %v552_v50 = vrot.slane %v550_v42, 4  ;;  %v559_v51 = vshll.u32 %v4299_v38, 16  ;;  %v4379_v35 = vld [vmem:[%s4249_s22 + $0x74] sm:$0x1] }
  0x27   : > { %v380_v27 = vsel %vm4338_vm5, %v375_v43, %v379_v25  ;;  %v350_v31 = vor.u32 %v349_v44, %v345_v41  ;;  %v555_v53 = vrot.slane %v553_v47, 5  ;;  %v563_v54 = vshrl.u32 %v4299_v38, 16 }
  0x28   : > { %v3826_v55 = vcombine.low %v370_v48, %v380_v27  ;;  %v341_v56 = vrot.slane %v340_v49, 4  ;;  %v561_v57 = vrot.slane %v559_v51, 5  ;;  %v569_v58 = vshll.u32 %v4302_v39, 16  ;;  %v4389_v48 = vld [vmem:[%s4249_s22 + $0x14] sm:$0x1] }
  0x29   : > { %v351_v59 = vrot.slane %v350_v31, 4  ;;  %v556_v60 = vor.u32 %v555_v53, %v552_v50  ;;  %v565_v61 = vrot.slane %v563_v54, 4  ;;  %v526_v62 = vshrl.u32 %v298_v52, 16 }
  0x2a   : > { %2228 = vrot.lane.b32.xlu1 %v3826_v55, %s4194_s25  ;;  %v346_v63 = vsel %vm4338_vm5, %v341_v56, %v345_v41  ;;  %v571_v0 = vrot.slane %v569_v58, 5  ;;  %v529_v2 = vshll.u32 %v298_v52, 16  ;;  %v537_v38 = vrot.slane %v535_v28, 5 }
  0x2b   : > { %v356_v39 = vsel %vm4338_vm5, %v351_v59, %v355_v46  ;;  %v557_v5 = vrot.slane %v556_v60, 4  ;;  %v566_v6 = vor.u32 %v565_v61, %v561_v57  ;;  %v528_v8 = vrot.slane %v526_v62, 4 }
  0x2c   : > { %v3825_v11 = vcombine.low %v346_v63, %v356_v39  ;;  %v531_v14 = vrot.slane %v529_v2, 5  ;;  %v539_v15 = vshrl.u32 %v4266_v12, 16  ;;  %v545_v16 = vshll.u32 %v4272_v17, 16  ;;  %v4373_v12 = vld [vmem:[%s4249_s22 + $0x1c] sm:$0xf] }
  0x2d   : > { %v562_v28 = vsel %vm4338_vm5, %v557_v5, %v561_v57  ;;  %v567_v18 = vrot.slane %v566_v6, 4  ;;  %v1162_v20 = vshrl.u32 %v3667_v4, 16  ;;  %v1165_v22 = vshll.u32 %v3667_v4, 16  ;;  %v4405_v57 = vld [vmem:[%s4249_s22 + $0x80] sm:$0x1] }
  0x2e   : > { %2226 = vrot.lane.b32.xlu0 %v3825_v11, %s4194_s25  ;;  %v532_v24 = vor.u32 %v531_v14, %v528_v8  ;;  %v541_v25 = vrot.slane %v539_v15, 4  ;;  %v547_v26 = vrot.slane %v545_v16, 5  ;;  %v1175_v29 = vshrl.u32 %v4361_v10, 16  ;;  %v3705_v8 = vld [vmem:[%s4249_s22 + $0x6c] sm:$0xe] }
  0x2f   : > { %v572_v17 = vsel %vm4338_vm5, %v567_v18, %v571_v0  ;;  %v1164_v32 = vrot.slane %v1162_v20, 4  ;;  %v1167_v33 = vrot.slane %v1165_v22, 5  ;;  %v3866_v34 = vcombine.low %v3667_v4, %v4361_v10  ;;  %v4414_v0 = vld [vmem:[%s4249_s22 + $0x20] sm:$0x1] }
  0x30   : > { %v3834_v36 = vcombine.low %v562_v28, %v572_v17  ;;  %v533_v37 = vrot.slane %v532_v24, 4  ;;  %v542_v41 = vor.u32 %v541_v25, %v537_v38  ;;  %v970_v42 = vshrl.u32 %v4368_v23, 16  ;;  %v3697_v28 = vld [vmem:[%s4249_s22 + $0xc] sm:$0xe]  ;;  %v3706_v17 = vld [vmem:[%s4249_s22 + $0x78] sm:$0xe] }
  0x31   : > { %v973_v43 = vshll.u32 %v4368_v23, 16  ;;  %v983_v44 = vshrl.u32 %v4373_v12, 16  ;;  %v3858_v46 = vcombine.low %v4368_v23, %v4373_v12  ;;  %v1149_v47 = vrot.slane %v1147_v3, 5 }
  0x32   : > { %2244 = vrot.lane.b32.xlu1 %v3834_v36, %s4194_s25  ;;  %v538_v49 = vsel %vm4338_vm5, %v533_v37, %v537_v38  ;;  %v543_v50 = vrot.slane %v542_v41, 4  ;;  %v972_v51 = vrot.slane %v970_v42, 4  ;;  %v1157_v52 = vshll.u32 %v4379_v35, 16 }
  0x33   : > { %v975_v27 = vrot.slane %v973_v43, 5  ;;  %v1150_v31 = vsel %vm4338_vm5, %v4304_v40, %v1149_v47  ;;  %v1154_v53 = vor.u32 %v4268_v13, %v1149_v47  ;;  %v957_v3 = vrot.slane %v955_v9, 5  ;;  %v3698_v47 = vld [vmem:[%s4249_s22 + $0x18] sm:$0xe] }
  0x34   : > { %v548_v54 = vsel %vm4338_vm5, %v543_v50, %v547_v26  ;;  %v1159_v55 = vrot.slane %v1157_v52, 5  ;;  %v965_v56 = vshll.u32 %v4389_v48, 16  ;;  %v1168_v58 = vor.u32 %v1167_v33, %v1164_v32 }
  0x35   : > { %v3833_v59 = vcombine.low %v538_v49, %v548_v54  ;;  %v1155_v60 = vrot.slane %v1154_v53, 4  ;;  %v958_v40 = vsel %vm4338_vm5, %v4310_v45, %v957_v3  ;;  %v962_v13 = vor.u32 %v4274_v19, %v957_v3  ;;  %v4456_v53 = vld [vmem:[%s4249_s22 + $0x7c] sm:$0xf] }
  0x36   : > { %2420 = vrot.lane.b32.xlu1 %v3866_v34, %s4192_s23  ;;  %v967_v9 = vrot.slane %v965_v56, 5  ;;  %v1169_v61 = vrot.slane %v1168_v58, 4  ;;  %v1171_v62 = vshll.u32 %v4361_v10, 16  ;;  %v1177_v63 = vrot.slane %v1175_v29, 4  ;;  %v4463_v58 = vld [vmem:[%s4249_s22 + $0x18] sm:$0xf] }
  0x37   : > { %2242 = vrot.lane.b32.xlu0 %v3833_v59, %s4194_s25  ;;  %v1160_v2 = vsel %vm4338_vm5, %v1155_v60, %v1159_v55  ;;  %v963_v38 = vrot.slane %v962_v13, 4  ;;  %v1181_v45 = vshll.u32 %v4405_v57, 16  ;;  %v976_v19 = vor.u32 %v975_v27, %v972_v51  ;;  %v4449_v51 = vld [vmem:[%s4249_s22 + $0x78] sm:$0xf] }
  0x38   : > { %v3881_v4 = vcombine.low %v1150_v31, %v1160_v2  ;;  %v1173_v39 = vrot.slane %v1171_v62, 5  ;;  %v979_v5 = vshll.u32 %v4373_v12, 16  ;;  %v985_v6 = vrot.slane %v983_v44, 4 }
  0x39   : > { %v968_v11 = vsel %vm4338_vm5, %v963_v38, %v967_v9  ;;  %v1183_v14 = vrot.slane %v1181_v45, 5  ;;  %v977_v15 = vrot.slane %v976_v19, 4  ;;  %v989_v16 = vshll.u32 %v4414_v0, 16  ;;  %v4469_v9 = vld [vmem:[%s4249_s22 + $0x1c] sm:$0xf] }
  0x3a   : > { %2498 = vrot.lane.b32.xlu1 %v3881_v4, %s4195_s26  ;;  %v3873_v18 = vcombine.low %v958_v40, %v968_v11  ;;  %v1174_v20 = vsel %vm4338_vm5, %v1169_v61, %v1173_v39  ;;  %v1178_v22 = vor.u32 %v1177_v63, %v1173_v39  ;;  %v981_v23 = vrot.slane %v979_v5, 5  ;;  %v4484_v19 = vld [vmem:[%s4249_s22 + $0x88] sm:$0xf] }
  0x3b   : > { %2404 = vrot.lane.b32.xlu0 %v3858_v46, %s4192_s23  ;;  %v991_v24 = vrot.slane %v989_v16, 5  ;;  %v3721_v25 = vrot.slane %v3705_v8, 9  ;;  %v1451_v26 = vrot.slane %v4253_v1, 5  ;;  %v1454_v29 = vrot.slane %v4379_v35, 5  ;;  %v4491_v8 = vld [vmem:[%s4249_s22 + $0x24] sm:$0xf] }
  0x3c   : > { %v1179_v32 = vrot.slane %v1178_v22, 4  ;;  %v982_v33 = vsel %vm4338_vm5, %v977_v15, %v981_v23  ;;  %v986_v34 = vor.u32 %v985_v6, %v981_v23  ;;  %v3713_v36 = vrot.slane %v3697_v28, 9  ;;  %v4500_v28 = vld [vmem:[%s4249_s22 + $0x28] sm:$0xf] }
  0x3d   : > { %v1452_v37 = vsel %vm4280_vm2, %v3721_v25, %v1451_v26  ;;  %v1453_v41 = vrot.slane %v1451_v26, 4  ;;  %v1395_v42 = vrot.slane %v4260_v7, 5  ;;  %v1398_v43 = vrot.slane %v4389_v48, 5 }
  0x3e   : > { %v1184_v1 = vsel %vm4338_vm5, %v1179_v32, %v1183_v14  ;;  %v987_v35 = vrot.slane %v986_v34, 4  ;;  %v3722_v44 = vrot.slane %v3706_v17, 9  ;;  %v1458_v46 = vrot.slane %v4361_v10, 5 }
  0x3f   : > { %2482 = vrot.lane.b32.xlu0 %v3873_v18, %s4195_s26  ;;  %v3882_v49 = vcombine.low %v1174_v20, %v1184_v1  ;;  %v1455_v50 = vsel %vm4280_vm2, %v1453_v41, %v1454_v29  ;;  %v1396_v7 = vsel %vm4280_vm2, %v3713_v36, %v1395_v42  ;;  %v1397_v48 = vrot.slane %v1395_v42, 4 }
  0x40   : > { %v992_v52 = vsel %vm4338_vm5, %v987_v35, %v991_v24  ;;  %v3897_v27 = vcombine.low %v1452_v37, %v1455_v50  ;;  %v1459_v10 = vsel %vm4280_vm2, %v3722_v44, %v1458_v46  ;;  %v1460_v31 = vrot.slane %v1458_v46, 4  ;;  %v4505_v24 = vld [vmem:[%s4249_s22 + $0x80] sm:$0x1] }
  0x41   : > { %2500 = vrot.lane.b32.xlu1 %v3882_v49, %s4195_s26  ;;  %v3874_v3 = vcombine.low %v982_v33, %v992_v52  ;;  %v1399_v54 = vsel %vm4280_vm2, %v1397_v48, %v1398_v43  ;;  %v1461_v55 = vrot.slane %v4405_v57, 5  ;;  %v3714_v56 = vrot.slane %v3698_v47, 9  ;;  %v4516_v37 = vld [vmem:[%s4249_s22 + $0x20] sm:$0x1] }
  0x42   : > { %v3889_v59 = vcombine.low %v1396_v7, %v1399_v54  ;;  %v1402_v60 = vrot.slane %v4373_v12, 5  ;;  %v1405_v40 = vrot.slane %v4414_v0, 5  ;;  %v1747_v13 = vshrl.u32 %v4449_v51, 16  ;;  %v4479_v12 = vld [vmem:[%s4249_s22 + $0x84] sm:$0xf] }
  0x43   : > { %2484 = vrot.lane.b32.xlu0 %v3874_v3, %s4195_s26  ;;  %v1462_v61 = vsel %vm4280_vm2, %v1460_v31, %v1461_v55  ;;  %v1750_v57 = vshll.u32 %v4449_v51, 16  ;;  %v1760_v62 = vshrl.u32 %v4456_v53, 16  ;;  %v3913_v63 = vcombine.low %v4449_v51, %v4456_v53 }
  0x44   : > { %v3898_v0 = vcombine.low %v1459_v10, %v1462_v61  ;;  %v1403_v2 = vsel %vm4280_vm2, %v3714_v56, %v1402_v60  ;;  %v1404_v38 = vrot.slane %v1402_v60, 4  ;;  %v1749_v45 = vrot.slane %v1747_v13, 4 }
  0x45   : > { %2578 = vrot.lane.b32.xlu1 %v3897_v27, %s4196_s27  ;;  %v1752_v4 = vrot.slane %v1750_v57, 5  ;;  %v1555_v39 = vshrl.u32 %v4463_v58, 16  ;;  %v1558_v5 = vshll.u32 %v4463_v58, 16  ;;  %v1568_v6 = vshrl.u32 %v4469_v9, 16  ;;  %v4525_v27 = vld [vmem:[%s4249_s22 + $0x8c] sm:$0x1] }
  0x46   : > { %v1406_v11 = vsel %vm4280_vm2, %v1404_v38, %v1405_v40  ;;  %v3905_v14 = vcombine.low %v4463_v58, %v4469_v9  ;;  %v1771_v15 = vshrl.u32 %v4479_v12, 16  ;;  %v1774_v16 = vshll.u32 %v4479_v12, 16  ;;  %v4535_v57 = vld [vmem:[%s4249_s22 + $0x2c] sm:$0x1] }
  0x47   : > { %2562 = vrot.lane.b32.xlu0 %v3889_v59, %s4196_s27  ;;  %v3890_v18 = vcombine.low %v1403_v2, %v1406_v11  ;;  %v1557_v20 = vrot.slane %v1555_v39, 4  ;;  %v1560_v22 = vrot.slane %v1558_v5, 5  ;;  %v1784_v23 = vshrl.u32 %v4484_v19, 16 }
  0x48   : > { %v1773_v25 = vrot.slane %v1771_v15, 4  ;;  %v1776_v26 = vrot.slane %v1774_v16, 5  ;;  %v3914_v29 = vcombine.low %v4479_v12, %v4484_v19  ;;  %v1579_v17 = vshrl.u32 %v4491_v8, 16  ;;  %v3777_v16 = vld [vmem:[%s4249_s22 + $0x18] sm:$0xe] }
  0x49   : > { %2580 = vrot.lane.b32.xlu1 %v3898_v0, %s4196_s27  ;;  %v1582_v32 = vshll.u32 %v4491_v8, 16  ;;  %v1592_v33 = vshrl.u32 %v4500_v28, 16  ;;  %v3906_v34 = vcombine.low %v4491_v8, %v4500_v28  ;;  %v1753_v36 = vor.u32 %v1752_v4, %v1749_v45  ;;  %v3785_v45 = vld [vmem:[%s4249_s22 + $0x78] sm:$0xe] }
  0x4a   : > { %v1581_v41 = vrot.slane %v1579_v17, 4  ;;  %v1756_v42 = vshll.u32 %v4456_v53, 16  ;;  %v1762_v43 = vrot.slane %v1760_v62, 4  ;;  %v1766_v1 = vshll.u32 %v4505_v24, 16 }
  0x4b   : > { %2564 = vrot.lane.b32.xlu0 %v3890_v18, %s4196_s27  ;;  %v1584_v35 = vrot.slane %v1582_v32, 5  ;;  %v1754_v44 = vrot.slane %v1753_v36, 4  ;;  %v1561_v46 = vor.u32 %v1560_v22, %v1557_v20  ;;  %v1564_v47 = vshll.u32 %v4469_v9, 16 }
  0x4c   : > { %v1758_v49 = vrot.slane %v1756_v42, 5  ;;  %v1768_v50 = vrot.slane %v1766_v1, 5  ;;  %v1570_v7 = vrot.slane %v1568_v6, 4  ;;  %v1574_v48 = vshll.u32 %v4516_v37, 16  ;;  %v4559_v42 = vld [vmem:[%s4249_s22 + $0x7c] sm:$0xf] }
  0x4d   : > { %2674 = vrot.lane.b32.xlu1 %v3913_v63, %s4197_s28  ;;  %v1562_v51 = vrot.slane %v1561_v46, 4  ;;  %v1566_v52 = vrot.slane %v1564_v47, 5  ;;  %v1777_v10 = vor.u32 %v1776_v26, %v1773_v25  ;;  %v1780_v31 = vshll.u32 %v4484_v19, 16  ;;  %v302_v25 = vld [vmem:[%s4249_s22 + $0x78] sm:$0xf] }
  0x4e   : > { %v1759_v3 = vsel %vm4338_vm5, %v1754_v44, %v1758_v49  ;;  %v1763_v54 = vor.u32 %v1762_v43, %v1758_v49  ;;  %v1576_v55 = vrot.slane %v1574_v48, 5  ;;  %v1786_v56 = vrot.slane %v1784_v23, 4  ;;  %v4570_v46 = vld [vmem:[%s4249_s22 + $0x80] sm:$0x1]  ;;  %v286_v49 = vld [vmem:[%s4249_s22 + $0x18] sm:$0xf] }
  0x4f   : > { %2658 = vrot.lane.b32.xlu0 %v3905_v14, %s4197_s28  ;;  %v1567_v58 = vsel %vm4338_vm5, %v1562_v51, %v1566_v52  ;;  %v1571_v59 = vor.u32 %v1570_v7, %v1566_v52  ;;  %v1778_v60 = vrot.slane %v1777_v10, 4  ;;  %v1782_v40 = vrot.slane %v1780_v31, 5  ;;  %v4578_v51 = vld [vmem:[%s4249_s22 + $0x1c] sm:$0xf] }
  0x50   : > { %v1764_v13 = vrot.slane %v1763_v54, 4  ;;  %v1790_v61 = vshll.u32 %v4525_v27, 16  ;;  %v1585_v62 = vor.u32 %v1584_v35, %v1581_v41  ;;  %v1588_v63 = vshll.u32 %v4500_v28, 16  ;;  %v4584_v54 = vld [vmem:[%s4249_s22 + $0x20] sm:$0x1] }
  0x51   : > { %2676 = vrot.lane.b32.xlu1 %v3914_v29, %s4197_s28  ;;  %v1572_v12 = vrot.slane %v1571_v59, 4  ;;  %v1783_v0 = vsel %vm4338_vm5, %v1778_v60, %v1782_v40  ;;  %v1787_v2 = vor.u32 %v1786_v56, %v1782_v40  ;;  %v1594_v38 = vrot.slane %v1592_v33, 4 }
  0x52   : > { %v1769_v4 = vsel %vm4338_vm5, %v1764_v13, %v1768_v50  ;;  %v1792_v39 = vrot.slane %v1790_v61, 5  ;;  %v1586_v5 = vrot.slane %v1585_v62, 4  ;;  %v1590_v6 = vrot.slane %v1588_v63, 5  ;;  %v3786_v62 = vld [vmem:[%s4249_s22 + $0x84] sm:$0xe] }
  0x53   : > { %2660 = vrot.lane.b32.xlu0 %v3906_v34, %s4197_s28  ;;  %v3929_v8 = vcombine.low %v1759_v3, %v1769_v4  ;;  %v1577_v11 = vsel %vm4338_vm5, %v1572_v12, %v1576_v55  ;;  %v1788_v14 = vrot.slane %v1787_v2, 4  ;;  %v1598_v15 = vshll.u32 %v4535_v57, 16 }
  0x54   : > { %v3921_v18 = vcombine.low %v1567_v58, %v1577_v11  ;;  %v1591_v20 = vsel %vm4338_vm5, %v1586_v5, %v1590_v6  ;;  %v1595_v22 = vor.u32 %v1594_v38, %v1590_v6  ;;  %v3801_v23 = vrot.slane %v3785_v45, 9  ;;  %v3778_v5 = vld [vmem:[%s4249_s22 + $0x24] sm:$0xe] }
  0x55   : > { %2754 = vrot.lane.b32.xlu1 %v3929_v8, %s4198_s29  ;;  %v1793_v26 = vsel %vm4338_vm5, %v1788_v14, %v1792_v39  ;;  %v1600_v29 = vrot.slane %v1598_v15, 5  ;;  %v2060_v17 = vrot.slane %v4456_v53, 5  ;;  %v2063_v32 = vrot.slane %v4505_v24, 5  ;;  %v4111_v6 = vld [vmem:[%s6186_s1] sm:$0xff]  }
  0x56   : > { %v3930_v33 = vcombine.low %v1783_v0, %v1793_v26  ;;  %v1596_v34 = vrot.slane %v1595_v22, 4  ;;  %v3793_v36 = vrot.slane %v3777_v16, 9  ;;  %v2004_v41 = vrot.slane %v4469_v9, 5  ;;  %4000 = vmatprep.subr.bf16.mxu0 %v4111_v6  ;;  %4042 = vmatprep.subr.bf16.mxu1 %v4111_v6 }
  0x57   : > { %2738 = vrot.lane.b32.xlu0 %v3921_v18, %s4198_s29  ;;  %v2061_v43 = vsel %vm4280_vm2, %v3801_v23, %v2060_v17  ;;  %v2062_v1 = vrot.slane %v2060_v17, 4  ;;  %v2007_v35 = vrot.slane %v4516_v37, 5  ;;  %v574_v53 = vshrl.u32 %v302_v25, 16  ;;  %v304_v23 = vld [vmem:[%s4249_s22 + $0x84] sm:$0xf]  ;;  %4001 = vmatpush3.bf16.msra.mxu0 %v4111_v6 }
  0x58   : > { %v1601_v24 = vsel %vm4338_vm5, %v1596_v34, %v1600_v29  ;;  %v2005_v44 = vsel %vm4280_vm2, %v3793_v36, %v2004_v41  ;;  %v2006_v9 = vrot.slane %v2004_v41, 4  ;;  %v577_v47 = vshll.u32 %v302_v25, 16  ;;  %4047 = vmatpush3.bf16.msra.mxu1 %v4111_v6  ;;  %v4610_v34 = vld [vmem:[%s4249_s22 + $0x88] sm:$0xf] }
  0x59   : > { %2756 = vrot.lane.b32.xlu1 %v3930_v33, %s4198_s29  ;;  %v3922_v50 = vcombine.low %v1591_v20, %v1601_v24  ;;  %v2064_v7 = vsel %vm4280_vm2, %v2062_v1, %v2063_v32  ;;  %v576_v37 = vrot.slane %v574_v53, 4  ;;  %v583_v48 = vshll.u32 %v4559_v42, 16  ;;  %v4112_v36 = vld [vmem:[%s6186_s1 + $0x8] sm:$0xff]  }
  0x5a   : > { %v3945_v52 = vcombine.low %v2061_v43, %v2064_v7  ;;  %v2008_v10 = vsel %vm4280_vm2, %v2006_v9, %v2007_v35  ;;  %v579_v31 = vrot.slane %v577_v47, 5  ;;  %v587_v3 = vshrl.u32 %v4559_v42, 16  ;;  %v4618_v35 = vld [vmem:[%s4249_s22 + $0x8c] sm:$0x1]  ;;  %v288_v9 = vld [vmem:[%s4249_s22 + $0x24] sm:$0xf]  ;;  %4002 = vmatprep.subr.bf16.mxu0 %v4112_v36  ;;  %4043 = vmatprep.subr.bf16.mxu1 %v4112_v36 }
  0x5b   : > { %2740 = vrot.lane.b32.xlu0 %v3922_v50, %s4198_s29  ;;  %v3937_v55 = vcombine.low %v2005_v44, %v2008_v10  ;;  %v585_v56 = vrot.slane %v583_v48, 5  ;;  %v593_v58 = vshll.u32 %v4570_v46, 16  ;;  %v382_v59 = vshrl.u32 %v286_v49, 16  ;;  %4003 = vmatpush3.bf16.msra.mxu0 %v4112_v36 }
  0x5c   : > { %v580_v60 = vor.u32 %v579_v31, %v576_v37  ;;  %v589_v40 = vrot.slane %v587_v3, 4  ;;  %v385_v13 = vshll.u32 %v286_v49, 16  ;;  %v391_v61 = vshll.u32 %v4578_v51, 16  ;;  %v4630_v37 = vld [vmem:[%s4249_s22 + $0x28] sm:$0xf]  ;;  %4048 = vmatpush3.bf16.msra.mxu1 %v4112_v36 }
  0x5d   : > { %2834 = vrot.lane.b32.xlu1 %v3945_v52, %s4199_s30  ;;  %v595_v63 = vrot.slane %v593_v58, 5  ;;  %v384_v12 = vrot.slane %v382_v59, 4  ;;  %v395_v0 = vshrl.u32 %v4578_v51, 16  ;;  %v401_v2 = vshll.u32 %v4584_v54, 16  ;;  %v4637_v3 = vld [vmem:[%s4249_s22 + $0x2c] sm:$0x1] }
  0x5e   : > { %v581_v38 = vrot.slane %v580_v60, 4  ;;  %v590_v45 = vor.u32 %v589_v40, %v585_v56  ;;  %v387_v4 = vrot.slane %v385_v13, 5  ;;  %v393_v39 = vrot.slane %v391_v61, 5  ;;  %v727_v60 = vld [vmem:[%s4249_s22 + $0x78] sm:$0xe]  ;;  %v4113_v40 = vld [vmem:[%s6186_s1 + $0x10] sm:$0xff]  }
  0x5f   : > { %2818 = vrot.lane.b32.xlu0 %v3937_v55, %s4199_s30  ;;  %v397_v8 = vrot.slane %v395_v0, 4  ;;  %v403_v11 = vrot.slane %v401_v2, 5  ;;  %v3802_v14 = vrot.slane %v3786_v62, 9  ;;  %v2067_v15 = vrot.slane %v4484_v19, 5  ;;  %4004 = vmatprep.subr.bf16.mxu0 %v4113_v40 }
  0x60   : > { %v586_v16 = vsel %vm4338_vm5, %v581_v38, %v585_v56  ;;  %v591_v18 = vrot.slane %v590_v45, 4  ;;  %v388_v20 = vor.u32 %v387_v4, %v384_v12  ;;  %v2070_v22 = vrot.slane %v4525_v27, 5  ;;  %v719_v45 = vld [vmem:[%s4249_s22 + $0x18] sm:$0xe]  ;;  %4044 = vmatprep.subr.bf16.mxu1 %v4113_v40  ;;  %4005 = vmatpush3.bf16.msra.mxu0 %v4113_v40 }
  0x61   : > { %v398_v25 = vor.u32 %v397_v8, %v393_v39  ;;  %v2068_v26 = vsel %vm4280_vm2, %v3802_v14, %v2067_v15  ;;  %v2069_v29 = vrot.slane %v2067_v15, 4  ;;  %v3794_v17 = vrot.slane %v3778_v5, 9  ;;  %v4116_v8 = vld [vmem:[%s6186_s1 + $0x18] sm:$0xff]   ;;  %4049 = vmatpush3.bf16.msra.mxu1 %v4113_v40 }
  0x62   : > { %v596_v19 = vsel %vm4338_vm5, %v591_v18, %v595_v63  ;;  %v389_v32 = vrot.slane %v388_v20, 4  ;;  %v2011_v33 = vrot.slane %v4500_v28, 5  ;;  %v2014_v27 = vrot.slane %v4535_v57, 5  ;;  %4006 = vmatprep.subr.bf16.mxu0 %v4116_v8  ;;  %4045 = vmatprep.subr.bf16.mxu1 %v4116_v8 }
  0x63   : > { %v3835_v41 = vcombine.low %v586_v16, %v596_v19  ;;  %v399_v43 = vrot.slane %v398_v25, 4  ;;  %v2071_v1 = vsel %vm4280_vm2, %v2069_v29, %v2070_v22  ;;  %v598_v53 = vshrl.u32 %v304_v23, 16  ;;  %v728_v25 = vld [vmem:[%s4249_s22 + $0x84] sm:$0xe] }
  0x64   : > { %v394_v28 = vsel %vm4338_vm5, %v389_v32, %v393_v39  ;;  %v3946_v24 = vcombine.low %v2068_v26, %v2071_v1  ;;  %v2012_v57 = vsel %vm4280_vm2, %v3794_v17, %v2011_v33  ;;  %v2013_v44 = vrot.slane %v2011_v33, 4  ;;  %4007 = vmatpush3.bf16.msra.mxu0 %v4116_v8 }
  0x65   : > { %2246 = vrot.lane.b32.xlu1 %v3835_v41, %s4194_s25  ;;  %v404_v47 = vsel %vm4338_vm5, %v399_v43, %v403_v11  ;;  %v600_v49 = vrot.slane %v598_v53, 4  ;;  %v601_v50 = vshll.u32 %v304_v23, 16  ;;  %v607_v7 = vshll.u32 %v4610_v34, 16  ;;  %4050 = vmatpush3.bf16.msra.mxu1 %v4116_v8 }
  0x66   : > { %v3827_v48 = vcombine.low %v394_v28, %v404_v47  ;;  %v2015_v52 = vsel %vm4280_vm2, %v2013_v44, %v2014_v27  ;;  %v611_v10 = vshrl.u32 %v4610_v34, 16  ;;  %v617_v31 = vshll.u32 %v4618_v35, 16  ;;  %v720_v27 = vld [vmem:[%s4249_s22 + $0x24] sm:$0xe] }
  0x67   : > { %v3938_v55 = vcombine.low %v2012_v57, %v2015_v52  ;;  %v603_v56 = vrot.slane %v601_v50, 5  ;;  %v609_v58 = vrot.slane %v607_v7, 5  ;;  %v406_v59 = vshrl.u32 %v288_v9, 16 }
  0x68   : > { %2230 = vrot.lane.b32.xlu0 %v3827_v48, %s4194_s25  ;;  %v613_v13 = vrot.slane %v611_v10, 4  ;;  %v619_v61 = vrot.slane %v617_v31, 5  ;;  %v409_v62 = vshll.u32 %v288_v9, 16  ;;  %v415_v63 = vshll.u32 %v4630_v37, 16  ;;  %v4687_v10 = vld [vmem:[%s4249_s22 + $0x24] sm:$0xf] }
  0x69   : > { %2836 = vrot.lane.b32.xlu1 %v3946_v24, %s4199_s30  ;;  %v604_v12 = vor.u32 %v603_v56, %v600_v49  ;;  %v408_v0 = vrot.slane %v406_v59, 4  ;;  %v419_v2 = vshrl.u32 %v4630_v37, 16  ;;  %v425_v38 = vshll.u32 %v4637_v3, 16  ;;  %v4680_v49 = vld [vmem:[%s4249_s22 + $0x88] sm:$0xf] }
  0x6a   : > { %v614_v4 = vor.u32 %v613_v13, %v609_v58  ;;  %v411_v39 = vrot.slane %v409_v62, 5  ;;  %v417_v5 = vrot.slane %v415_v63, 5  ;;  %v3643_v6 = vrot.slane %v727_v60, 9  ;;  %v4698_v59 = vld [vmem:[%s4249_s22 + $0x28] sm:$0xf] }
  0x6b   : > { %v605_v11 = vrot.slane %v604_v12, 4  ;;  %v421_v14 = vrot.slane %v419_v2, 4  ;;  %v427_v15 = vrot.slane %v425_v38, 5  ;;  %v856_v16 = vrot.slane %v4559_v42, 5  ;;  %v3671_v62 = vld [vmem:[%s4249_s22 + $0x90] sm:$0xf] }
  0x6c   : > { %2820 = vrot.lane.b32.xlu0 %v3938_v55, %s4199_s30  ;;  %v615_v18 = vrot.slane %v614_v4, 4  ;;  %v412_v20 = vor.u32 %v411_v39, %v408_v0  ;;  %v859_v22 = vrot.slane %v4570_v46, 5  ;;  %v3635_v23 = vrot.slane %v719_v45, 9  ;;  %v4708_v63 = vld [vmem:[%s4249_s22 + $0x94] sm:$0xf] }
  0x6d   : > { %v610_v26 = vsel %vm4338_vm5, %v605_v11, %v609_v58  ;;  %v422_v29 = vor.u32 %v421_v14, %v417_v5  ;;  %v857_v17 = vsel %vm4280_vm2, %v3643_v6, %v856_v16  ;;  %v858_v19 = vrot.slane %v856_v16, 4  ;;  %v4714_v45 = vld [vmem:[%s4249_s22 + $0x30] sm:$0xf]  ;;  %v4717_v4 = vld [vmem:[%s4249_s22 + $0x34] sm:$0xf] }
  0x6e   : > { %v620_v42 = vsel %vm4338_vm5, %v615_v18, %v619_v61  ;;  %v413_v32 = vrot.slane %v412_v20, 4  ;;  %v800_v33 = vrot.slane %v4578_v51, 5  ;;  %v803_v46 = vrot.slane %v4584_v54, 5  ;;  %v4672_v54 = vld [vmem:[%s4249_s22 + $0x84] sm:$0xf] }
  0x6f   : > { %v3836_v36 = vcombine.low %v610_v26, %v620_v42  ;;  %v423_v41 = vrot.slane %v422_v29, 4  ;;  %v860_v43 = vsel %vm4280_vm2, %v858_v19, %v859_v22  ;;  %v3644_v1 = vrot.slane %v728_v25, 9  ;;  %v4730_v25 = vld [vmem:[%s4249_s22 + $0x8c] sm:$0x1] }
  0x70   : > { %v418_v53 = vsel %vm4338_vm5, %v413_v32, %v417_v5  ;;  %v3851_v28 = vcombine.low %v857_v17, %v860_v43  ;;  %v801_v51 = vsel %vm4280_vm2, %v3635_v23, %v800_v33  ;;  %v802_v24 = vrot.slane %v800_v33, 4  ;;  %v4735_v42 = vld [vmem:[%s4249_s22 + $0x2c] sm:$0x1] }
  0x71   : > { %2248 = vrot.lane.b32.xlu1 %v3836_v36, %s4194_s25  ;;  %v428_v57 = vsel %vm4338_vm5, %v423_v41, %v427_v15  ;;  %v863_v44 = vrot.slane %v4610_v34, 5  ;;  %v866_v9 = vrot.slane %v4618_v35, 5  ;;  %v3636_v47 = vrot.slane %v720_v27, 9 }
  0x72   : > { %v3828_v50 = vcombine.low %v418_v53, %v428_v57  ;;  %v804_v7 = vsel %vm4280_vm2, %v802_v24, %v803_v46  ;;  %v807_v48 = vrot.slane %v4630_v37, 5  ;;  %v810_v52 = vrot.slane %v4637_v3, 5 }
  0x73   : > { %v3843_v31 = vcombine.low %v801_v51, %v804_v7  ;;  %v864_v34 = vsel %vm4280_vm2, %v3644_v1, %v863_v44  ;;  %v865_v35 = vrot.slane %v863_v44, 4  ;;  %v1186_v55 = vshrl.u32 %v4672_v54, 16 }
  0x74   : > { %2232 = vrot.lane.b32.xlu0 %v3828_v50, %s4194_s25  ;;  %v808_v56 = vsel %vm4280_vm2, %v3636_v47, %v807_v48  ;;  %v809_v37 = vrot.slane %v807_v48, 4  ;;  %v1189_v3 = vshll.u32 %v4672_v54, 16  ;;  %v1199_v58 = vshrl.u32 %v4680_v49, 16 }
  0x75   : > { %2326 = vrot.lane.b32.xlu1 %v3851_v28, %s4193_s24  ;;  %v867_v60 = vsel %vm4280_vm2, %v865_v35, %v866_v9  ;;  %v1188_v40 = vrot.slane %v1186_v55, 4  ;;  %v3867_v13 = vcombine.low %v4672_v54, %v4680_v49  ;;  %v994_v61 = vshrl.u32 %v4687_v10, 16  ;;  %v4744_v9 = vld [vmem:[%s4249_s22 + $0x98] sm:$0x1] }
  0x76   : > { %v3852_v12 = vcombine.low %v864_v34, %v867_v60  ;;  %v811_v0 = vsel %vm4280_vm2, %v809_v37, %v810_v52  ;;  %v1191_v2 = vrot.slane %v1189_v3, 5  ;;  %v997_v38 = vshll.u32 %v4687_v10, 16  ;;  %v4755_v37 = vld [vmem:[%s4249_s22 + $0x38] sm:$0x1] }
  0x77   : > { %v3844_v39 = vcombine.low %v808_v56, %v811_v0  ;;  %v996_v5 = vrot.slane %v994_v61, 4  ;;  %v1007_v6 = vshrl.u32 %v4698_v59, 16  ;;  %v3859_v8 = vcombine.low %v4687_v10, %v4698_v59 }
  0x78   : > { %2310 = vrot.lane.b32.xlu0 %v3843_v31, %s4193_s24  ;;  %v999_v11 = vrot.slane %v997_v38, 5  ;;  %v1210_v14 = vshrl.u32 %v3671_v62, 16  ;;  %v1213_v15 = vshll.u32 %v3671_v62, 16  ;;  %v1223_v16 = vshrl.u32 %v4708_v63, 16 }
  0x79   : > { %2328 = vrot.lane.b32.xlu1 %v3852_v12, %s4193_s24  ;;  %v3868_v18 = vcombine.low %v3671_v62, %v4708_v63  ;;  %v1018_v20 = vshrl.u32 %v4714_v45, 16  ;;  %v1021_v22 = vshll.u32 %v4714_v45, 16  ;;  %v1031_v23 = vshrl.u32 %v4717_v4, 16  ;;  %v3707_v62 = vld [vmem:[%s4249_s22 + $0x84] sm:$0xe] }
  0x7a   : > { %v1212_v26 = vrot.slane %v1210_v14, 4  ;;  %v1215_v29 = vrot.slane %v1213_v15, 5  ;;  %v3860_v17 = vcombine.low %v4714_v45, %v4717_v4  ;;  %v1192_v19 = vor.u32 %v1191_v2, %v1188_v40 }
  0x7b   : > { %v1020_v32 = vrot.slane %v1018_v20, 4  ;;  %v1023_v33 = vrot.slane %v1021_v22, 5  ;;  %v1195_v46 = vshll.u32 %v4680_v49, 16  ;;  %v1201_v27 = vrot.slane %v1199_v58, 4 }
  0x7c   : > { %2312 = vrot.lane.b32.xlu0 %v3844_v39, %s4193_s24  ;;  %v1193_v36 = vrot.slane %v1192_v19, 4  ;;  %v1205_v41 = vshll.u32 %v4730_v25, 16  ;;  %v1000_v43 = vor.u32 %v999_v11, %v996_v5  ;;  %v1003_v1 = vshll.u32 %v4698_v59, 16 }
  0x7d   : > { %2422 = vrot.lane.b32.xlu1 %v3867_v13, %s4192_s23  ;;  %v1197_v53 = vrot.slane %v1195_v46, 5  ;;  %v1009_v28 = vrot.slane %v1007_v6, 4  ;;  %v1013_v51 = vshll.u32 %v4735_v42, 16  ;;  %v1216_v24 = vor.u32 %v1215_v29, %v1212_v26 }
  0x7e   : > { %v1207_v54 = vrot.slane %v1205_v41, 5  ;;  %v1001_v57 = vrot.slane %v1000_v43, 4  ;;  %v1005_v44 = vrot.slane %v1003_v1, 5  ;;  %v1219_v47 = vshll.u32 %v4708_v63, 16  ;;  %v4788_v1 = vld [vmem:[%s4249_s22 + $0x90] sm:$0xf] }
  0x7f   : > { %v1198_v50 = vsel %vm4338_vm5, %v1193_v36, %v1197_v53  ;;  %v1202_v7 = vor.u32 %v1201_v27, %v1197_v53  ;;  %v1015_v48 = vrot.slane %v1013_v51, 5  ;;  %v1217_v52 = vrot.slane %v1216_v24, 4  ;;  %v4795_v24 = vld [vmem:[%s4249_s22 + $0x94] sm:$0xf] }
  0x80   : > { %2406 = vrot.lane.b32.xlu0 %v3859_v8, %s4192_s23  ;;  %v1006_v10 = vsel %vm4338_vm5, %v1001_v57, %v1005_v44  ;;  %v1010_v31 = vor.u32 %v1009_v28, %v1005_v44  ;;  %v1221_v34 = vrot.slane %v1219_v47, 5  ;;  %v1225_v35 = vrot.slane %v1223_v16, 4  ;;  %v3699_v8 = vld [vmem:[%s4249_s22 + $0x24] sm:$0xe]  ;;  %v4802_v47 = vld [vmem:[%s4249_s22 + $0x30] sm:$0xf] }
  0x81   : > { %2424 = vrot.lane.b32.xlu1 %v3868_v18, %s4192_s23  ;;  %v1203_v55 = vrot.slane %v1202_v7, 4  ;;  %v1229_v56 = vshll.u32 %v4744_v9, 16  ;;  %v1024_v3 = vor.u32 %v1023_v33, %v1020_v32  ;;  %v1027_v58 = vshll.u32 %v4717_v4, 16  ;;  %v3708_v18 = vld [vmem:[%s4249_s22 + $0x90] sm:$0xe] }
  0x82   : > { %v1011_v60 = vrot.slane %v1010_v31, 4  ;;  %v1222_v40 = vsel %vm4338_vm5, %v1217_v52, %v1221_v34  ;;  %v1226_v13 = vor.u32 %v1225_v35, %v1221_v34  ;;  %v1033_v61 = vrot.slane %v1031_v23, 4  ;;  %v3700_v33 = vld [vmem:[%s4249_s22 + $0x30] sm:$0xe]  ;;  %v4809_v52 = vld [vmem:[%s4249_s22 + $0x34] sm:$0xf] }
  0x83   : > { %v1208_v12 = vsel %vm4338_vm5, %v1203_v55, %v1207_v54  ;;  %v1231_v0 = vrot.slane %v1229_v56, 5  ;;  %v1025_v2 = vrot.slane %v1024_v3, 4  ;;  %v1029_v38 = vrot.slane %v1027_v58, 5 }
  0x84   : > { %2408 = vrot.lane.b32.xlu0 %v3860_v17, %s4192_s23  ;;  %v3883_v45 = vcombine.low %v1198_v50, %v1208_v12  ;;  %v1016_v39 = vsel %vm4338_vm5, %v1011_v60, %v1015_v48  ;;  %v1227_v5 = vrot.slane %v1226_v13, 4  ;;  %v1037_v6 = vshll.u32 %v4755_v37, 16  ;;  %v4826_v60 = vld [vmem:[%s4249_s22 + $0xa0] sm:$0xf]  ;;  %v4832_v12 = vld [vmem:[%s4249_s22 + $0x3c] sm:$0xf] }
  0x85   : > { %v3875_v11 = vcombine.low %v1006_v10, %v1016_v39  ;;  %v1030_v14 = vsel %vm4338_vm5, %v1025_v2, %v1029_v38  ;;  %v1034_v15 = vor.u32 %v1033_v61, %v1029_v38  ;;  %v3723_v16 = vrot.slane %v3707_v62, 9  ;;  %v4842_v39 = vld [vmem:[%s4249_s22 + $0x40] sm:$0xf] }
  0x86   : > { %2502 = vrot.lane.b32.xlu1 %v3883_v45, %s4195_s26  ;;  %v1232_v20 = vsel %vm4338_vm5, %v1227_v5, %v1231_v0  ;;  %v1039_v22 = vrot.slane %v1037_v6, 5  ;;  %v1465_v23 = vrot.slane %v4680_v49, 5  ;;  %v1468_v26 = vrot.slane %v4730_v25, 5 }
  0x87   : > { %v3884_v29 = vcombine.low %v1222_v40, %v1232_v20  ;;  %v1035_v17 = vrot.slane %v1034_v15, 4  ;;  %v3715_v19 = vrot.slane %v3699_v8, 9  ;;  %v1409_v32 = vrot.slane %v4698_v59, 5  ;;  %v4811_v10 = vpop.permute.xlu1 %2418 }
  0x88   : > { %2486 = vrot.lane.b32.xlu0 %v3875_v11, %s4195_s26  ;;  %v1466_v46 = vsel %vm4280_vm2, %v3723_v16, %v1465_v23  ;;  %v1467_v27 = vrot.slane %v1465_v23, 4  ;;  %v1412_v36 = vrot.slane %v4735_v42, 5  ;;  %v3724_v41 = vrot.slane %v3708_v18, 9 }
  0x89   : > { %v1040_v49 = vsel %vm4338_vm5, %v1035_v17, %v1039_v22  ;;  %v1410_v25 = vsel %vm4280_vm2, %v3715_v19, %v1409_v32  ;;  %v1411_v43 = vrot.slane %v1409_v32, 4  ;;  %v1472_v59 = vrot.slane %v4708_v63, 5  ;;  %v4848_v15 = vpop.permute.xlu0 %2402  ;;  %v4861_v32 = vld [vmem:[%s4249_s22 + $0x38] sm:$0x1] }
  0x8a   : > { %2504 = vrot.lane.b32.xlu1 %v3884_v29, %s4195_s26  ;;  %v3876_v53 = vcombine.low %v1030_v14, %v1040_v49  ;;  %v1469_v42 = vsel %vm4280_vm2, %v1467_v27, %v1468_v26  ;;  %v1475_v28 = vrot.slane %v4744_v9, 5  ;;  %v3716_v51 = vrot.slane %v3700_v33, 9  ;;  %v4846_v14 = vld [vmem:[%s4249_s22 + $0x98] sm:$0x1] }
  0x8b   : > { %v3899_v54 = vcombine.low %v1466_v46, %v1469_v42  ;;  %v1413_v57 = vsel %vm4280_vm2, %v1411_v43, %v1412_v36  ;;  %v1473_v63 = vsel %vm4280_vm2, %v3724_v41, %v1472_v59  ;;  %v1474_v44 = vrot.slane %v1472_v59, 4 }
  0x8c   : > { %2488 = vrot.lane.b32.xlu0 %v3876_v53, %s4195_s26  ;;  %v3891_v50 = vcombine.low %v1410_v25, %v1413_v57  ;;  %v1416_v9 = vrot.slane %v4717_v4, 5  ;;  %v1419_v7 = vrot.slane %v4755_v37, 5  ;;  %v1795_v48 = vshrl.u32 %v4788_v1, 16  ;;  %v4820_v4 = vld [vmem:[%s4249_s22 + $0x9c] sm:$0xf] }
  0x8d   : > { %v1476_v31 = vsel %vm4280_vm2, %v1474_v44, %v1475_v28  ;;  %v1798_v34 = vshll.u32 %v4788_v1, 16  ;;  %v1808_v35 = vshrl.u32 %v4795_v24, 16  ;;  %v3915_v55 = vcombine.low %v4788_v1, %v4795_v24 }
  0x8e   : > { %2582 = vrot.lane.b32.xlu1 %v3899_v54, %s4196_s27  ;;  %v3900_v56 = vcombine.low %v1473_v63, %v1476_v31  ;;  %v1417_v37 = vsel %vm4280_vm2, %v3716_v51, %v1416_v9  ;;  %v1418_v3 = vrot.slane %v1416_v9, 4  ;;  %v1797_v58 = vrot.slane %v1795_v48, 4  ;;  %v4870_v54 = vld [vmem:[%s4249_s22 + $0xa4] sm:$0x1] }
  0x8f   : > { %v1800_v40 = vrot.slane %v1798_v34, 5  ;;  %v1603_v13 = vshrl.u32 %v4802_v47, 16  ;;  %v1606_v61 = vshll.u32 %v4802_v47, 16  ;;  %v1616_v62 = vshrl.u32 %v4809_v52, 16  ;;  %v4854_v23 = vpop.permute.xlu1 %2322 }
  0x90   : > { %2566 = vrot.lane.b32.xlu0 %v3891_v50, %s4196_s27  ;;  %v1420_v0 = vsel %vm4280_vm2, %v1418_v3, %v1419_v7  ;;  %v3907_v2 = vcombine.low %v4802_v47, %v4809_v52  ;;  %v1819_v38 = vshrl.u32 %v4820_v4, 16  ;;  %v1822_v45 = vshll.u32 %v4820_v4, 16 }
  0x91   : > { %v3892_v5 = vcombine.low %v1417_v37, %v1420_v0  ;;  %v1605_v6 = vrot.slane %v1603_v13, 4  ;;  %v1608_v8 = vrot.slane %v1606_v61, 5  ;;  %v1832_v11 = vshrl.u32 %v4826_v60, 16  ;;  %v4873_v44 = vpop.permute.xlu0 %2306  ;;  %v4885_v37 = vld [vmem:[%s4249_s22 + $0x44] sm:$0x1] }
  0x92   : > { %2584 = vrot.lane.b32.xlu1 %v3900_v56, %s4196_s27  ;;  %v1821_v16 = vrot.slane %v1819_v38, 4  ;;  %v1824_v18 = vrot.slane %v1822_v45, 5  ;;  %v3916_v20 = vcombine.low %v4820_v4, %v4826_v60  ;;  %v1627_v22 = vshrl.u32 %v4832_v12, 16 }
  0x93   : > { %v1630_v26 = vshll.u32 %v4832_v12, 16  ;;  %v1640_v29 = vshrl.u32 %v4842_v39, 16  ;;  %v3908_v17 = vcombine.low %v4832_v12, %v4842_v39  ;;  %v1801_v19 = vor.u32 %v1800_v40, %v1797_v58  ;;  %v4878_v48 = vpop.permute.xlu1 %2324  ;;  %v3787_v12 = vld [vmem:[%s4249_s22 + $0x90] sm:$0xe] }
  0x94   : > { %2568 = vrot.lane.b32.xlu0 %v3892_v5, %s4196_s27  ;;  %v1629_v33 = vrot.slane %v1627_v22, 4  ;;  %v1804_v46 = vshll.u32 %v4795_v24, 16  ;;  %v1810_v27 = vrot.slane %v1808_v35, 4  ;;  %v1814_v36 = vshll.u32 %v4846_v14, 16 }
  0x95   : > { %v1632_v41 = vrot.slane %v1630_v26, 5  ;;  %v1802_v49 = vrot.slane %v1801_v19, 4  ;;  %v1609_v25 = vor.u32 %v1608_v8, %v1605_v6  ;;  %v1612_v43 = vshll.u32 %v4809_v52, 16 }
  0x96   : > { %2678 = vrot.lane.b32.xlu1 %v3915_v55, %s4197_s28  ;;  %v1806_v59 = vrot.slane %v1804_v46, 5  ;;  %v1816_v1 = vrot.slane %v1814_v36, 5  ;;  %v1618_v53 = vrot.slane %v1616_v62, 4  ;;  %v1622_v42 = vshll.u32 %v4861_v32, 16 }
  0x97   : > { %v1610_v28 = vrot.slane %v1609_v25, 4  ;;  %v1614_v51 = vrot.slane %v1612_v43, 5  ;;  %v1825_v57 = vor.u32 %v1824_v18, %v1821_v16  ;;  %v1828_v63 = vshll.u32 %v4826_v60, 16  ;;  %v3779_v16 = vld [vmem:[%s4249_s22 + $0x30] sm:$0xe]  ;;  %v4898_v18 = vpop.permute.xlu0 %2308 }
  0x98   : > { %2662 = vrot.lane.b32.xlu0 %v3907_v2, %s4197_s28  ;;  %v1807_v47 = vsel %vm4338_vm5, %v1802_v49, %v1806_v59  ;;  %v1811_v50 = vor.u32 %v1810_v27, %v1806_v59  ;;  %v1624_v9 = vrot.slane %v1622_v42, 5  ;;  %v1834_v7 = vrot.slane %v1832_v11, 4  ;;  %v4913_v59 = vld [vmem:[%s4249_s22 + $0x94] sm:$0xf] }
  0x99   : > { %v1615_v31 = vsel %vm4338_vm5, %v1610_v28, %v1614_v51  ;;  %v1619_v34 = vor.u32 %v1618_v53, %v1614_v51  ;;  %v1826_v35 = vrot.slane %v1825_v57, 4  ;;  %v1830_v55 = vrot.slane %v1828_v63, 5  ;;  %v4923_v57 = vld [vmem:[%s4249_s22 + $0x98] sm:$0x1]  ;;  %v290_v63 = vld [vmem:[%s4249_s22 + $0x30] sm:$0xf] }
  0x9a   : > { %2680 = vrot.lane.b32.xlu1 %v3916_v20, %s4197_s28  ;;  %v1812_v4 = vrot.slane %v1811_v50, 4  ;;  %v1838_v56 = vshll.u32 %v4870_v54, 16  ;;  %v1633_v3 = vor.u32 %v1632_v41, %v1629_v33  ;;  %v1636_v58 = vshll.u32 %v4842_v39, 16 }
  0x9b   : > { %v1620_v40 = vrot.slane %v1619_v34, 4  ;;  %v1831_v13 = vsel %vm4338_vm5, %v1826_v35, %v1830_v55  ;;  %v1835_v61 = vor.u32 %v1834_v7, %v1830_v55  ;;  %v1642_v62 = vrot.slane %v1640_v29, 4  ;;  %v4931_v7 = vld [vmem:[%s4249_s22 + $0x34] sm:$0xf] }
  0x9c   : > { %2664 = vrot.lane.b32.xlu0 %v3908_v17, %s4197_s28  ;;  %v1817_v0 = vsel %vm4338_vm5, %v1812_v4, %v1816_v1  ;;  %v1840_v2 = vrot.slane %v1838_v56, 5  ;;  %v1634_v38 = vrot.slane %v1633_v3, 4  ;;  %v1638_v45 = vrot.slane %v1636_v58, 5  ;;  %v306_v17 = vld [vmem:[%s4249_s22 + $0x90] sm:$0xf]  ;;  %v4903_v19 = vpop.permute.xlu1 %2228 }
  0x9d   : > { %v3931_v5 = vcombine.low %v1807_v47, %v1817_v0  ;;  %v1625_v6 = vsel %vm4338_vm5, %v1620_v40, %v1624_v9  ;;  %v1836_v8 = vrot.slane %v1835_v61, 4  ;;  %v1646_v11 = vshll.u32 %v4885_v37, 16  ;;  %v4937_v56 = vld [vmem:[%s4249_s22 + $0x38] sm:$0x1] }
  0x9e   : > { %v3923_v20 = vcombine.low %v1615_v31, %v1625_v6  ;;  %v1639_v22 = vsel %vm4338_vm5, %v1634_v38, %v1638_v45  ;;  %v1643_v26 = vor.u32 %v1642_v62, %v1638_v45  ;;  %v3803_v29 = vrot.slane %v3787_v12, 9 }
  0x9f   : > { %2758 = vrot.lane.b32.xlu1 %v3931_v5, %s4198_s29  ;;  %v1841_v33 = vsel %vm4338_vm5, %v1836_v8, %v1840_v2  ;;  %v1648_v46 = vrot.slane %v1646_v11, 5  ;;  %v2074_v27 = vrot.slane %v4795_v24, 5  ;;  %v2077_v36 = vrot.slane %v4846_v14, 5 }
  0xa0   : > { %2742 = vrot.lane.b32.xlu0 %v3923_v20, %s4198_s29  ;;  %v3932_v41 = vcombine.low %v1831_v13, %v1841_v33  ;;  %v1644_v49 = vrot.slane %v1643_v26, 4  ;;  %v3795_v25 = vrot.slane %v3779_v16, 9  ;;  %v2018_v43 = vrot.slane %v4809_v52, 5  ;;  %v2227_v31 = vpop.permute.xlu0 %2226 }
  0xa1   : > { %v2075_v1 = vsel %vm4280_vm2, %v3803_v29, %v2074_v27  ;;  %v2076_v53 = vrot.slane %v2074_v27, 4  ;;  %v2021_v42 = vrot.slane %v4861_v32, 5  ;;  %v622_v24 = vshrl.u32 %v306_v17, 16 }
  0xa2   : > { %v1649_v14 = vsel %vm4338_vm5, %v1644_v49, %v1648_v46  ;;  %v2019_v28 = vsel %vm4280_vm2, %v3795_v25, %v2018_v43  ;;  %v2020_v51 = vrot.slane %v2018_v43, 4  ;;  %v625_v52 = vshll.u32 %v306_v17, 16 }
  0xa3   : > { %2760 = vrot.lane.b32.xlu1 %v3932_v41, %s4198_s29  ;;  %v3924_v47 = vcombine.low %v1639_v22, %v1649_v14  ;;  %v2078_v50 = vsel %vm4280_vm2, %v2076_v53, %v2077_v36  ;;  %v624_v32 = vrot.slane %v622_v24, 4  ;;  %v631_v9 = vshll.u32 %v4913_v59, 16  ;;  %v3788_v22 = vld [vmem:[%s4249_s22 + $0x9c] sm:$0xe]  ;;  %v4140_v36 = vld [vmem:[%s4249_s22 + $0x4] sm:$0xf] }
  0xa4   : > { %v3947_v34 = vcombine.low %v2075_v1, %v2078_v50  ;;  %v2022_v35 = vsel %vm4280_vm2, %v2020_v51, %v2021_v42  ;;  %v627_v55 = vrot.slane %v625_v52, 5  ;;  %v635_v4 = vshrl.u32 %v4913_v59, 16  ;;  %v4939_v3 = vpop.permute.xlu1 %2244  ;;  %v4141_v41 = vld [vmem:[%s4249_s22] sm:$0xf]  ;;  %v4142_v1 = vld [vmem:[%s4249_s22 + $0x10] sm:$0xf] }
  0xa5   : > { %2744 = vrot.lane.b32.xlu0 %v3924_v47, %s4198_s29  ;;  %v3939_v58 = vcombine.low %v2019_v28, %v2022_v35  ;;  %v633_v40 = vrot.slane %v631_v9, 5  ;;  %v641_v13 = vshll.u32 %v4923_v57, 16  ;;  %v430_v61 = vshrl.u32 %v290_v63, 16  ;;  %v4143_v53 = vld [vmem:[%s4249_s22 + $0xc] sm:$0xf] }
  0xa6   : > { %v628_v62 = vor.u32 %v627_v55, %v624_v32  ;;  %v637_v12 = vrot.slane %v635_v4, 4  ;;  %v433_v0 = vshll.u32 %v290_v63, 16  ;;  %v439_v2 = vshll.u32 %v4931_v7, 16  ;;  %v3780_v14 = vld [vmem:[%s4249_s22 + $0x3c] sm:$0xe] }
  0xa7   : > { %2838 = vrot.lane.b32.xlu1 %v3947_v34, %s4199_s30  ;;  %v643_v38 = vrot.slane %v641_v13, 5  ;;  %v432_v45 = vrot.slane %v430_v61, 4  ;;  %v443_v5 = vshrl.u32 %v4931_v7, 16  ;;  %v449_v6 = vshll.u32 %v4937_v56, 16  ;;  %v308_v9 = vld [vmem:[%s4249_s22 + $0x9c] sm:$0xf] }
  0xa8   : > { %v629_v8 = vrot.slane %v628_v62, 4  ;;  %v638_v11 = vor.u32 %v637_v12, %v633_v40  ;;  %v435_v16 = vrot.slane %v433_v0, 5  ;;  %v441_v20 = vrot.slane %v439_v2, 5  ;;  %v4948_v26 = vpop.permute.xlu1 %2420  ;;  %v4144_v13 = vld [vmem:[%s4249_s22 + $0x70] sm:$0xf] }
  0xa9   : > { %2822 = vrot.lane.b32.xlu0 %v3939_v58, %s4199_s30  ;;  %v445_v29 = vrot.slane %v443_v5, 4  ;;  %v4951_v17 = vpop.permute.xlu0 %2242  ;;  %v3809_v49 = vcombine.low %v4141_v41, %v4140_v36  ;;  %v451_v43 = vrot.slane %v449_v6, 5  ;;  %v3810_v42 = vcombine.low %v4143_v53, %v4142_v1  ;;  %v4145_v61 = vld [vmem:[%s4249_s22 + $0x6c] sm:$0xf]  ;;  %v4982_v12 = vld [vmem:[%s4249_s22 + $0xa0] sm:$0xf] }
  0xaa   : > { %v634_v33 = vsel %vm4338_vm5, %v629_v8, %v633_v40  ;;  %v639_v46 = vrot.slane %v638_v11, 4  ;;  %v436_v27 = vor.u32 %v435_v16, %v432_v45  ;;  %v3804_v24 = vrot.slane %v3788_v22, 9  ;;  %v4991_v45 = vld [vmem:[%s4249_s22 + $0xa4] sm:$0x1]  ;;  %v4147_v11 = vld [vmem:[%s4249_s22 + $0x60] sm:$0xf] }
  0xab   : > { %v446_v25 = vor.u32 %v445_v29, %v441_v20  ;;  %v2081_v52 = vrot.slane %v4826_v60, 5  ;;  %v2853_v50 = vsel %vm2850_vm6, %v3809_v49, %v2227_v31  ;;  %v2084_v32 = vrot.slane %v4870_v54, 5  ;;  %v4146_v8 = vld [vmem:[%s4249_s22 + $0x64] sm:$0xf] }
  0xac   : > { %v644_v28 = vsel %vm4338_vm5, %v639_v46, %v643_v38  ;;  %v437_v51 = vrot.slane %v436_v27, 4  ;;  %v4968_v35 = vpop.permute.xlu1 %2498  ;;  %v3796_v58 = vrot.slane %v3780_v14, 9  ;;  %v2025_v31 = vrot.slane %v4842_v39, 5  ;;  %v5007_v27 = vld [vmem:[%s4249_s22 + $0x40] sm:$0xf] }
  0xad   : > { %v3837_v63 = vcombine.low %v634_v33, %v644_v28  ;;  %v447_v47 = vrot.slane %v446_v25, 4  ;;  %v4966_v34 = vpop.permute.xlu0 %2404  ;;  %v2082_v60 = vsel %vm4280_vm2, %v3804_v24, %v2081_v52  ;;  %v2083_v4 = vrot.slane %v2081_v52, 4 }
  0xae   : > { %v442_v55 = vsel %vm4338_vm5, %v437_v51, %v441_v20  ;;  %v2028_v40 = vrot.slane %v4885_v37, 5  ;;  %v3818_v62 = vcombine.low %v4145_v61, %v4144_v13  ;;  %v4986_v2 = vsel %vm2850_vm6, %v3810_v42, %v4903_v19  ;;  %v292_v20 = vld [vmem:[%s4249_s22 + $0x3c] sm:$0xf] }
  0xaf   : > { %2250 = vrot.lane.b32.xlu1 %v3837_v63, %s4194_s25  ;;  %v452_v54 = vsel %vm4338_vm5, %v447_v47, %v451_v43  ;;  %v2085_v38 = vsel %vm4280_vm2, %v2083_v4, %v2084_v32  ;;  %v646_v39 = vshrl.u32 %v308_v9, 16  ;;  %v2026_v37 = vsel %vm4280_vm2, %v3796_v58, %v2025_v31 }
  0xb0   : > { %v3829_v0 = vcombine.low %v442_v55, %v452_v54  ;;  %v3948_v5 = vcombine.low %v2082_v60, %v2085_v38  ;;  %v2027_v6 = vrot.slane %v2025_v31, 4  ;;  %v3817_v16 = vcombine.low %v4147_v11, %v4146_v8  ;;  %v721_v38 = vld [vmem:[%s4249_s22 + $0x30] sm:$0xe] }
  0xb1   : > { %v4998_v22 = vpop.permute.xlu0 %2482  ;;  %v5003_v19 = vsel %vm2899_vm7, %v2853_v50, %v4873_v44  ;;  %v648_v29 = vrot.slane %v646_v39, 4  ;;  %v649_v33 = vshll.u32 %v308_v9, 16  ;;  %v655_v46 = vshll.u32 %v4982_v12, 16  ;;  %v5017_v44 = vld [vmem:[%s4249_s22 + $0x44] sm:$0x1] }
  0xb2   : > { %2234 = vrot.lane.b32.xlu0 %v3829_v0, %s4194_s25  ;;  %v2029_v36 = vsel %vm4280_vm2, %v2027_v6, %v2028_v40  ;;  %v2880_v41 = vsel %vm2850_vm6, %v3818_v62, %v4939_v3  ;;  %v659_v49 = vshrl.u32 %v4982_v12, 16  ;;  %v665_v25 = vshll.u32 %v4991_v45, 16 }
  0xb3   : > { %2840 = vrot.lane.b32.xlu1 %v3948_v5, %s4199_s30  ;;  %v5019_v43 = vpop.permute.xlu1 %2500  ;;  %v3940_v1 = vcombine.low %v2026_v37, %v2029_v36  ;;  %v651_v53 = vrot.slane %v649_v33, 5  ;;  %v657_v42 = vrot.slane %v655_v46, 5  ;;  %v454_v24 = vshrl.u32 %v292_v20, 16 }
  0xb4   : > { %v2877_v14 = vsel %vm2850_vm6, %v3817_v16, %v4951_v17  ;;  %v661_v28 = vrot.slane %v659_v49, 4  ;;  %v457_v51 = vshll.u32 %v292_v20, 16  ;;  %v463_v3 = vshll.u32 %v5007_v27, 16  ;;  %v729_v17 = vld [vmem:[%s4249_s22 + $0x90] sm:$0xe] }
  0xb5   : > { %v5024_v52 = vpop.permute.xlu0 %2484  ;;  %v652_v63 = vor.u32 %v651_v53, %v648_v29  ;;  %v456_v47 = vrot.slane %v454_v24, 4  ;;  %v467_v50 = vshrl.u32 %v5007_v27, 16  ;;  %v473_v32 = vshll.u32 %v5017_v44, 16 }
  0xb6   : > { %2824 = vrot.lane.b32.xlu0 %v3940_v1, %s4199_s30  ;;  %v662_v9 = vor.u32 %v661_v28, %v657_v42  ;;  %v667_v55 = vrot.slane %v665_v25, 5  ;;  %v459_v60 = vrot.slane %v457_v51, 5  ;;  %v465_v4 = vrot.slane %v463_v3, 5  ;;  %v722_v28 = vld [vmem:[%s4249_s22 + $0x3c] sm:$0xe] }
  0xb7   : > { %v5030_v58 = vpop.permute.xlu1 %2578  ;;  %v2917_v54 = vsel %vm2899_vm7, %v2877_v14, %v4854_v23  ;;  %v653_v31 = vrot.slane %v652_v63, 4  ;;  %v469_v40 = vrot.slane %v467_v50, 4  ;;  %v2919_v13 = vsel %vm2899_vm7, %v2880_v41, %v4878_v48 }
  0xb8   : > { %v663_v61 = vrot.slane %v662_v9, 4  ;;  %v460_v62 = vor.u32 %v459_v60, %v456_v47  ;;  %v475_v0 = vrot.slane %v473_v32, 5  ;;  %v2952_v6 = vsel %vm2932_vm8, %v2919_v13, %v4948_v26 }
  0xb9   : > { %v5037_v39 = vpop.permute.xlu0 %2562  ;;  %v658_v5 = vsel %vm4338_vm5, %v653_v31, %v657_v42  ;;  %v470_v37 = vor.u32 %v469_v40, %v465_v4  ;;  %v3645_v23 = vrot.slane %v729_v17, 9  ;;  %v870_v48 = vrot.slane %v4913_v59, 5  ;;  %v730_v42 = vld [vmem:[%s4249_s22 + $0x9c] sm:$0xe] }
  0xba   : > { %v668_v8 = vsel %vm4338_vm5, %v663_v61, %v667_v55  ;;  %v461_v11 = vrot.slane %v460_v62, 4  ;;  %v873_v16 = vrot.slane %v4923_v57, 5  ;;  %v3637_v46 = vrot.slane %v721_v38, 9  ;;  %v5087_v55 = vld [vmem:[%s4249_s22 + $0xa0] sm:$0xf] }
  0xbb   : > { %v5047_v20 = vpop.permute.xlu1 %2580  ;;  %v3838_v29 = vcombine.low %v658_v5, %v668_v8  ;;  %v471_v33 = vrot.slane %v470_v37, 4  ;;  %v814_v36 = vrot.slane %v4931_v7, 5  ;;  %v871_v41 = vsel %vm4280_vm2, %v3645_v23, %v870_v48  ;;  %v3657_v17 = vld [vmem:[%s4249_s22 + $0x3c] sm:$0xf]  ;;  %v3675_v5 = vld [vmem:[%s4249_s22 + $0xa8] sm:$0xf] }
  0xbc   : > { %v466_v26 = vsel %vm4338_vm5, %v461_v11, %v465_v4  ;;  %v872_v49 = vrot.slane %v870_v48, 4  ;;  %v817_v59 = vrot.slane %v4937_v56, 5  ;;  %v2903_v7 = vsel %vm2899_vm7, %v4986_v2, %v4898_v18 }
  0xbd   : > { %v5055_v25 = vpop.permute.xlu0 %2564  ;;  %2252 = vrot.lane.b32.xlu1 %v3838_v29, %s4194_s25  ;;  %v476_v57 = vsel %vm4338_vm5, %v471_v33, %v475_v0  ;;  %v815_v1 = vsel %vm4280_vm2, %v3637_v46, %v814_v36  ;;  %v816_v53 = vrot.slane %v814_v36, 4  ;;  %v2936_v56 = vsel %vm2932_vm8, %v2903_v7, %v4966_v34  ;;  %v5081_v34 = vld [vmem:[%s4249_s22 + $0x9c] sm:$0xf]  ;;  %v5116_v0 = vld [vmem:[%s4249_s22 + $0x40] sm:$0xf] }
  0xbe   : > { %v3830_v24 = vcombine.low %v466_v26, %v476_v57  ;;  %v874_v14 = vsel %vm4280_vm2, %v872_v49, %v873_v16  ;;  %v2950_v2 = vsel %vm2932_vm8, %v2917_v54, %v4811_v10  ;;  %v2934_v63 = vsel %vm2932_vm8, %v5003_v19, %v4848_v15  ;;  %v5126_v29 = vld [vmem:[%s4249_s22 + $0xac] sm:$0xf]  ;;  %v3659_v33 = vld [vmem:[%s4249_s22 + $0x48] sm:$0xf] }
  0xbf   : > { %v5071_v51 = vpop.permute.xlu1 %2674  ;;  %v3853_v3 = vcombine.low %v871_v41, %v874_v14  ;;  %v818_v18 = vsel %vm4280_vm2, %v816_v53, %v817_v59  ;;  %v3646_v50 = vrot.slane %v730_v42, 9  ;;  %v877_v32 = vrot.slane %v4982_v12, 5  ;;  %v5134_v49 = vld [vmem:[%s4249_s22 + $0x4c] sm:$0xf] }
  0xc0   : > { %2236 = vrot.lane.b32.xlu0 %v3830_v24, %s4194_s25  ;;  %v3845_v47 = vcombine.low %v815_v1, %v818_v18  ;;  %v880_v9 = vrot.slane %v4991_v45, 5  ;;  %v2983_v10 = vsel %vm2965_vm9, %v2950_v2, %v4968_v35  ;;  %v3638_v15 = vrot.slane %v722_v28, 9  ;;  %v5149_v28 = vld [vmem:[%s4249_s22 + $0xa4] sm:$0x1] }
  0xc1   : > { %v5089_v60 = vpop.permute.xlu0 %2658  ;;  %2330 = vrot.lane.b32.xlu1 %v3853_v3, %s4193_s24  ;;  %v821_v19 = vrot.slane %v5007_v27, 5  ;;  %v824_v4 = vrot.slane %v5017_v44, 5  ;;  %v2967_v12 = vsel %vm2965_vm9, %v2934_v63, %v4998_v22  ;;  %v878_v45 = vsel %vm4280_vm2, %v3646_v50, %v877_v32  ;;  %v5154_v63 = vld [vmem:[%s4249_s22 + $0x44] sm:$0x1] }
  0xc2   : > { %v879_v54 = vrot.slane %v877_v32, 4  ;;  %v1234_v31 = vshrl.u32 %v5081_v34, 16  ;;  %v2985_v44 = vsel %vm2965_vm9, %v2952_v6, %v5019_v43  ;;  %v1237_v13 = vshll.u32 %v5081_v34, 16 }
  0xc3   : > { %v5102_v40 = vpop.permute.xlu1 %2676  ;;  %v822_v35 = vsel %vm4280_vm2, %v3638_v15, %v821_v19  ;;  %v823_v27 = vrot.slane %v821_v19, 4  ;;  %v2969_v61 = vsel %vm2965_vm9, %v2936_v56, %v5024_v52  ;;  %v1247_v62 = vshrl.u32 %v5087_v55, 16 }
  0xc4   : > { %2314 = vrot.lane.b32.xlu0 %v3845_v47, %s4193_s24  ;;  %v881_v22 = vsel %vm4280_vm2, %v879_v54, %v880_v9  ;;  %v1042_v38 = vshrl.u32 %v3657_v17, 16  ;;  %v1236_v23 = vrot.slane %v1234_v31, 4  ;;  %v1045_v8 = vshll.u32 %v3657_v17, 16 }
  0xc5   : > { %v5119_v37 = vpop.permute.xlu0 %2660  ;;  %v3854_v43 = vcombine.low %v878_v45, %v881_v22  ;;  %v825_v6 = vsel %vm4280_vm2, %v823_v27, %v824_v4  ;;  %v1239_v48 = vrot.slane %v1237_v13, 5  ;;  %v3869_v52 = vcombine.low %v5081_v34, %v5087_v55  ;;  %v5175_v27 = vld [vmem:[%s4249_s22 + $0xb0] sm:$0x1] }
  0xc6   : > { %v3846_v11 = vcombine.low %v822_v35, %v825_v6  ;;  %v1044_v16 = vrot.slane %v1042_v38, 4  ;;  %v1055_v36 = vshrl.u32 %v5116_v0, 16  ;;  %v1258_v26 = vshrl.u32 %v3675_v5, 16 }
  0xc7   : > { %v5129_v46 = vpop.permute.xlu1 %2754  ;;  %2332 = vrot.lane.b32.xlu1 %v3854_v43, %s4193_s24  ;;  %v1261_v41 = vshll.u32 %v3675_v5, 16  ;;  %v1047_v59 = vrot.slane %v1045_v8, 5  ;;  %v3861_v57 = vcombine.low %v3657_v17, %v5116_v0  ;;  %v3016_v7 = vsel %vm2998_vm10, %v2983_v10, %v5030_v58 }
  0xc8   : > { %2316 = vrot.lane.b32.xlu0 %v3846_v11, %s4193_s24  ;;  %v5142_v1 = vsel %vm2998_vm10, %v2967_v12, %v5037_v39  ;;  %v1260_v42 = vrot.slane %v1258_v26, 4  ;;  %v1271_v56 = vshrl.u32 %v5126_v29, 16  ;;  %v3870_v14 = vcombine.low %v3675_v5, %v5126_v29 }
  0xc9   : > { %v5144_v53 = vpop.permute.xlu0 %2738  ;;  %v1263_v24 = vrot.slane %v1261_v41, 5  ;;  %v1066_v3 = vshrl.u32 %v3659_v33, 16  ;;  %v1069_v18 = vshll.u32 %v3659_v33, 16  ;;  %v1079_v2 = vshrl.u32 %v5134_v49, 16 }
  0xca   : > { %v3862_v58 = vcombine.low %v3659_v33, %v5134_v49  ;;  %v5161_v34 = vsel %vm2998_vm10, %v2985_v44, %v5047_v20  ;;  %v5165_v47 = vsel %vm2998_vm10, %v2969_v61, %v5055_v25  ;;  %v1240_v50 = vor.u32 %v1239_v48, %v1236_v23 }
  0xcb   : > { %v5156_v39 = vpop.permute.xlu1 %2756  ;;  %2426 = vrot.lane.b32.xlu1 %v3869_v52, %s4192_s23  ;;  %v1243_v32 = vshll.u32 %v5087_v55, 16  ;;  %v1249_v9 = vrot.slane %v1247_v62, 4  ;;  %v1253_v10 = vshll.u32 %v5149_v28, 16  ;;  %v1048_v15 = vor.u32 %v1047_v59, %v1044_v16  ;;  %v5188_v16 = vld [vmem:[%s4249_s22 + $0x50] sm:$0x1] }
  0xcc   : > { %2410 = vrot.lane.b32.xlu0 %v3861_v57, %s4192_s23  ;;  %v1051_v19 = vshll.u32 %v5116_v0, 16  ;;  %v1241_v4 = vrot.slane %v1240_v50, 4  ;;  %v1057_v20 = vrot.slane %v1055_v36, 4  ;;  %v1061_v12 = vshll.u32 %v5154_v63, 16 }
  0xcd   : > { %v1245_v17 = vrot.slane %v1243_v32, 5  ;;  %v5172_v45 = vpop.permute.xlu0 %2740  ;;  %v1068_v25 = vrot.slane %v1066_v3, 4  ;;  %v1071_v54 = vrot.slane %v1069_v18, 5  ;;  %v1049_v31 = vrot.slane %v1048_v15, 4  ;;  %v3709_v18 = vld [vmem:[%s4249_s22 + $0x9c] sm:$0xe] }
  0xce   : > { %v1053_v35 = vrot.slane %v1051_v19, 5  ;;  %v1255_v22 = vrot.slane %v1253_v10, 5  ;;  %v1063_v38 = vrot.slane %v1061_v12, 5  ;;  %v1264_v5 = vor.u32 %v1263_v24, %v1260_v42  ;;  %v3701_v10 = vld [vmem:[%s4249_s22 + $0x3c] sm:$0xe] }
  0xcf   : > { %2428 = vrot.lane.b32.xlu1 %v3870_v14, %s4192_s23  ;;  %v1246_v44 = vsel %vm4338_vm5, %v1241_v4, %v1245_v17  ;;  %v1250_v13 = vor.u32 %v1249_v9, %v1245_v17  ;;  %v5183_v43 = vpop.permute.xlu1 %2834  ;;  %v1267_v23 = vshll.u32 %v5126_v29, 16  ;;  %v1273_v8 = vrot.slane %v1271_v56, 4 }
  0xd0   : > { %2412 = vrot.lane.b32.xlu0 %v3862_v58, %s4192_s23  ;;  %v1054_v61 = vsel %vm4338_vm5, %v1049_v31, %v1053_v35  ;;  %v1058_v62 = vor.u32 %v1057_v20, %v1053_v35  ;;  %v1277_v11 = vshll.u32 %v5175_v27, 16  ;;  %v1265_v52 = vrot.slane %v1264_v5, 4  ;;  %v3710_v31 = vld [vmem:[%s4249_s22 + $0xa8] sm:$0xe] }
  0xd1   : > { %v1251_v6 = vrot.slane %v1250_v13, 4  ;;  %v1072_v33 = vor.u32 %v1071_v54, %v1068_v25  ;;  %v1075_v36 = vshll.u32 %v5134_v49, 16  ;;  %v3049_v41 = vsel %vm3031_vm11, %v3016_v7, %v5071_v51  ;;  %v5195_v42 = vpop.permute.xlu0 %2818 }
  0xd2   : > { %v1059_v48 = vrot.slane %v1058_v62, 4  ;;  %v1269_v59 = vrot.slane %v1267_v23, 5  ;;  %v1081_v57 = vrot.slane %v1079_v2, 4  ;;  %v1279_v32 = vrot.slane %v1277_v11, 5 }
  0xd3   : > { %v1256_v26 = vsel %vm4338_vm5, %v1251_v6, %v1255_v22  ;;  %v1073_v14 = vrot.slane %v1072_v33, 4  ;;  %v1077_v3 = vrot.slane %v1075_v36, 5  ;;  %v1085_v9 = vshll.u32 %v5188_v16, 16 }
  0xd4   : > { %v3885_v24 = vcombine.low %v1246_v44, %v1256_v26  ;;  %v1064_v56 = vsel %vm4338_vm5, %v1059_v48, %v1063_v38  ;;  %v1274_v50 = vor.u32 %v1273_v8, %v1269_v59  ;;  %v3033_v51 = vsel %vm3031_vm11, %v5142_v1, %v5089_v60  ;;  %v3702_v38 = vld [vmem:[%s4249_s22 + $0x48] sm:$0xe] }
  0xd5   : > { %v3877_v58 = vcombine.low %v1054_v61, %v1064_v56  ;;  %v1270_v7 = vsel %vm4338_vm5, %v1265_v52, %v1269_v59  ;;  %v1078_v2 = vsel %vm4338_vm5, %v1073_v14, %v1077_v3  ;;  %v1082_v15 = vor.u32 %v1081_v57, %v1077_v3  ;;  %v5241_v52 = vld [vmem:[%s4249_s22 + $0xa8] sm:$0xf] }
  0xd6   : > { %2506 = vrot.lane.b32.xlu1 %v3885_v24, %s4195_s26  ;;  %v1275_v4 = vrot.slane %v1274_v50, 4  ;;  %v1087_v17 = vrot.slane %v1085_v9, 5  ;;  %v3725_v20 = vrot.slane %v3709_v18, 9  ;;  %v1479_v12 = vrot.slane %v5087_v55, 5  ;;  %v5255_v24 = vld [vmem:[%s4249_s22 + $0xac] sm:$0xf] }
  0xd7   : > { %v5210_v19 = vpop.permute.xlu1 %2246  ;;  %2490 = vrot.lane.b32.xlu0 %v3877_v58, %s4195_s26  ;;  %v1083_v25 = vrot.slane %v1082_v15, 4  ;;  %v1482_v60 = vrot.slane %v5149_v28, 5  ;;  %v3717_v1 = vrot.slane %v3701_v10, 9  ;;  %v1423_v54 = vrot.slane %v5116_v0, 5  ;;  %v3737_v56 = vld [vmem:[%s4249_s22 + $0x48] sm:$0xf] }
  0xd8   : > { %v1280_v35 = vsel %vm4338_vm5, %v1275_v4, %v1279_v32  ;;  %v1480_v44 = vsel %vm4280_vm2, %v3725_v20, %v1479_v12  ;;  %v1481_v13 = vrot.slane %v1479_v12, 4  ;;  %v1426_v22 = vrot.slane %v5154_v63, 5  ;;  %v5276_v18 = vld [vmem:[%s4249_s22 + $0x4c] sm:$0xf]  ;;  %v5279_v58 = vld [vmem:[%s4249_s22 + $0xb4] sm:$0xf] }
  0xd9   : > { %v3886_v55 = vcombine.low %v1270_v7, %v1280_v35  ;;  %v1088_v28 = vsel %vm4338_vm5, %v1083_v25, %v1087_v17  ;;  %v1424_v0 = vsel %vm4280_vm2, %v3717_v1, %v1423_v54  ;;  %v1425_v62 = vrot.slane %v1423_v54, 4  ;;  %v5293_v15 = vld [vmem:[%s4249_s22 + $0x54] sm:$0xf] }
  0xda   : > { %v5222_v61 = vpop.permute.xlu0 %2230  ;;  %v3878_v5 = vcombine.low %v1078_v2, %v1088_v28  ;;  %v1483_v6 = vsel %vm4280_vm2, %v1481_v13, %v1482_v60  ;;  %v3726_v23 = vrot.slane %v3710_v31, 9  ;;  %v3051_v63 = vsel %vm3031_vm11, %v5161_v34, %v5102_v40  ;;  %v5290_v2 = vld [vmem:[%s4249_s22 + $0xb8] sm:$0xf]  ;;  %v4121_v28 = vld [vmem:[%s6186_s1 + $0x20] ss:$0 sps:$4 sm:$0xff]  }
  0xdb   : > { %2508 = vrot.lane.b32.xlu1 %v3886_v55, %s4195_s26  ;;  %v3035_v8 = vsel %vm3031_vm11, %v5165_v47, %v5119_v37  ;;  %v3901_v11 = vcombine.low %v1480_v44, %v1483_v6  ;;  %v1427_v48 = vsel %vm4280_vm2, %v1425_v62, %v1426_v22  ;;  %v5243_v33 = vpop.permute.xlu1 %2836  ;;  %v1486_v26 = vrot.slane %v5126_v29, 5  ;;  %v5300_v60 = vld [vmem:[%s4249_s22 + $0x58] sm:$0xf]  ;;  %4052 = vmatprep.subr.msk.bf16.mxu0 %vm3205_vm15, %v4121_v28 }
  0xdc   : > { %2492 = vrot.lane.b32.xlu0 %v3878_v5, %s4195_s26  ;;  %v3893_v36 = vcombine.low %v1424_v0, %v1427_v48  ;;  %v1489_v40 = vrot.slane %v5175_v27, 5  ;;  %v3718_v34 = vrot.slane %v3702_v38, 9  ;;  %v3082_v59 = vsel %vm3064_vm12, %v3049_v41, %v5129_v46  ;;  %v5320_v5 = vld [vmem:[%s4249_s22 + $0xb0] sm:$0x1]  ;;  %4053 = vmatprep.subr.msk.bf16.mxu1 %vm3205_vm15, %v4121_v28 }
  0xdd   : > { %v3066_v37 = vsel %vm3064_vm12, %v3033_v51, %v5144_v53  ;;  %v1430_v47 = vrot.slane %v5134_v49, 5  ;;  %v1433_v57 = vrot.slane %v5188_v16, 5  ;;  %v1487_v29 = vsel %vm4280_vm2, %v3726_v23, %v1486_v26 }
  0xde   : > { %v1488_v27 = vrot.slane %v1486_v26, 4  ;;  %v1843_v14 = vshrl.u32 %v5241_v52, 16  ;;  %v1846_v46 = vshll.u32 %v5241_v52, 16  ;;  %v5262_v41 = vpop.permute.xlu0 %2820  ;;  %v5269_v16 = vsel %vm3064_vm12, %v3051_v63, %v5156_v39 }
  0xdf   : > { %2586 = vrot.lane.b32.xlu1 %v3901_v11, %s4196_s27  ;;  %v1431_v49 = vsel %vm4280_vm2, %v3718_v34, %v1430_v47  ;;  %v1432_v53 = vrot.slane %v1430_v47, 4  ;;  %v5273_v3 = vsel %vm3064_vm12, %v3035_v8, %v5172_v45  ;;  %v1856_v32 = vshrl.u32 %v5255_v24, 16  ;;  %v5349_v47 = vld [vmem:[%s4249_s22 + $0x7c] sm:$0xf] }
  0xe0   : > { %2570 = vrot.lane.b32.xlu0 %v3893_v36, %s4196_s27  ;;  %v1490_v50 = vsel %vm4280_vm2, %v1488_v27, %v1489_v40  ;;  %v3917_v39 = vcombine.low %v5241_v52, %v5255_v24  ;;  %v1651_v9 = vshrl.u32 %v3737_v56, 16  ;;  %v1845_v51 = vrot.slane %v1843_v14, 4  ;;  %v5341_v40 = vld [vmem:[%s4249_s22 + $0x50] sm:$0x1] }
  0xe1   : > { %v3902_v10 = vcombine.low %v1487_v29, %v1490_v50  ;;  %v1434_v45 = vsel %vm4280_vm2, %v1432_v53, %v1433_v57  ;;  %v1654_v7 = vshll.u32 %v3737_v56, 16  ;;  %v1848_v20 = vrot.slane %v1846_v46, 5  ;;  %v5357_v29 = vld [vmem:[%s4249_s22 + $0x1c] sm:$0xf] }
  0xe2   : > { %v3894_v17 = vcombine.low %v1431_v49, %v1434_v45  ;;  %v1664_v12 = vshrl.u32 %v5276_v18, 16  ;;  %v1867_v25 = vshrl.u32 %v5279_v58, 16  ;;  %v1653_v1 = vrot.slane %v1651_v9, 4 }
  0xe3   : > { %v5295_v4 = vpop.permute.xlu1 %2248  ;;  %2588 = vrot.lane.b32.xlu1 %v3902_v10, %s4196_s27  ;;  %v1656_v54 = vrot.slane %v1654_v7, 5  ;;  %v3909_v31 = vcombine.low %v3737_v56, %v5276_v18  ;;  %v1870_v35 = vshll.u32 %v5279_v58, 16  ;;  %v1880_v44 = vshrl.u32 %v5290_v2, 16  ;;  %v5354_v56 = vld [vmem:[%s4249_s22 + $0x18] sm:$0xf] }
  0xe4   : > { %2572 = vrot.lane.b32.xlu0 %v3894_v17, %s4196_s27  ;;  %v3918_v13 = vcombine.low %v5279_v58, %v5290_v2  ;;  %v1675_v22 = vshrl.u32 %v5293_v15, 16  ;;  %v1678_v55 = vshll.u32 %v5293_v15, 16  ;;  %v5316_v62 = vrot.slane %v1867_v25, 4 }
  0xe5   : > { %v1688_v38 = vshrl.u32 %v5300_v60, 16  ;;  %v1872_v23 = vrot.slane %v1870_v35, 5  ;;  %v3910_v63 = vcombine.low %v5293_v15, %v5300_v60  ;;  %v3099_v8 = vsel %vm3097_vm13, %v3066_v37, %v5195_v42  ;;  %v5346_v37 = vld [vmem:[%s4249_s22 + $0x78] sm:$0xf] }
  0xe6   : > { %v5314_v0 = vpop.permute.xlu0 %2232  ;;  %v3115_v11 = vsel %vm3097_vm13, %v3082_v59, %v5183_v43  ;;  %v5331_v48 = vrot.slane %v1675_v22, 4  ;;  %v5333_v52 = vrot.slane %v1678_v55, 5  ;;  %4010 = vmatprep.mubr.msk.bf16.mxu0 %vm3172_vm14, %v3099_v8  ;;  %v1849_v36 = vor.u32 %v1848_v20, %v1845_v51  ;;  %v5373_v51 = vld [vmem:[%s4249_s22 + $0xbc] sm:$0x1] }
  0xe7   : > { %v5322_v6 = vpop.permute.xlu1 %2326  ;;  %2682 = vrot.lane.b32.xlu1 %v3917_v39, %s4197_s28  ;;  %4026 = vmatprep.mubr.msk.bf16.mxu1 %vm3172_vm14, %v3115_v11  ;;  %v1852_v42 = vshll.u32 %v5255_v24, 16  ;;  %v1858_v43 = vrot.slane %v1856_v32, 4  ;;  %v1862_v26 = vshll.u32 %v5320_v5, 16  ;;  %v1657_v34 = vor.u32 %v1656_v54, %v1653_v1  ;;  %v5393_v55 = vld [vmem:[%s4249_s22 + $0x5c] sm:$0x1] }
  0xe8   : > { %2666 = vrot.lane.b32.xlu0 %v3909_v31, %s4197_s28  ;;  %v3819_v57 = vcombine.low %v5346_v37, %v5349_v47  ;;  %v3811_v27 = vcombine.low %v5354_v56, %v5357_v29  ;;  %v1850_v14 = vrot.slane %v1849_v36, 4  ;;  %v1660_v46 = vshll.u32 %v5276_v18, 16  ;;  %v3789_v11 = vld [vmem:[%s4249_s22 + $0xa8] sm:$0xe] }
  0xe9   : > { %v1854_v53 = vrot.slane %v1852_v42, 5  ;;  %v1864_v58 = vrot.slane %v1862_v26, 5  ;;  %v1658_v50 = vrot.slane %v1657_v34, 4  ;;  %v1666_v32 = vrot.slane %v1664_v12, 4  ;;  %v4153_v29 = vld [vmem:[%s4249_s22 + $0x88] sm:$0xf] }
  0xea   : > { %v5343_v59 = vpop.permute.xlu0 %2310  ;;  %v1662_v39 = vrot.slane %v1660_v46, 5  ;;  %v1670_v9 = vshll.u32 %v5341_v40, 16  ;;  %v3207_v10 = vsel %vm3205_vm15, %v4121_v28, 0  ;;  %v3117_v45 = vsel %vm3097_vm13, %v5269_v16, %v5243_v33 }
  0xeb   : > { %v5364_v49 = vpop.permute.xlu1 %2328  ;;  %2684 = vrot.lane.b32.xlu1 %v3918_v13, %s4197_s28  ;;  %v1855_v7 = vsel %vm4338_vm5, %v1850_v14, %v1854_v53  ;;  %v1859_v15 = vor.u32 %v1858_v43, %v1854_v53  ;;  %4009 = vmatpush3.bf16.msra.mxu0 %v3207_v10  ;;  %v3101_v17 = vsel %vm3097_vm13, %v5273_v3, %v5262_v41  ;;  %v1876_v20 = vshll.u32 %v5290_v2, 16 }
  0xec   : > { %2668 = vrot.lane.b32.xlu0 %v3910_v63, %s4197_s28  ;;  %v1663_v33 = vsel %vm4338_vm5, %v1658_v50, %v1662_v39  ;;  %v1667_v16 = vor.u32 %v1666_v32, %v1662_v39  ;;  %v1672_v25 = vrot.slane %v1670_v9, 5  ;;  %4051 = vmatpush3.bf16.msra.mxu1 %v3207_v10  ;;  %v1873_v1 = vor.u32 %v1872_v23, %v5316_v62  ;;  %v3781_v50 = vld [vmem:[%s4249_s22 + $0x48] sm:$0xe] }
  0xed   : > { %v1860_v31 = vrot.slane %v1859_v15, 4  ;;  %v1878_v35 = vrot.slane %v1876_v20, 5  ;;  %v1882_v41 = vrot.slane %v1880_v44, 4  ;;  %v1886_v3 = vshll.u32 %v5373_v51, 16 }
  0xee   : > { %v5382_v12 = vpop.permute.xlu0 %2312  ;;  %v1668_v13 = vrot.slane %v1667_v16, 4  ;;  %v1874_v22 = vrot.slane %v1873_v1, 4  ;;  %v1681_v28 = vor.u32 %v5333_v52, %v5331_v48  ;;  %v1684_v63 = vshll.u32 %v5300_v60, 16  ;;  %4011 = vmatmul.mubr.msk.bf16.vlgmr.msra.gmra.mrb[0].mxu0 %vm3172_vm14, %v3101_v17  ;;  %v4155_v16 = vld [vmem:[%s4249_s22 + $0x28] sm:$0xf] }
  0xef   : > { %v5387_v54 = vpop.permute.xlu1 %2422  ;;  %v1865_v62 = vsel %vm4338_vm5, %v1860_v31, %v1864_v58  ;;  %v1883_v23 = vor.u32 %v1882_v41, %v1878_v35  ;;  %v1888_v8 = vrot.slane %v1886_v3, 5  ;;  %v1690_v44 = vrot.slane %v1688_v38, 4  ;;  %4027 = vmatmul.mubr.msk.bf16.vlgmr.msra.gmra.mrb[0].mxu1 %vm3172_vm14, %v3117_v45  ;;  %v5459_v3 = vld [vmem:[%s4249_s22 + $0xb0] sm:$0x1] }
  0xf0   : > { %v3933_v42 = vcombine.low %v1855_v7, %v1865_v62  ;;  %v1673_v48 = vsel %vm4338_vm5, %v1668_v13, %v1672_v25  ;;  %v1879_v52 = vsel %vm4338_vm5, %v1874_v22, %v1878_v35  ;;  %v1682_v43 = vrot.slane %v1681_v28, 4  ;;  %v5452_v35 = vld [vmem:[%s4249_s22 + $0xac] sm:$0xf]  ;;  %v294_v28 = vld [vmem:[%s4249_s22 + $0x48] sm:$0xf] }
  0xf1   : > { %v3925_v34 = vcombine.low %v1663_v33, %v1673_v48  ;;  %v1884_v14 = vrot.slane %v1883_v23, 4  ;;  %v1686_v46 = vrot.slane %v1684_v63, 5  ;;  %v1694_v38 = vshll.u32 %v5393_v55, 16  ;;  %v4154_v33 = vld [vmem:[%s4249_s22 + $0x24] sm:$0xf] }
  0xf2   : > { %v5405_v36 = vpop.permute.xlu0 %2406  ;;  %2762 = vrot.lane.b32.xlu1 %v3933_v42, %s4198_s29  ;;  %v3805_v53 = vrot.slane %v3789_v11, 9  ;;  %v2088_v58 = vrot.slane %v5255_v24, 5  ;;  %v5422_v32 = vsel %vm2850_vm6, %v3819_v57, %v5210_v19  ;;  %v5434_v19 = vsel %vm2850_vm6, %v3811_v27, %v5222_v61  ;;  %v310_v57 = vld [vmem:[%s4249_s22 + $0xa8] sm:$0xf]  ;;  %v4152_v61 = vld [vmem:[%s4249_s22 + $0x84] sm:$0xf] }
  0xf3   : > { %v5411_v26 = vpop.permute.xlu1 %2424  ;;  %2746 = vrot.lane.b32.xlu0 %v3925_v34, %s4198_s29  ;;  %v1889_v39 = vsel %vm4338_vm5, %v1884_v14, %v1888_v8  ;;  %v1691_v9 = vor.u32 %v1690_v44, %v1686_v46  ;;  %v1696_v10 = vrot.slane %v1694_v38, 5  ;;  %v1687_v37 = vsel %vm4338_vm5, %v1682_v43, %v1686_v46  ;;  %v5469_v48 = vld [vmem:[%s4249_s22 + $0x4c] sm:$0xf]  ;;  %v5483_v46 = vld [vmem:[%s4249_s22 + $0x50] sm:$0x1] }
  0xf4   : > { %v3934_v24 = vcombine.low %v1879_v52, %v1889_v39  ;;  %v2089_v47 = vsel %vm4280_vm2, %v3805_v53, %v2088_v58  ;;  %v2090_v15 = vrot.slane %v2088_v58, 4  ;;  %v2091_v17 = vrot.slane %v5320_v5, 5 }
  0xf5   : > { %v1692_v7 = vrot.slane %v1691_v9, 4  ;;  %v3797_v20 = vrot.slane %v3781_v50, 9  ;;  %v3820_v27 = vcombine.low %v4152_v61, %v4153_v29  ;;  %v3812_v25 = vcombine.low %v4154_v33, %v4155_v16  ;;  %v3782_v16 = vld [vmem:[%s4249_s22 + $0x54] sm:$0xe] }
  0xf6   : > { %v5427_v45 = vpop.permute.xlu0 %2408  ;;  %2764 = vrot.lane.b32.xlu1 %v3934_v24, %s4198_s29  ;;  %v2032_v1 = vrot.slane %v5276_v18, 5  ;;  %v2035_v31 = vrot.slane %v5341_v40, 5  ;;  %v2092_v41 = vsel %vm4280_vm2, %v2090_v15, %v2091_v17  ;;  %v670_v13 = vshrl.u32 %v310_v57, 16  ;;  %v3790_v17 = vld [vmem:[%s4249_s22 + $0xb4] sm:$0xe] }
  0xf7   : > { %v1697_v5 = vsel %vm4338_vm5, %v1692_v7, %v1696_v10  ;;  %v673_v22 = vshll.u32 %v310_v57, 16  ;;  %v3949_v62 = vcombine.low %v2089_v47, %v2092_v41  ;;  %v679_v11 = vshll.u32 %v5452_v35, 16 }
  0xf8   : > { %v5442_v56 = vpop.permute.xlu1 %2502  ;;  %v3926_v18 = vcombine.low %v1687_v37, %v1697_v5  ;;  %v2033_v40 = vsel %vm4280_vm2, %v3797_v20, %v2032_v1  ;;  %v2034_v23 = vrot.slane %v2032_v1, 4  ;;  %v672_v8 = vrot.slane %v670_v13, 4 }
  0xf9   : > { %v675_v44 = vrot.slane %v673_v22, 5  ;;  %v683_v42 = vshrl.u32 %v5452_v35, 16  ;;  %v5476_v43 = vsel %vm2850_vm6, %v3820_v27, %v5295_v4  ;;  %v689_v14 = vshll.u32 %v5459_v3, 16 }
  0xfa   : > { %v5462_v63 = vpop.permute.xlu0 %2486  ;;  %2748 = vrot.lane.b32.xlu0 %v3926_v18, %s4198_s29  ;;  %2842 = vrot.lane.b32.xlu1 %v3949_v62, %s4199_s30  ;;  %v2036_v34 = vsel %vm4280_vm2, %v2034_v23, %v2035_v31  ;;  %v478_v38 = vshrl.u32 %v294_v28, 16  ;;  %v681_v50 = vrot.slane %v679_v11, 5  ;;  %v481_v24 = vshll.u32 %v294_v28, 16  ;;  %v5518_v18 = vld [vmem:[%s4249_s22 + $0xb4] sm:$0xf] }
  0xfb   : > { %v3941_v53 = vcombine.low %v2033_v40, %v2036_v34  ;;  %v676_v58 = vor.u32 %v675_v44, %v672_v8  ;;  %v685_v39 = vrot.slane %v683_v42, 4  ;;  %v691_v4 = vrot.slane %v689_v14, 5  ;;  %v5528_v34 = vld [vmem:[%s4249_s22 + $0xb8] sm:$0xf] }
  0xfc   : > { %v5471_v52 = vpop.permute.xlu1 %2504  ;;  %v480_v10 = vrot.slane %v478_v38, 4  ;;  %v487_v37 = vshll.u32 %v5469_v48, 16  ;;  %v491_v7 = vshrl.u32 %v5469_v48, 16  ;;  %v497_v15 = vshll.u32 %v5483_v46, 16 }
  0xfd   : > { %v677_v47 = vrot.slane %v676_v58, 4  ;;  %v686_v57 = vor.u32 %v685_v39, %v681_v50  ;;  %v5495_v61 = vsel %vm2850_vm6, %v3812_v25, %v5314_v0  ;;  %v5501_v29 = vsel %vm2899_vm7, %v5422_v32, %v5322_v6 }
  0xfe   : > { %v5485_v9 = vpop.permute.xlu0 %2488  ;;  %2826 = vrot.lane.b32.xlu0 %v3941_v53, %s4199_s30  ;;  %v483_v27 = vrot.slane %v481_v24, 5  ;;  %v489_v33 = vrot.slane %v487_v37, 5  ;;  %v5507_v1 = vsel %vm2899_vm7, %v5434_v19, %v5343_v59  ;;  %v493_v31 = vrot.slane %v491_v7, 4 }
  0xff   : > { %v682_v0 = vsel %vm4338_vm5, %v677_v47, %v681_v50  ;;  %v687_v25 = vrot.slane %v686_v57, 4  ;;  %v499_v13 = vrot.slane %v497_v15, 5  ;;  %v3806_v6 = vrot.slane %v3790_v17, 9  ;;  %v5539_v50 = vld [vmem:[%s4249_s22 + $0xbc] sm:$0x1] }
 0x100   : > { %v5491_v20 = vpop.permute.xlu1 %2582  ;;  %v484_v41 = vor.u32 %v483_v27, %v480_v10  ;;  %v2095_v32 = vrot.slane %v5290_v2, 5  ;;  %v494_v28 = vor.u32 %v493_v31, %v489_v33  ;;  %v2098_v59 = vrot.slane %v5373_v51, 5  ;;  %v5554_v17 = vld [vmem:[%s4249_s22 + $0x58] sm:$0xf] }
 0x101   : > { %v692_v22 = vsel %vm4338_vm5, %v687_v25, %v691_v4  ;;  %v3798_v19 = vrot.slane %v3782_v16, 9  ;;  %v887_v2 = vrot.slane %v5459_v3, 5  ;;  %v2039_v42 = vrot.slane %v5300_v60, 5 }
 0x102   : > { %v5511_v5 = vpop.permute.xlu0 %2566  ;;  %v3839_v40 = vcombine.low %v682_v0, %v692_v22  ;;  %v485_v23 = vrot.slane %v484_v41, 4  ;;  %v2096_v8 = vsel %vm4280_vm2, %v3806_v6, %v2095_v32  ;;  %v2097_v44 = vrot.slane %v2095_v32, 4  ;;  %v5561_v0 = vld [vmem:[%s4249_s22 + $0x5c] sm:$0x1] }
 0x103   : > { %v495_v11 = vrot.slane %v494_v28, 4  ;;  %v2042_v51 = vrot.slane %v5393_v55, 5  ;;  %v831_v53 = vrot.slane %v5483_v46, 5  ;;  %v694_v60 = vshrl.u32 %v5518_v18, 16  ;;  %v5543_v55 = vld [vmem:[%s4249_s22 + $0x54] sm:$0xf] }
 0x104   : > { %v5520_v62 = vpop.permute.xlu1 %2584  ;;  %2254 = vrot.lane.b32.xlu1 %v3839_v40, %s4194_s25  ;;  %v490_v38 = vsel %vm4338_vm5, %v485_v23, %v489_v33  ;;  %v2099_v58 = vsel %vm4280_vm2, %v2097_v44, %v2098_v59  ;;  %v2040_v10 = vsel %vm4280_vm2, %v3798_v19, %v2039_v42  ;;  %v2041_v24 = vrot.slane %v2039_v42, 4  ;;  %v731_v40 = vld [vmem:[%s4249_s22 + $0xa8] sm:$0xe] }
 0x105   : > { %v500_v39 = vsel %vm4338_vm5, %v495_v11, %v499_v13  ;;  %v3950_v4 = vcombine.low %v2096_v8, %v2099_v58  ;;  %v696_v57 = vrot.slane %v694_v60, 4  ;;  %v697_v7 = vshll.u32 %v5518_v18, 16 }
 0x106   : > { %v5530_v14 = vpop.permute.xlu0 %2568  ;;  %v3831_v47 = vcombine.low %v490_v38, %v500_v39  ;;  %v703_v15 = vshll.u32 %v5528_v34, 16  ;;  %v2043_v27 = vsel %vm4280_vm2, %v2041_v24, %v2042_v51  ;;  %v707_v33 = vshrl.u32 %v5528_v34, 16  ;;  %v723_v51 = vld [vmem:[%s4249_s22 + $0x48] sm:$0xe] }
 0x107   : > { %v713_v16 = vshll.u32 %v5539_v50, 16  ;;  %v502_v25 = vshrl.u32 %v5543_v55, 16  ;;  %v3942_v41 = vcombine.low %v2040_v10, %v2043_v27  ;;  %v699_v13 = vrot.slane %v697_v7, 5 }
 0x108   : > { %v5549_v37 = vpop.permute.xlu1 %2678  ;;  %2238 = vrot.lane.b32.xlu0 %v3831_v47, %s4194_s25  ;;  %2844 = vrot.lane.b32.xlu1 %v3950_v4, %s4199_s30  ;;  %v705_v6 = vrot.slane %v703_v15, 5  ;;  %v505_v32 = vshll.u32 %v5543_v55, 16  ;;  %v2923_v22 = vsel %vm2899_vm7, %v5476_v43, %v5364_v49  ;;  %v709_v28 = vrot.slane %v707_v33, 4 }
 0x109   : > { %v504_v59 = vrot.slane %v502_v25, 4  ;;  %v511_v19 = vshll.u32 %v5554_v17, 16  ;;  %v700_v8 = vor.u32 %v699_v13, %v696_v57  ;;  %v515_v11 = vshrl.u32 %v5554_v17, 16 }
 0x10a   : > { %v5564_v31 = vpop.permute.xlu0 %2662  ;;  %v507_v44 = vrot.slane %v505_v32, 5  ;;  %v521_v42 = vshll.u32 %v5561_v0, 16  ;;  %v2907_v38 = vsel %vm2899_vm7, %v5495_v61, %v5382_v12  ;;  %v710_v58 = vor.u32 %v709_v28, %v705_v6 }
 0x10b   : > { %v715_v49 = vrot.slane %v713_v16, 5  ;;  %v513_v43 = vrot.slane %v511_v19, 5  ;;  %v701_v60 = vrot.slane %v700_v8, 4  ;;  %v517_v4 = vrot.slane %v515_v11, 4  ;;  %v732_v16 = vld [vmem:[%s4249_s22 + $0xb4] sm:$0xe] }
 0x10c   : > { %v5574_v23 = vpop.permute.xlu1 %2680  ;;  %2828 = vrot.lane.b32.xlu0 %v3942_v41, %s4199_s30  ;;  %v508_v39 = vor.u32 %v507_v44, %v504_v59  ;;  %v523_v10 = vrot.slane %v521_v42, 5  ;;  %v711_v47 = vrot.slane %v710_v58, 4  ;;  %v3647_v57 = vrot.slane %v731_v40, 9 }
 0x10d   : > { %v884_v7 = vrot.slane %v5452_v35, 5  ;;  %v3639_v15 = vrot.slane %v723_v51, 9  ;;  %v706_v12 = vsel %vm4338_vm5, %v701_v60, %v705_v6  ;;  %v518_v27 = vor.u32 %v517_v4, %v513_v43  ;;  %v5630_v4 = vld [vmem:[%s4249_s22 + $0x54] sm:$0xf] }
 0x10e   : > { %v5583_v24 = vpop.permute.xlu0 %2664  ;;  %v509_v61 = vrot.slane %v508_v39, 4  ;;  %v828_v33 = vrot.slane %v5469_v48, 5  ;;  %v2954_v25 = vsel %vm2932_vm8, %v5501_v29, %v5387_v54  ;;  %v716_v41 = vsel %vm4338_vm5, %v711_v47, %v715_v49  ;;  %v724_v54 = vld [vmem:[%s4249_s22 + $0x54] sm:$0xe] }
 0x10f   : > { %v885_v35 = vsel %vm4280_vm2, %v3647_v57, %v884_v7  ;;  %v886_v13 = vrot.slane %v884_v7, 4  ;;  %v2938_v6 = vsel %vm2932_vm8, %v5507_v1, %v5405_v36  ;;  %v3840_v28 = vcombine.low %v706_v12, %v716_v41  ;;  %v3677_v49 = vld [vmem:[%s4249_s22 + $0xb4] sm:$0xf]  ;;  %v5652_v12 = vld [vmem:[%s4249_s22 + $0x58] sm:$0xf] }
 0x110   : > { %v514_v48 = vsel %vm4338_vm5, %v509_v61, %v513_v43  ;;  %v519_v59 = vrot.slane %v518_v27, 4  ;;  %v829_v19 = vsel %vm4280_vm2, %v3639_v15, %v828_v33  ;;  %v830_v40 = vrot.slane %v828_v33, 4  ;;  %v3679_v27 = vld [vmem:[%s4249_s22 + $0xc0] sm:$0xf] }
 0x111   : > { %v5597_v32 = vpop.permute.xlu1 %2758  ;;  %v888_v29 = vsel %vm4280_vm2, %v886_v13, %v887_v2  ;;  %v3648_v8 = vrot.slane %v732_v16, 9  ;;  %2256 = vrot.lane.b32.xlu1 %v3840_v28, %s4194_s25  ;;  %v891_v44 = vrot.slane %v5528_v34, 5  ;;  %v894_v11 = vrot.slane %v5539_v50, 5 }
 0x112   : > { %v524_v36 = vsel %vm4338_vm5, %v519_v59, %v523_v10  ;;  %v3855_v1 = vcombine.low %v885_v35, %v888_v29  ;;  %v5616_v3 = vpop.permute.xlu0 %2742  ;;  %v832_v42 = vsel %vm4280_vm2, %v830_v40, %v831_v53  ;;  %v3640_v51 = vrot.slane %v724_v54, 9 }
 0x113   : > { %v3832_v2 = vcombine.low %v514_v48, %v524_v36  ;;  %v835_v58 = vrot.slane %v5554_v17, 5  ;;  %v2956_v43 = vsel %vm2932_vm8, %v2923_v22, %v5411_v26  ;;  %v892_v60 = vsel %vm4280_vm2, %v3648_v8, %v891_v44  ;;  %v5638_v22 = vld [vmem:[%s4249_s22 + $0xb8] sm:$0xf]  ;;  %v3663_v48 = vld [vmem:[%s4249_s22 + $0x60] sm:$0xf] }
 0x114   : > { %v893_v50 = vrot.slane %v891_v44, 4  ;;  %v838_v39 = vrot.slane %v5561_v0, 5  ;;  %v2940_v46 = vsel %vm2932_vm8, %v2907_v38, %v5427_v45  ;;  %v3847_v53 = vcombine.low %v829_v19, %v832_v42  ;;  %v5675_v19 = vld [vmem:[%s4249_s22 + $0x64] sm:$0xf]  ;;  %v5688_v44 = vld [vmem:[%s4249_s22 + $0xbc] sm:$0x1] }
 0x115   : > { %2240 = vrot.lane.b32.xlu0 %v3832_v2, %s4194_s25  ;;  %v2987_v10 = vsel %vm2965_vm9, %v2954_v25, %v5442_v56  ;;  %v837_v26 = vrot.slane %v835_v58, 4  ;;  %v5640_v47 = vpop.permute.xlu1 %2760  ;;  %2334 = vrot.lane.b32.xlu1 %v3855_v1, %s4193_s24  ;;  %v836_v57 = vsel %vm4280_vm2, %v3640_v51, %v835_v58  ;;  %v1282_v7 = vshrl.u32 %v3677_v49, 16 }
 0x116   : > { %v895_v0 = vsel %vm4280_vm2, %v893_v50, %v894_v11  ;;  %v1285_v45 = vshll.u32 %v3677_v49, 16  ;;  %v2971_v38 = vsel %vm2965_vm9, %v2938_v6, %v5462_v63  ;;  %v1090_v61 = vshrl.u32 %v5630_v4, 16 }
 0x117   : > { %v3856_v56 = vcombine.low %v892_v60, %v895_v0  ;;  %v839_v15 = vsel %vm4280_vm2, %v837_v26, %v838_v39  ;;  %v2989_v33 = vsel %vm2965_vm9, %v2956_v43, %v5471_v52  ;;  %v5660_v16 = vsel %vm2965_vm9, %v2940_v46, %v5485_v9  ;;  %v5664_v41 = vpop.permute.xlu0 %2744  ;;  %v5669_v52 = vld [vmem:[%s4249_s22 + $0xc4] sm:$0xf] }
 0x118   : > { %v1295_v63 = vshrl.u32 %v5638_v22, 16  ;;  %v1093_v25 = vshll.u32 %v5630_v4, 16  ;;  %v3848_v35 = vcombine.low %v836_v57, %v839_v15  ;;  %v1284_v13 = vrot.slane %v1282_v7, 4  ;;  %v5708_v15 = vld [vmem:[%s4249_s22 + $0xc8] sm:$0x1] }
 0x119   : > { %2318 = vrot.lane.b32.xlu0 %v3847_v53, %s4193_s24  ;;  %v1287_v6 = vrot.slane %v1285_v45, 5  ;;  %v3871_v28 = vcombine.low %v3677_v49, %v5638_v22  ;;  %2336 = vrot.lane.b32.xlu1 %v3856_v56, %s4193_s24  ;;  %v1092_v9 = vrot.slane %v1090_v61, 4  ;;  %v1103_v59 = vshrl.u32 %v5652_v12, 16  ;;  %v5690_v11 = vpop.permute.xlu1 %2838  ;;  %v5695_v49 = vld [vmem:[%s4249_s22 + $0x5c] sm:$0x1] }
 0x11a   : > { %v1306_v54 = vshrl.u32 %v3679_v27, 16  ;;  %v1309_v29 = vshll.u32 %v3679_v27, 16  ;;  %v1095_v40 = vrot.slane %v1093_v25, 5  ;;  %v3863_v8 = vcombine.low %v5630_v4, %v5652_v12 }
 0x11b   : > { %v5681_v36 = vsel %vm2998_vm10, %v2987_v10, %v5491_v20  ;;  %v5685_v1 = vsel %vm2998_vm10, %v2971_v38, %v5511_v5  ;;  %v1319_v2 = vshrl.u32 %v5669_v52, 16  ;;  %v3872_v42 = vcombine.low %v3679_v27, %v5669_v52  ;;  %v5703_v53 = vpop.permute.xlu0 %2822 }
 0x11c   : > { %v1114_v51 = vshrl.u32 %v3663_v48, 16  ;;  %v1117_v58 = vshll.u32 %v3663_v48, 16  ;;  %v1308_v20 = vrot.slane %v1306_v54, 4  ;;  %v1311_v43 = vrot.slane %v1309_v29, 5 }
 0x11d   : > { %2320 = vrot.lane.b32.xlu0 %v3848_v35, %s4193_s24  ;;  %v1127_v60 = vshrl.u32 %v5675_v19, 16  ;;  %v3864_v5 = vcombine.low %v3663_v48, %v5675_v19  ;;  %2430 = vrot.lane.b32.xlu1 %v3871_v28, %s4192_s23  ;;  %v1288_v50 = vor.u32 %v1287_v6, %v1284_v13  ;;  %v1291_v39 = vshll.u32 %v5638_v22, 16 }
 0x11e   : > { %v1297_v4 = vrot.slane %v1295_v63, 4  ;;  %v1301_v46 = vshll.u32 %v5688_v44, 16  ;;  %v1096_v10 = vor.u32 %v1095_v40, %v1092_v9  ;;  %v1099_v26 = vshll.u32 %v5652_v12, 16 }
 0x11f   : > { %v1105_v0 = vrot.slane %v1103_v59, 4  ;;  %v1109_v57 = vshll.u32 %v5695_v49, 16  ;;  %v1116_v7 = vrot.slane %v1114_v51, 4  ;;  %v1119_v45 = vrot.slane %v1117_v58, 5 }
 0x120   : > { %v1289_v38 = vrot.slane %v1288_v50, 4  ;;  %v1293_v56 = vrot.slane %v1291_v39, 5  ;;  %v5713_v61 = vsel %vm2998_vm10, %v2989_v33, %v5520_v62  ;;  %v1303_v27 = vrot.slane %v1301_v46, 5 }
 0x121   : > { %2414 = vrot.lane.b32.xlu0 %v3863_v8, %s4192_s23  ;;  %v1097_v63 = vrot.slane %v1096_v10, 4  ;;  %v1101_v25 = vrot.slane %v1099_v26, 5  ;;  %v5715_v35 = vpop.permute.xlu1 %2250  ;;  %2432 = vrot.lane.b32.xlu1 %v3872_v42, %s4192_s23  ;;  %v1111_v6 = vrot.slane %v1109_v57, 5  ;;  %v1312_v28 = vor.u32 %v1311_v43, %v1308_v20  ;;  %v5723_v8 = vld [vmem:[%s4249_s22 + $0x68] sm:$0x1] }
 0x122   : > { %v1298_v13 = vor.u32 %v1297_v4, %v1293_v56  ;;  %v1315_v48 = vshll.u32 %v5669_v52, 16  ;;  %v1294_v9 = vsel %vm4338_vm5, %v1289_v38, %v1293_v56  ;;  %v1321_v54 = vrot.slane %v1319_v2, 4  ;;  %v3711_v10 = vld [vmem:[%s4249_s22 + $0xb4] sm:$0xe] }
 0x123   : > { %v1106_v59 = vor.u32 %v1105_v0, %v1101_v25  ;;  %v1325_v62 = vshll.u32 %v5708_v15, 16  ;;  %v1313_v29 = vrot.slane %v1312_v28, 4  ;;  %v1120_v51 = vor.u32 %v1119_v45, %v1116_v7  ;;  %v3703_v7 = vld [vmem:[%s4249_s22 + $0x54] sm:$0xe] }
 0x124   : > { %v1299_v33 = vrot.slane %v1298_v13, 4  ;;  %v1317_v40 = vrot.slane %v1315_v48, 5  ;;  %v5725_v42 = vpop.permute.xlu0 %2234  ;;  %v1102_v58 = vsel %vm4338_vm5, %v1097_v63, %v1101_v25  ;;  %v1123_v2 = vshll.u32 %v5675_v19, 16 }
 0x125   : > { %2416 = vrot.lane.b32.xlu0 %v3864_v5, %s4192_s23  ;;  %v1107_v20 = vrot.slane %v1106_v59, 4  ;;  %v1129_v43 = vrot.slane %v1127_v60, 4  ;;  %v1327_v4 = vrot.slane %v1325_v62, 5  ;;  %v1121_v46 = vrot.slane %v1120_v51, 4  ;;  %v5738_v45 = vpop.permute.xlu1 %2840 }
 0x126   : > { %v1304_v50 = vsel %vm4338_vm5, %v1299_v33, %v1303_v27  ;;  %v1322_v39 = vor.u32 %v1321_v54, %v1317_v40  ;;  %v1125_v57 = vrot.slane %v1123_v2, 5  ;;  %v1133_v5 = vshll.u32 %v5723_v8, 16 }
 0x127   : > { %v3887_v26 = vcombine.low %v1294_v9, %v1304_v50  ;;  %v1112_v0 = vsel %vm4338_vm5, %v1107_v20, %v1111_v6  ;;  %v3006_v60 = vsel %vm2998_vm10, %v5660_v16, %v5530_v14  ;;  %v1318_v56 = vsel %vm4338_vm5, %v1313_v29, %v1317_v40  ;;  %v3712_v9 = vld [vmem:[%s4249_s22 + $0xc0] sm:$0xe] }
 0x128   : > { %v3879_v38 = vcombine.low %v1102_v58, %v1112_v0  ;;  %v1323_v27 = vrot.slane %v1322_v39, 4  ;;  %v1126_v63 = vsel %vm4338_vm5, %v1121_v46, %v1125_v57  ;;  %v1130_v25 = vor.u32 %v1129_v43, %v1125_v57  ;;  %v5754_v59 = vpop.permute.xlu0 %2824  ;;  %v3704_v58 = vld [vmem:[%s4249_s22 + $0x60] sm:$0xe] }
 0x129   : > { %2510 = vrot.lane.b32.xlu1 %v3887_v26, %s4195_s26  ;;  %v1135_v13 = vrot.slane %v1133_v5, 5  ;;  %v3727_v6 = vrot.slane %v3711_v10, 9  ;;  %v1493_v14 = vrot.slane %v5638_v22, 5  ;;  %v1496_v16 = vrot.slane %v5688_v44, 5  ;;  %v3757_v10 = vld [vmem:[%s4249_s22 + $0xc0] sm:$0xf] }
 0x12a   : > { %2494 = vrot.lane.b32.xlu0 %v3879_v38, %s4195_s26  ;;  %v1328_v28 = vsel %vm4338_vm5, %v1323_v27, %v1327_v4  ;;  %v3719_v48 = vrot.slane %v3703_v7, 9  ;;  %v1131_v62 = vrot.slane %v1130_v25, 4  ;;  %v1437_v33 = vrot.slane %v5652_v12, 5  ;;  %v5787_v5 = vld [vmem:[%s4249_s22 + $0x60] sm:$0xf] }
 0x12b   : > { %v3888_v54 = vcombine.low %v1318_v56, %v1328_v28  ;;  %v1440_v29 = vrot.slane %v5695_v49, 5  ;;  %v3053_v40 = vsel %vm3031_vm11, %v5681_v36, %v5549_v37  ;;  %v3037_v22 = vsel %vm3031_vm11, %v5685_v1, %v5564_v31  ;;  %v5806_v25 = vld [vmem:[%s4249_s22 + $0xc4] sm:$0xf]  ;;  %v3759_v28 = vld [vmem:[%s4249_s22 + $0xcc] sm:$0xf] }
 0x12c   : > { %v1494_v44 = vsel %vm4280_vm2, %v3727_v6, %v1493_v14  ;;  %v1495_v51 = vrot.slane %v1493_v14, 4  ;;  %v1136_v12 = vsel %vm4338_vm5, %v1131_v62, %v1135_v13  ;;  %v1438_v49 = vsel %vm4280_vm2, %v3719_v48, %v1437_v33  ;;  %v5821_v48 = vld [vmem:[%s4249_s22 + $0x6c] sm:$0xf] }
 0x12d   : > { %2512 = vrot.lane.b32.xlu1 %v3888_v54, %s4195_s26  ;;  %v1439_v20 = vrot.slane %v1437_v33, 4  ;;  %v3728_v37 = vrot.slane %v3712_v9, 9  ;;  %v3880_v31 = vcombine.low %v1126_v63, %v1136_v12  ;;  %v1500_v2 = vrot.slane %v5669_v52, 5 }
 0x12e   : > { %v1497_v1 = vsel %vm4280_vm2, %v1495_v51, %v1496_v16  ;;  %v1503_v43 = vrot.slane %v5708_v15, 5  ;;  %v3720_v4 = vrot.slane %v3704_v58, 9  ;;  %v1444_v46 = vrot.slane %v5675_v19, 5  ;;  %v5840_v58 = vld [vmem:[%s4249_s22 + $0x70] sm:$0xf] }
 0x12f   : > { %v5772_v36 = vpop.permute.xlu1 %2252  ;;  %v3903_v50 = vcombine.low %v1494_v44, %v1497_v1  ;;  %v1441_v39 = vsel %vm4280_vm2, %v1439_v20, %v1440_v29  ;;  %2496 = vrot.lane.b32.xlu0 %v3880_v31, %s4195_s26  ;;  %v1501_v0 = vsel %vm4280_vm2, %v3728_v37, %v1500_v2  ;;  %v1502_v57 = vrot.slane %v1500_v2, 4  ;;  %v5829_v29 = vld [vmem:[%s4249_s22 + $0x64] sm:$0xf] }
 0x130   : > { %v3895_v26 = vcombine.low %v1438_v49, %v1441_v39  ;;  %v1447_v52 = vrot.slane %v5723_v8, 5  ;;  %v3055_v19 = vsel %vm3031_vm11, %v5713_v61, %v5574_v23  ;;  %v3039_v7 = vsel %vm3031_vm11, %v3006_v60, %v5583_v24 }
 0x131   : > { %2590 = vrot.lane.b32.xlu1 %v3903_v50, %s4196_s27  ;;  %v1445_v38 = vsel %vm4280_vm2, %v3720_v4, %v1444_v46  ;;  %v1446_v56 = vrot.slane %v1444_v46, 4  ;;  %v3086_v8 = vsel %vm3064_vm12, %v3053_v40, %v5597_v32  ;;  %v1504_v63 = vsel %vm4280_vm2, %v1502_v57, %v1503_v43 }
 0x132   : > { %v5789_v15 = vpop.permute.xlu0 %2236  ;;  %v1891_v23 = vshrl.u32 %v3757_v10, 16  ;;  %v1894_v61 = vshll.u32 %v3757_v10, 16  ;;  %v3070_v24 = vsel %vm3064_vm12, %v3037_v22, %v5616_v3  ;;  %v3904_v60 = vcombine.low %v1501_v0, %v1504_v63 }
 0x133   : > { %v5799_v27 = vpop.permute.xlu1 %2330  ;;  %v1448_v13 = vsel %vm4280_vm2, %v1446_v56, %v1447_v52  ;;  %v1699_v6 = vshrl.u32 %v5787_v5, 16  ;;  %2574 = vrot.lane.b32.xlu0 %v3895_v26, %s4196_s27  ;;  %v3088_v14 = vsel %vm3064_vm12, %v3055_v19, %v5640_v47  ;;  %v3072_v16 = vsel %vm3064_vm12, %v3039_v7, %v5664_v41  ;;  %v5834_v41 = vld [vmem:[%s4249_s22 + $0xd0] sm:$0xf] }
 0x134   : > { %v3896_v32 = vcombine.low %v1445_v38, %v1448_v13  ;;  %v1702_v3 = vshll.u32 %v5787_v5, 16  ;;  %v1893_v54 = vrot.slane %v1891_v23, 4  ;;  %v1904_v62 = vshrl.u32 %v5806_v25, 16 }
 0x135   : > { %2592 = vrot.lane.b32.xlu1 %v3904_v60, %s4196_s27  ;;  %v3919_v33 = vcombine.low %v3757_v10, %v5806_v25  ;;  %v3119_v47 = vsel %vm3097_vm13, %v3086_v8, %v5690_v11  ;;  %v1896_v40 = vrot.slane %v1894_v61, 5  ;;  %v3103_v22 = vsel %vm3097_vm13, %v3070_v24, %v5703_v53  ;;  %v5846_v11 = vld [vmem:[%s4249_s22 + $0xc8] sm:$0x1] }
 0x136   : > { %v5823_v9 = vpop.permute.xlu0 %2314  ;;  %v1915_v44 = vshrl.u32 %v3759_v28, 16  ;;  %v1918_v51 = vshll.u32 %v3759_v28, 16  ;;  %4030 = vmatprep.mubr.msk.bf16.mxu1 %vm3172_vm14, %v3119_v47  ;;  %v1701_v12 = vrot.slane %v1699_v6, 4  ;;  %v1704_v49 = vrot.slane %v1702_v3, 5  ;;  %4014 = vmatprep.mubr.msk.bf16.mxu0 %vm3172_vm14, %v3103_v22  ;;  %v5878_v3 = vld [vmem:[%s4249_s22 + $0xd4] sm:$0x1] }
 0x137   : > { %v1723_v20 = vshrl.u32 %v5821_v48, 16  ;;  %v1726_v37 = vshll.u32 %v5821_v48, 16  ;;  %2576 = vrot.lane.b32.xlu0 %v3896_v32, %s4196_s27  ;;  %v1712_v53 = vshrl.u32 %v5829_v29, 16  ;;  %v3911_v1 = vcombine.low %v5787_v5, %v5829_v29  ;;  %v5865_v5 = vld [vmem:[%s4249_s22 + $0x68] sm:$0x1]  ;;  %s6084_s27 = scalar_lea.vmem %s6189_s4, %s3977_s19 }
 0x138   : > { %v1928_v2 = vshrl.u32 %v5834_v41, 16  ;;  %v3920_v43 = vcombine.low %v3759_v28, %v5834_v41  ;;  %v1917_v39 = vrot.slane %v1915_v44, 4  ;;  %v1920_v4 = vrot.slane %v1918_v51, 5 }
 0x139   : > { %v5848_v31 = vpop.permute.xlu1 %2332  ;;  %2686 = vrot.lane.b32.xlu1 %v3919_v33, %s4197_s28  ;;  %v1736_v46 = vshrl.u32 %v5840_v58, 16  ;;  %v3912_v10 = vcombine.low %v5821_v48, %v5840_v58  ;;  %v1897_v26 = vor.u32 %v1896_v40, %v1893_v54  ;;  %v1900_v0 = vshll.u32 %v5806_v25, 16 }
 0x13a   : > { %v5856_v50 = vpop.permute.xlu0 %2316  ;;  %v1906_v57 = vrot.slane %v1904_v62, 4  ;;  %v1910_v52 = vshll.u32 %v5846_v11, 16  ;;  %v1725_v19 = vrot.slane %v1723_v20, 4  ;;  %v1728_v7 = vrot.slane %v1726_v37, 5 }
 0x13b   : > { %v1705_v38 = vor.u32 %v1704_v49, %v1701_v12  ;;  %v1708_v56 = vshll.u32 %v5829_v29, 16  ;;  %2670 = vrot.lane.b32.xlu0 %v3911_v1, %s4197_s28  ;;  %v1898_v63 = vrot.slane %v1897_v26, 4  ;;  %v1902_v23 = vrot.slane %v1900_v0, 5 }
 0x13c   : > { %v1912_v61 = vrot.slane %v1910_v52, 5  ;;  %v1714_v24 = vrot.slane %v1712_v53, 4  ;;  %v1718_v28 = vshll.u32 %v5865_v5, 16  ;;  %v3121_v32 = vsel %vm3097_vm13, %v3088_v14, %v5738_v45  ;;  %v5889_v45 = vld [vmem:[%s4249_s22 + $0x74] sm:$0x1] }
 0x13d   : > { %v5868_v8 = vpop.permute.xlu1 %2426  ;;  %2688 = vrot.lane.b32.xlu1 %v3920_v43, %s4197_s28  ;;  %v1706_v13 = vrot.slane %v1705_v38, 4  ;;  %v1710_v6 = vrot.slane %v1708_v56, 5  ;;  %v1903_v48 = vsel %vm4338_vm5, %v1898_v63, %v1902_v23  ;;  %v1907_v54 = vor.u32 %v1906_v57, %v1902_v23  ;;  %4031 = vmatmul.mubr.msk.bf16.gmra.mrb[4].mxu1 %vm3172_vm14, %v3121_v32 }
 0x13e   : > { %v5871_v60 = vpop.permute.xlu0 %2410  ;;  %v3105_v62 = vsel %vm3097_vm13, %v3072_v16, %v5754_v59  ;;  %v1921_v33 = vor.u32 %v1920_v4, %v1917_v39  ;;  %v1720_v22 = vrot.slane %v1718_v28, 5  ;;  %v1924_v44 = vshll.u32 %v5834_v41, 16 }
 0x13f   : > { %v1711_v47 = vsel %vm4338_vm5, %v1706_v13, %v1710_v6  ;;  %v1715_v40 = vor.u32 %v1714_v24, %v1710_v6  ;;  %4015 = vmatmul.mubr.msk.bf16.gmra.mrb[4].mxu0 %vm3172_vm14, %v3105_v62  ;;  %2672 = vrot.lane.b32.xlu0 %v3912_v10, %s4197_s28  ;;  %v1908_v14 = vrot.slane %v1907_v54, 4  ;;  %v1930_v59 = vrot.slane %v1928_v2, 4  ;;  %v3791_v10 = vld [vmem:[%s4249_s22 + $0xc0] sm:$0xe]  ;;  %v3792_v54 = vld [vmem:[%s4249_s22 + $0xcc] sm:$0xe] }
 0x140   : > { %v1922_v51 = vrot.slane %v1921_v33, 4  ;;  %v1934_v16 = vshll.u32 %v5878_v3, 16  ;;  %v1926_v20 = vrot.slane %v1924_v44, 5  ;;  %v1729_v37 = vor.u32 %v1728_v7, %v1725_v19  ;;  %v3783_v7 = vld [vmem:[%s4249_s22 + $0x60] sm:$0xe] }
 0x141   : > { %v5894_v12 = vpop.permute.xlu1 %2428  ;;  %v1716_v49 = vrot.slane %v1715_v40, 4  ;;  %v1732_v53 = vshll.u32 %v5840_v58, 16  ;;  %v1913_v43 = vsel %vm4338_vm5, %v1908_v14, %v1912_v61  ;;  %v1738_v39 = vrot.slane %v1736_v46, 4  ;;  %v3784_v44 = vld [vmem:[%s4249_s22 + $0x6c] sm:$0xe] }
 0x142   : > { %v5897_v1 = vpop.permute.xlu0 %2412  ;;  %v1742_v4 = vshll.u32 %v5889_v45, 16  ;;  %v3935_v2 = vcombine.low %v1903_v48, %v1913_v43  ;;  %v1931_v0 = vor.u32 %v1930_v59, %v1926_v20  ;;  %v1936_v57 = vrot.slane %v1934_v16, 5 }
 0x143   : > { %v1721_v26 = vsel %vm4338_vm5, %v1716_v49, %v1720_v22  ;;  %v1730_v38 = vrot.slane %v1729_v37, 4  ;;  %v1734_v19 = vrot.slane %v1732_v53, 5  ;;  %v1927_v56 = vsel %vm4338_vm5, %v1922_v51, %v1926_v20 }
 0x144   : > { %v3927_v52 = vcombine.low %v1711_v47, %v1721_v26  ;;  %2766 = vrot.lane.b32.xlu1 %v3935_v2, %s4198_s29  ;;  %v1932_v46 = vrot.slane %v1931_v0, 4  ;;  %v3807_v63 = vrot.slane %v3791_v10, 9  ;;  %v1744_v61 = vrot.slane %v1742_v4, 5 }
 0x145   : > { %v1739_v23 = vor.u32 %v1738_v39, %v1734_v19  ;;  %v2102_v24 = vrot.slane %v5806_v25, 5  ;;  %v2105_v13 = vrot.slane %v5846_v11, 5  ;;  %v1735_v32 = vsel %vm4338_vm5, %v1730_v38, %v1734_v19 }
 0x146   : > { %2750 = vrot.lane.b32.xlu0 %v3927_v52, %s4198_s29  ;;  %v1937_v28 = vsel %vm4338_vm5, %v1932_v46, %v1936_v57  ;;  %v3799_v48 = vrot.slane %v3783_v7, 9  ;;  %v2046_v11 = vrot.slane %v5829_v29, 5  ;;  %v2049_v22 = vrot.slane %v5865_v5, 5 }
 0x147   : > { %v3936_v33 = vcombine.low %v1927_v56, %v1937_v28  ;;  %v1740_v47 = vrot.slane %v1739_v23, 4  ;;  %v2103_v40 = vsel %vm4280_vm2, %v3807_v63, %v2102_v24  ;;  %v2104_v25 = vrot.slane %v2102_v24, 4  ;;  %v4156_v24 = vld [vmem:[%s4249_s22 + $0x90] sm:$0xf] }
 0x148   : > { %v5912_v6 = vpop.permute.xlu1 %2506  ;;  %v3808_v59 = vrot.slane %v3792_v54, 9  ;;  %v2109_v16 = vrot.slane %v5834_v41, 5  ;;  %v2047_v37 = vsel %vm4280_vm2, %v3799_v48, %v2046_v11  ;;  %v2048_v29 = vrot.slane %v2046_v11, 4  ;;  %v4158_v48 = vld [vmem:[%s4249_s22 + $0x30] sm:$0xf] }
 0x149   : > { %v5919_v62 = vpop.permute.xlu0 %2490  ;;  %2768 = vrot.lane.b32.xlu1 %v3936_v33, %s4198_s29  ;;  %v1745_v14 = vsel %vm4338_vm5, %v1740_v47, %v1744_v61  ;;  %v2106_v51 = vsel %vm4280_vm2, %v2104_v25, %v2105_v13  ;;  %v2112_v43 = vrot.slane %v5878_v3, 5  ;;  %v3800_v30 = vrot.slane %v3784_v44, 9  ;;  %v4157_v13 = vld [vmem:[%s4249_s22 + $0x94] sm:$0xf] }
 0x14a   : > { %v3928_v49 = vcombine.low %v1735_v32, %v1745_v14  ;;  %v3951_v20 = vcombine.low %v2103_v40, %v2106_v51  ;;  %v2110_v5 = vsel %vm4280_vm2, %v3808_v59, %v2109_v16  ;;  %v2111_v53 = vrot.slane %v2109_v16, 4  ;;  %v4159_v54 = vld [vmem:[%s4249_s22 + $0x34] sm:$0xf] }
 0x14b   : > { %v2050_v41 = vsel %vm4280_vm2, %v2048_v29, %v2049_v22  ;;  %v2053_v4 = vrot.slane %v5840_v58, 5  ;;  %v2056_v10 = vrot.slane %v5889_v45, 5  ;;  %v3821_v28 = vcombine.low %v4156_v24, %v4157_v13 }
 0x14c   : > { %2752 = vrot.lane.b32.xlu0 %v3928_v49, %s4198_s29  ;;  %v3943_v26 = vcombine.low %v2047_v37, %v2050_v41  ;;  %v2113_v3 = vsel %vm4280_vm2, %v2111_v53, %v2112_v43  ;;  %v3813_v33 = vcombine.low %v4158_v48, %v4159_v54  ;;  %v4161_v37 = vld [vmem:[%s4249_s22 + $0xa0] sm:$0xf]  ;;  %v4162_v43 = vld [vmem:[%s4249_s22 + $0x3c] sm:$0xf] }
 0x14d   : > { %v5937_v39 = vpop.permute.xlu1 %2508  ;;  %2846 = vrot.lane.b32.xlu1 %v3951_v20, %s4199_s30  ;;  %v3952_v0 = vcombine.low %v2110_v5, %v2113_v3  ;;  %v2054_v57 = vsel %vm4280_vm2, %v3800_v30, %v2053_v4  ;;  %v2055_v52 = vrot.slane %v2053_v4, 4  ;;  %v2889_v21 = vsel %vm2850_vm6, %v3821_v28, %v5715_v35  ;;  %v4160_v20 = vld [vmem:[%s4249_s22 + $0x9c] sm:$0xf]  ;;  %v4163_v30 = vld [vmem:[%s4249_s22 + $0x40] sm:$0xf] }
 0x14e   : > { %v5944_v2 = vpop.permute.xlu0 %2492  ;;  %v2925_v40 = vsel %vm2899_vm7, %v2889_v21, %v5799_v27  ;;  %v2865_v44 = vsel %vm2850_vm6, %v3813_v33, %v5725_v42  ;;  %v3814_v41 = vcombine.low %v4162_v43, %v4163_v30 }
 0x14f   : > { %v2057_v58 = vsel %vm4280_vm2, %v2055_v52, %v2056_v10  ;;  %v2958_v25 = vsel %vm2932_vm8, %v2925_v40, %v5868_v8  ;;  %v2909_v14 = vsel %vm2899_vm7, %v2865_v44, %v5823_v9 }
 0x150   : > { %2830 = vrot.lane.b32.xlu0 %v3943_v26, %s4199_s30  ;;  %v3944_v19 = vcombine.low %v2054_v57, %v2057_v58  ;;  %v2991_v22 = vsel %vm2965_vm9, %v2958_v25, %v5912_v6  ;;  %v2942_v27 = vsel %vm2932_vm8, %v2909_v14, %v5871_v60  ;;  %v3822_v60 = vcombine.low %v4160_v20, %v4161_v37 }
 0x151   : > { %v2587_v38 = vpop.permute.xlu1 %2586  ;;  %2848 = vrot.lane.b32.xlu1 %v3952_v0, %s4199_s30  ;;  %v2975_v6 = vsel %vm2965_vm9, %v2942_v27, %v5919_v62  ;;  %v2868_v0 = vsel %vm2850_vm6, %v3814_v41, %v5789_v15  ;;  %v4165_v27 = vld [vmem:[%s4249_s22 + $0xac] sm:$0xf] }
 0x152   : > { %v2571_v45 = vpop.permute.xlu0 %2570  ;;  %v3024_v35 = vsel %vm2998_vm10, %v2991_v22, %v2587_v38  ;;  %v2892_v62 = vsel %vm2850_vm6, %v3822_v60, %v5772_v36  ;;  %v2911_v36 = vsel %vm2899_vm7, %v2868_v0, %v5856_v50  ;;  %v6050_v0 = vld [vmem:[%s6187_s2] ss:$0 sm:$0xff] }
 0x153   : > { %v3008_v49 = vsel %vm2998_vm10, %v2975_v6, %v2571_v45  ;;  %v2927_v4 = vsel %vm2899_vm7, %v2892_v62, %v5848_v31  ;;  %v2944_v31 = vsel %vm2932_vm8, %v2911_v36, %v5897_v1  ;;  %v4167_v6 = vld [vmem:[%s4249_s22 + $0x4c] sm:$0xf] }
 0x154   : > { %2832 = vrot.lane.b32.xlu0 %v3944_v19, %s4199_s30  ;;  %v2960_v10 = vsel %vm2932_vm8, %v2927_v4, %v5894_v12 }
 0x155   : > { %v2589_v7 = vpop.permute.xlu1 %2588  ;;  %v2993_v3 = vsel %vm2965_vm9, %v2960_v10, %v5937_v39  ;;  %v2977_v39 = vsel %vm2965_vm9, %v2944_v31, %v5944_v2 }
 0x156   : > { %v2573_v56 = vpop.permute.xlu0 %2572  ;;  %v3026_v57 = vsel %vm2998_vm10, %v2993_v3, %v2589_v7 }
 0x157   : > { %v3010_v15 = vsel %vm2998_vm10, %v2977_v39, %v2573_v56 }
 0x159   : > { %v2683_v46 = vpop.permute.xlu1 %2682 }
 0x15a   : > { %v2667_v63 = vpop.permute.xlu0 %2666  ;;  %v3057_v51 = vsel %vm3031_vm11, %v3024_v35, %v2683_v46 }
 0x15b   : > { %v3041_v9 = vsel %vm3031_vm11, %v3008_v49, %v2667_v63  ;;  %v3824_v49 = vcombine.low %v5518_v18, %v5528_v34 }
 0x15d   : > { %v2685_v23 = vpop.permute.xlu1 %2684 }
 0x15e   : > { %v2669_v61 = vpop.permute.xlu0 %2668  ;;  %v3059_v52 = vsel %vm3031_vm11, %v3026_v57, %v2685_v23 }
 0x15f   : > { %v3043_v50 = vsel %vm3031_vm11, %v3010_v15, %v2669_v61 }
 0x164   : > { %v2763_v32 = vpop.permute.xlu1 %2762 }
 0x165   : > { %v2747_v47 = vpop.permute.xlu0 %2746  ;;  %v3090_v8 = vsel %vm3064_vm12, %v3057_v51, %v2763_v32  ;;  %v4164_v51 = vld [vmem:[%s4249_s22 + $0xa8] sm:$0xf] }
 0x166   : > { %v3074_v29 = vsel %vm3064_vm12, %v3041_v9, %v2747_v47  ;;  %v3816_v9 = vcombine.low %v5543_v55, %v5554_v17 }
 0x168   : > { %v2765_v11 = vpop.permute.xlu1 %2764 }
 0x169   : > { %v3092_v38 = vsel %vm3064_vm12, %v3059_v52, %v2765_v11 }
 0x16c   : > { %v2749_v59 = vpop.permute.xlu0 %2748  ;;  %v2843_v16 = vpop.permute.xlu1 %2842 }
 0x16d   : > { %v3123_v42 = vsel %vm3097_vm13, %v3090_v8, %v2843_v16  ;;  %v3076_v19 = vsel %vm3064_vm12, %v3043_v50, %v2749_v59  ;;  %v3823_v8 = vcombine.low %v4164_v51, %v4165_v27  ;;  %v4166_v16 = vld [vmem:[%s4249_s22 + $0x48] sm:$0xf]  ;;  %s6041_s22 = scalar_lea.vmem %s6188_s3, %s3977_s19 }
 0x16e   : > { %4034 = vmatprep.mubr.msk.bf16.mxu1 %vm3172_vm14, %v3123_v42  ;;  %v3815_v42 = vcombine.low %v4166_v16, %v4167_v6  ;;  %v3372_v50 = vld [vmem:[%s6041_s22 + $0x10] sm:$0xff]  ;;  %v3371_v16 = vld [vmem:[%s6041_s22 + $0x8] sm:$0xff] }
 0x170   : > { %v2827_v5 = vpop.permute.xlu0 %2826 }
 0x171   : > { %v3107_v53 = vsel %vm3097_vm13, %v3074_v29, %v2827_v5 }
 0x172   : > { %4018 = vmatprep.mubr.msk.bf16.mxu0 %vm3172_vm14, %v3107_v53 }
 0x176   : > { %v2255_v26 = vpop.permute.xlu1 %2254 }
 0x177   : > { %v2895_v37 = vsel %vm2850_vm6, %v3823_v8, %v2255_v26  ;;  %v3389_v8 = vld [vmem:[%s6041_s22 + $0x98] sm:$0xff] }
 0x17a   : > { %v2239_v12 = vpop.permute.xlu0 %2238  ;;  %v2845_v58 = vpop.permute.xlu1 %2844 }
 0x17b   : > { %v3125_v45 = vsel %vm3097_vm13, %v3092_v38, %v2845_v58  ;;  %v2871_v53 = vsel %vm2850_vm6, %v3815_v42, %v2239_v12 }
 0x17c   : > { %4035 = vmatmul.mubr.msk.bf16.gmra.mrb[8].mxu1 %vm3172_vm14, %v3125_v45 }
 0x17e   : > { %v2829_v7 = vpop.permute.xlu0 %2828 }
 0x17f   : > { %v3109_v1 = vsel %vm3097_vm13, %v3076_v19, %v2829_v7 }
 0x180   : > { %4019 = vmatmul.mubr.msk.bf16.gmra.mrb[8].mxu0 %vm3172_vm14, %v3109_v1 }
 0x183   : > { %v2257_v46 = vpop.permute.xlu1 %2256 }
 0x184   : > { %v2898_v62 = vsel %vm2850_vm6, %v3824_v49, %v2257_v46 }
 0x187   : > { %v2241_v63 = vpop.permute.xlu0 %2240  ;;  %v2335_v23 = vpop.permute.xlu1 %2334 }
 0x188   : > { %v2929_v60 = vsel %vm2899_vm7, %v2895_v37, %v2335_v23  ;;  %v2874_v43 = vsel %vm2850_vm6, %v3816_v9, %v2241_v63  ;;  %v3388_v23 = vld [vmem:[%s6041_s22 + $0x90] sm:$0xff]  ;;  %v3387_v37 = vld [vmem:[%s6041_s22 + $0x88] sm:$0xff] }
 0x18b   : > { %v2319_v24 = vpop.permute.xlu0 %2318  ;;  %v2337_v2 = vpop.permute.xlu1 %2336 }
 0x18c   : > { %v2913_v34 = vsel %vm2899_vm7, %v2871_v53, %v2319_v24  ;;  %v2931_v55 = vsel %vm2899_vm7, %v2898_v62, %v2337_v2  ;;  %v3370_v2 = vld [vmem:[%s6041_s22] sm:$0xff] }
 0x18f   : > { %v2321_v13 = vpop.permute.xlu0 %2320  ;;  %v2431_v28 = vpop.permute.xlu1 %2430 }
 0x190   : > { %v2962_v29 = vsel %vm2932_vm8, %v2929_v60, %v2431_v28  ;;  %v2915_v17 = vsel %vm2899_vm7, %v2874_v43, %v2321_v13 }
 0x193   : > { %v2415_v56 = vpop.permute.xlu0 %2414  ;;  %v2433_v32 = vpop.permute.xlu1 %2432 }
 0x194   : > { %v2946_v41 = vsel %vm2932_vm8, %v2913_v34, %v2415_v56  ;;  %v2964_v4 = vsel %vm2932_vm8, %v2931_v55, %v2433_v32 }
 0x197   : > { %v2417_v21 = vpop.permute.xlu0 %2416 }
 0x198   : > { %v2948_v10 = vsel %vm2932_vm8, %v2915_v17, %v2417_v21 }
 0x19b   : > { %v2511_v61 = vpop.permute.xlu1 %2510 }
 0x19c   : > { %v2495_v48 = vpop.permute.xlu0 %2494  ;;  %v2995_v18 = vsel %vm2965_vm9, %v2962_v29, %v2511_v61 }
 0x19d   : > { %v2979_v57 = vsel %vm2965_vm9, %v2946_v41, %v2495_v48  ;;  %v3386_v48 = vld [vmem:[%s6041_s22 + $0x80] sm:$0xff] }
 0x19f   : > { %v2513_v54 = vpop.permute.xlu1 %2512 }
 0x1a0   : > { %v2997_v36 = vsel %vm2965_vm9, %v2964_v4, %v2513_v54 }
 0x1a1   : > { %v2497_v33 = vpop.permute.xlu0 %2496 }
 0x1a2   : > { %v2981_v52 = vsel %vm2965_vm9, %v2948_v10, %v2497_v33 }
 0x1a3   : > { %v2591_v47 = vpop.permute.xlu1 %2590 }
 0x1a4   : > { %v3028_v30 = vsel %vm2998_vm10, %v2995_v18, %v2591_v47 }
 0x1a5   : > { %v2575_v40 = vpop.permute.xlu0 %2574 }
 0x1a6   : > { %v3012_v12 = vsel %vm2998_vm10, %v2979_v57, %v2575_v40 }
 0x1a7   : > { %v2593_v25 = vpop.permute.xlu1 %2592 }
 0x1a8   : > { %v3030_v58 = vsel %vm2998_vm10, %v2997_v36, %v2593_v25  ;;  %v3376_v36 = vld [vmem:[%s6041_s22 + $0x30] sm:$0xff] }
 0x1a9   : > { %v2577_v11 = vpop.permute.xlu0 %2576 }
 0x1aa   : > { %v3014_v39 = vsel %vm2998_vm10, %v2981_v52, %v2577_v11 }
 0x1ab   : > { %v2687_v22 = vpop.permute.xlu1 %2686 }
 0x1ac   : > { %v3061_v26 = vsel %vm3031_vm11, %v3028_v30, %v2687_v22  ;;  %v3373_v22 = vld [vmem:[%s6041_s22 + $0x18] sm:$0xff] }
 0x1ad   : > { %v2671_v44 = vpop.permute.xlu0 %2670 }
 0x1ae   : > { %v3045_v19 = vsel %vm3031_vm11, %v3012_v12, %v2671_v44 }
 0x1af   : > { %v2689_v35 = vpop.permute.xlu1 %2688 }
 0x1b0   : > { %v3063_v7 = vsel %vm3031_vm11, %v3030_v58, %v2689_v35 }
 0x1b1   : > { %v2673_v14 = vpop.permute.xlu0 %2672 }
 0x1b2   : > { %v3047_v1 = vsel %vm3031_vm11, %v3014_v39, %v2673_v14  ;;  %v3374_v39 = vld [vmem:[%s6041_s22 + $0x20] sm:$0xff] }
 0x1b6   : > { %v2767_v59 = vpop.permute.xlu1 %2766 }
 0x1b7   : > { %v3094_v31 = vsel %vm3064_vm12, %v3061_v26, %v2767_v59 }
 0x1b8   : > { %v2751_v20 = vpop.permute.xlu0 %2750 }
 0x1b9   : > { %v3078_v13 = vsel %vm3064_vm12, %v3045_v19, %v2751_v20 }
 0x1bb   : > { %v2769_v5 = vpop.permute.xlu1 %2768 }
 0x1bc   : > { %v3096_v28 = vsel %vm3064_vm12, %v3063_v7, %v2769_v5 }
 0x1be   : > { %v2753_v3 = vpop.permute.xlu0 %2752 }
 0x1bf   : > { %v2847_v38 = vpop.permute.xlu1 %2846  ;;  %v3080_v54 = vsel %vm3064_vm12, %v3047_v1, %v2753_v3  ;;  %v3392_v3 = vld [vmem:[%s6041_s22 + $0xb0] sm:$0xff] }
 0x1c0   : > { %v3127_v45 = vsel %vm3097_vm13, %v3094_v31, %v2847_v38  ;;  %v3390_v38 = vld [vmem:[%s6041_s22 + $0xa0] sm:$0xff] }
 0x1c1   : > { %v4012_v15 = vpop.f32.mrb[0].mxu0  ;;  %4038 = vmatprep.mubr.msk.bf16.mxu1 %vm3172_vm14, %v3127_v45 }
 0x1c2   : > { %v3252_v46 = vadd.f32 %v4012_v15, %v6050_v0  ;;  %v4028_v63 = vpop.f32.mrb[0].mxu1  ;;  %v3243_v24 = vpop.f32.mrb[1].mxu0 }
 0x1c3   : > { %v2831_v56 = vpop.permute.xlu0 %2830  ;;  %v3316_v32 = vadd.f32 %v4028_v63, %v6050_v0  ;;  %v3244_v21 = vadd.f32 %v6050_v0, %v3243_v24  ;;  %v3307_v61 = vpop.f32.mrb[1].mxu1  ;;  %v3391_v24 = vld [vmem:[%s6041_s22 + $0xa8] sm:$0xff] }
 0x1c4   : > { %v3111_v33 = vsel %vm3097_vm13, %v3078_v13, %v2831_v56  ;;  %v2849_v47 = vpop.permute.xlu1 %2848  ;;  %v3404_v40 = vadd.f32 %v3372_v50, %v3252_v46  ;;  %v3308_v25 = vadd.f32 %v6050_v0, %v3307_v61  ;;  %v4013_v11 = vpop.f32.mrb[2].mxu0  ;;  %v3393_v50 = vld [vmem:[%s6041_s22 + $0xb8] sm:$0xff] }
 0x1c5   : > { %4022 = vmatprep.mubr.msk.bf16.mxu0 %vm3172_vm14, %v3111_v33  ;;  %v3129_v44 = vsel %vm3097_vm13, %v3096_v28, %v2849_v47  ;;  %v3420_v35 = vadd.f32 %v3388_v23, %v3316_v32  ;;  %v3402_v14 = vadd.f32 %v3370_v2, %v3244_v21  ;;  %v3255_v51 = vadd.f32 %v4013_v11, %v6050_v0  ;;  %v4029_v27 = vpop.f32.mrb[2].mxu1  ;;  %v3246_v59 = vpop.f32.mrb[3].mxu0  ;;  %v3377_v46 = vld [vmem:[%s6041_s22 + $0x38] sm:$0xff]  ;;  %v3375_v32 = vld [vmem:[%s6041_s22 + $0x28] sm:$0xff] }
 0x1c6   : > { %4039 = vmatmul.mubr.msk.bf16.gmra.mrb[12].mxu1 %vm3172_vm14, %v3129_v44  ;;  %v3436_v6 = vmax.f32 %v3404_v40, 0.0  ;;  %v3418_v42 = vadd.f32 %v3386_v48, %v3308_v25  ;;  %v3319_v49 = vadd.f32 %v4029_v27, %v6050_v0  ;;  %v3247_v9 = vadd.f32 %v6050_v0, %v3246_v59  ;;  %v3310_v20 = vpop.f32.mrb[3].mxu1  ;;  %v3396_v59 = vld [vmem:[%s6041_s22 + $0xd0] sm:$0xff] }
 0x1c7   : > { %v2833_v60 = vpop.permute.xlu0 %2832  ;;  %v3452_v29 = vmax.f32 %v3420_v35, 0.0  ;;  %v3434_v5 = vmax.f32 %v3402_v14, 0.0  ;;  %v3405_v53 = vadd.f32 %v3373_v22, %v3255_v51  ;;  %v3311_v62 = vadd.f32 %v6050_v0, %v3310_v20  ;;  %v3397_v20 = vld [vmem:[%s6041_s22 + $0xd8] sm:$0xff] }
 0x1c8   : > { %v3113_v43 = vsel %vm3097_vm13, %v3080_v54, %v2833_v60  ;;  %3468 = vst [vmem:[%s6084_s27 + $0x10] sm:$0xff] %v3436_v6  ;;  %v3450_v18 = vmax.f32 %v3418_v42, 0.0  ;;  %v3421_v34 = vadd.f32 %v3389_v8, %v3319_v49  ;;  %v3403_v55 = vadd.f32 %v3371_v16, %v3247_v9  ;;  %v3394_v42 = vld [vmem:[%s6041_s22 + $0xc0] sm:$0xff] }
 0x1c9   : > { %4023 = vmatmul.mubr.msk.bf16.gmra.mrb[12].mxu0 %vm3172_vm14, %v3113_v43  ;;  %3484 = vst [vmem:[%s6084_s27 + $0x90] sm:$0xff] %v3452_v29  ;;  %3466 = vst [vmem:[%s6084_s27] sm:$0xff] %v3434_v5  ;;  %v3437_v17 = vmax.f32 %v3405_v53, 0.0  ;;  %v3419_v30 = vadd.f32 %v3387_v37, %v3311_v62  ;;  %v3395_v5 = vld [vmem:[%s6041_s22 + $0xc8] sm:$0xff]  ;;  %v3380_v62 = vld [vmem:[%s6041_s22 + $0x50] sm:$0xff] }
 0x1ca   : > { %3482 = vst [vmem:[%s6084_s27 + $0x80] sm:$0xff] %v3450_v18  ;;  %v3453_v41 = vmax.f32 %v3421_v34, 0.0  ;;  %v3435_v4 = vmax.f32 %v3403_v55, 0.0 }
 0x1cb   : > { %3469 = vst [vmem:[%s6084_s27 + $0x18] sm:$0xff] %v3437_v17  ;;  %v3451_v10 = vmax.f32 %v3419_v30, 0.0  ;;  %v3378_v30 = vld [vmem:[%s6041_s22 + $0x40] sm:$0xff] }
 0x1cc   : > { %3485 = vst [vmem:[%s6084_s27 + $0x98] sm:$0xff] %v3453_v41  ;;  %3467 = vst [vmem:[%s6084_s27 + $0x8] sm:$0xff] %v3435_v4 }
 0x1cd   : > { %3483 = vst [vmem:[%s6084_s27 + $0x88] sm:$0xff] %v3451_v10 }
 0x210   : > { %v4032_v26 = vpop.f32.mrb[4].mxu1 }
 0x211   : > { %v3332_v52 = vadd.f32 %v4032_v26, %v6050_v0  ;;  %v3323_v31 = vpop.f32.mrb[5].mxu1 }
 0x212   : > { %v4016_v57 = vpop.f32.mrb[4].mxu0  ;;  %v3324_v45 = vadd.f32 %v6050_v0, %v3323_v31  ;;  %v4033_v15 = vpop.f32.mrb[6].mxu1 }
 0x213   : > { %v3268_v12 = vadd.f32 %v4016_v57, %v6050_v0  ;;  %v3259_v58 = vpop.f32.mrb[5].mxu0  ;;  %v3424_v19 = vadd.f32 %v3392_v3, %v3332_v52  ;;  %v3335_v63 = vadd.f32 %v4033_v15, %v6050_v0  ;;  %v3326_v23 = vpop.f32.mrb[7].mxu1  ;;  %v3381_v3 = vld [vmem:[%s6041_s22 + $0x58] sm:$0xff] }
 0x214   : > { %v3260_v7 = vadd.f32 %v6050_v0, %v3259_v58  ;;  %v4017_v1 = vpop.f32.mrb[6].mxu0  ;;  %v3422_v13 = vadd.f32 %v3390_v38, %v3324_v45  ;;  %v3327_v21 = vadd.f32 %v6050_v0, %v3326_v23  ;;  %v3400_v23 = vld [vmem:[%s6041_s22 + $0xf0] sm:$0xff] }
 0x215   : > { %v3408_v2 = vadd.f32 %v3376_v36, %v3268_v12  ;;  %v3271_v28 = vadd.f32 %v4017_v1, %v6050_v0  ;;  %v3262_v56 = vpop.f32.mrb[7].mxu0  ;;  %v3456_v61 = vmax.f32 %v3424_v19, 0.0  ;;  %v3425_v54 = vadd.f32 %v3393_v50, %v3335_v63  ;;  %v3379_v12 = vld [vmem:[%s6041_s22 + $0x48] sm:$0xff] }
 0x216   : > { %v3406_v48 = vadd.f32 %v3374_v39, %v3260_v7  ;;  %v3263_v33 = vadd.f32 %v6050_v0, %v3262_v56  ;;  %v3454_v40 = vmax.f32 %v3422_v13, 0.0  ;;  %v3423_v11 = vadd.f32 %v3391_v24, %v3327_v21  ;;  %v3398_v13 = vld [vmem:[%s6041_s22 + $0xe0] sm:$0xff] }
 0x217   : > { %v3440_v47 = vmax.f32 %v3408_v2, 0.0  ;;  %v3409_v25 = vadd.f32 %v3377_v46, %v3271_v28  ;;  %3488 = vst [vmem:[%s6084_s27 + $0xb0] sm:$0xff] %v3456_v61  ;;  %v3457_v44 = vmax.f32 %v3425_v54, 0.0  ;;  %v3384_v61 = vld [vmem:[%s6041_s22 + $0x70] sm:$0xff] }
 0x218   : > { %v3438_v22 = vmax.f32 %v3406_v48, 0.0  ;;  %v3407_v35 = vadd.f32 %v3375_v32, %v3263_v33  ;;  %3486 = vst [vmem:[%s6084_s27 + $0xa0] sm:$0xff] %v3454_v40  ;;  %v3455_v51 = vmax.f32 %v3423_v11, 0.0  ;;  %v3401_v32 = vld [vmem:[%s6041_s22 + $0xf8] sm:$0xff]  ;;  %v3382_v11 = vld [vmem:[%s6041_s22 + $0x60] sm:$0xff] }
 0x219   : > { %3472 = vst [vmem:[%s6084_s27 + $0x30] sm:$0xff] %v3440_v47  ;;  %v3441_v14 = vmax.f32 %v3409_v25, 0.0  ;;  %3489 = vst [vmem:[%s6084_s27 + $0xb8] sm:$0xff] %v3457_v44  ;;  %v3399_v47 = vld [vmem:[%s6041_s22 + $0xe8] sm:$0xff] }
 0x21a   : > { %3470 = vst [vmem:[%s6084_s27 + $0x20] sm:$0xff] %v3438_v22  ;;  %v3439_v27 = vmax.f32 %v3407_v35, 0.0  ;;  %3487 = vst [vmem:[%s6084_s27 + $0xa8] sm:$0xff] %v3455_v51 }
 0x21b   : > { %3473 = vst [vmem:[%s6084_s27 + $0x38] sm:$0xff] %v3441_v14 }
 0x21c   : > { %3471 = vst [vmem:[%s6084_s27 + $0x28] sm:$0xff] %v3439_v27  ;;  %v3385_v27 = vld [vmem:[%s6041_s22 + $0x78] sm:$0xff] }
 0x24f   : > { %v4036_v8 = vpop.f32.mrb[8].mxu1 }
 0x250   : > { %v3348_v16 = vadd.f32 %v4036_v8, %v6050_v0  ;;  %v3339_v6 = vpop.f32.mrb[9].mxu1 }
 0x251   : > { %v3340_v49 = vadd.f32 %v6050_v0, %v3339_v6  ;;  %v4037_v9 = vpop.f32.mrb[10].mxu1 }
 0x252   : > { %v3428_v37 = vadd.f32 %v3396_v59, %v3348_v16  ;;  %v3351_v60 = vadd.f32 %v4037_v9, %v6050_v0  ;;  %v3342_v29 = vpop.f32.mrb[11].mxu1 }
 0x253   : > { %v4020_v53 = vpop.f32.mrb[8].mxu0  ;;  %v3426_v43 = vadd.f32 %v3394_v42, %v3340_v49  ;;  %v3343_v18 = vadd.f32 %v6050_v0, %v3342_v29  ;;  %v3383_v49 = vld [vmem:[%s6041_s22 + $0x68] sm:$0xff] }
 0x254   : > { %v3284_v34 = vadd.f32 %v4020_v53, %v6050_v0  ;;  %v3460_v55 = vmax.f32 %v3428_v37, 0.0  ;;  %v3275_v17 = vpop.f32.mrb[9].mxu0  ;;  %v3429_v41 = vadd.f32 %v3397_v20, %v3351_v60 }
 0x255   : > { %v3276_v4 = vadd.f32 %v6050_v0, %v3275_v17  ;;  %v3458_v10 = vmax.f32 %v3426_v43, 0.0  ;;  %v4021_v26 = vpop.f32.mrb[10].mxu0  ;;  %v3427_v57 = vadd.f32 %v3395_v5, %v3343_v18 }
 0x256   : > { %v3412_v36 = vadd.f32 %v3380_v62, %v3284_v34  ;;  %3492 = vst [vmem:[%s6084_s27 + $0xd0] sm:$0xff] %v3460_v55  ;;  %v3287_v52 = vadd.f32 %v4021_v26, %v6050_v0  ;;  %v3461_v31 = vmax.f32 %v3429_v41, 0.0  ;;  %v3278_v38 = vpop.f32.mrb[11].mxu0 }
 0x257   : > { %v3410_v58 = vadd.f32 %v3378_v30, %v3276_v4  ;;  %3490 = vst [vmem:[%s6084_s27 + $0xc0] sm:$0xff] %v3458_v10  ;;  %v3279_v39 = vadd.f32 %v6050_v0, %v3278_v38  ;;  %v3459_v45 = vmax.f32 %v3427_v57, 0.0 }
 0x258   : > { %v3444_v15 = vmax.f32 %v3412_v36, 0.0  ;;  %v3413_v50 = vadd.f32 %v3381_v3, %v3287_v52  ;;  %3493 = vst [vmem:[%s6084_s27 + $0xd8] sm:$0xff] %v3461_v31 }
 0x259   : > { %v3442_v19 = vmax.f32 %v3410_v58, 0.0  ;;  %v3411_v7 = vadd.f32 %v3379_v12, %v3279_v39  ;;  %3491 = vst [vmem:[%s6084_s27 + $0xc8] sm:$0xff] %v3459_v45 }
 0x25a   : > { %3476 = vst [vmem:[%s6084_s27 + $0x50] sm:$0xff] %v3444_v15  ;;  %v3445_v1 = vmax.f32 %v3413_v50, 0.0 }
 0x25b   : > { %3474 = vst [vmem:[%s6084_s27 + $0x40] sm:$0xff] %v3442_v19  ;;  %v3443_v46 = vmax.f32 %v3411_v7, 0.0 }
 0x25c   : > { %3477 = vst [vmem:[%s6084_s27 + $0x58] sm:$0xff] %v3445_v1 }
 0x25d   : > { %3475 = vst [vmem:[%s6084_s27 + $0x48] sm:$0xff] %v3443_v46 }
 0x299   : > { %v4040_v63 = vpop.f32.mrb[12].mxu1 }
 0x29a   : > { %v3364_v24 = vadd.f32 %v4040_v63, %v6050_v0  ;;  %v3355_v2 = vpop.f32.mrb[13].mxu1 }
 0x29b   : > { %v3356_v28 = vadd.f32 %v6050_v0, %v3355_v2  ;;  %v4041_v56 = vpop.f32.mrb[14].mxu1 }
 0x29c   : > { %v4024_v21 = vpop.f32.mrb[12].mxu0  ;;  %v3432_v48 = vadd.f32 %v3400_v23, %v3364_v24  ;;  %v3367_v54 = vadd.f32 %v4041_v56, %v6050_v0  ;;  %v3358_v33 = vpop.f32.mrb[15].mxu1 }
 0x29d   : > { %v3300_v40 = vadd.f32 %v4024_v21, %v6050_v0  ;;  %v3291_v25 = vpop.f32.mrb[13].mxu0  ;;  %v3430_v22 = vadd.f32 %v3398_v13, %v3356_v28  ;;  %v3359_v44 = vadd.f32 %v6050_v0, %v3358_v33 }
 0x29e   : > { %v3464_v35 = vmax.f32 %v3432_v48, 0.0  ;;  %v3292_v14 = vadd.f32 %v6050_v0, %v3291_v25  ;;  %v4025_v51 = vpop.f32.mrb[14].mxu0  ;;  %v3433_v8 = vadd.f32 %v3401_v32, %v3367_v54 }
 0x29f   : > { %v3416_v59 = vadd.f32 %v3384_v61, %v3300_v40  ;;  %v3462_v16 = vmax.f32 %v3430_v22, 0.0  ;;  %v3303_v6 = vadd.f32 %v4025_v51, %v6050_v0  ;;  %v3294_v42 = vpop.f32.mrb[15].mxu0  ;;  %v3431_v9 = vadd.f32 %v3399_v47, %v3359_v44 }
 0x2a0   : > { %3496 = vst [vmem:[%s6084_s27 + $0xf0] sm:$0xff] %v3464_v35  ;;  %v3414_v20 = vadd.f32 %v3382_v11, %v3292_v14  ;;  %v3465_v37 = vmax.f32 %v3433_v8, 0.0  ;;  %v3295_v60 = vadd.f32 %v6050_v0, %v3294_v42 }
 0x2a1   : > { %v3448_v29 = vmax.f32 %v3416_v59, 0.0  ;;  %3494 = vst [vmem:[%s6084_s27 + $0xe0] sm:$0xff] %v3462_v16  ;;  %v3417_v5 = vadd.f32 %v3385_v27, %v3303_v6  ;;  %v3463_v53 = vmax.f32 %v3431_v9, 0.0 }
 0x2a2   : > { %v3446_v62 = vmax.f32 %v3414_v20, 0.0  ;;  %3497 = vst [vmem:[%s6084_s27 + $0xf8] sm:$0xff] %v3465_v37  ;;  %v3415_v43 = vadd.f32 %v3383_v49, %v3295_v60 }
 0x2a3   : > { %3480 = vst [vmem:[%s6084_s27 + $0x70] sm:$0xff] %v3448_v29  ;;  %v3449_v18 = vmax.f32 %v3417_v5, 0.0  ;;  %3495 = vst [vmem:[%s6084_s27 + $0xe8] sm:$0xff] %v3463_v53 }
 0x2a4   : > { %3478 = vst [vmem:[%s6084_s27 + $0x60] sm:$0xff] %v3446_v62  ;;  %v3447_v34 = vmax.f32 %v3415_v43, 0.0 }
 0x2a5   : > { %3481 = vst [vmem:[%s6084_s27 + $0x78] sm:$0xff] %v3449_v18 }
 0x2a6   : > { %3479 = vst [vmem:[%s6084_s27 + $0x68] sm:$0xff] %v3447_v34 }
 0x2a7 PF: > { %s14_s17 = sadd.s32 1, %s4190_s17   ;;  %s6194_s15 = smov %s4186_s16 }
 0x2a8   : > { %p11_p5 = scmp.ge.s32.totalorder %s14_s17, 4   ;;  %s6195_s16 = smov %s6197_s18 }
 0x2aa   :  { %13 = sbr.rel (!%p11_p5) target bundleno = 2 (0x2), region = 77 }

</bundles_post_ra>
